<compile_context>
chip_gen: v6e
topology: v6e:2x2x1
jax: 0.10.0
libtpu: 0.0.40
codegen_flags: <defaults>
</compile_context>

<pallas_src>
import jax
import jax.numpy as jnp
from jax.experimental import pallas as pl
from jax.experimental.pallas import tpu as pltpu

EPS = 1e-5
_VMEM_LIMIT = 48 * 1024 * 1024   # explicit scoped-VMEM budget
_PAD_OFF = 8                     # sublane-aligned interior offset in the halo scratch


# -----------------------------------------------------------------------------
# fused kernel
# -----------------------------------------------------------------------------
def _make_memory_block_kernel(hp: int):
    """Build the fused _MemoryBlock kernel, closed over the static rows-per-image."""

    def kernel(x_ref, long_ref, mres_ref, rg1_ref, rb1_ref, rg2_ref, rb2_ref,
               gg_ref, gb_ref, mgate_ref, rr_ref, re_ref, out_ref, pad_ref):
        # x_ref / out_ref : (N*H/2, 2*W*C)        lane-dense row-pair packed activations
        # long_ref        : (M, N*H/2, 2*W*C)     pre-packed long_outs
        # mres_ref        : (R, 2, 3*L, L)        K-stacked pair-band 3x3 conv weights
        # rg1/rb1/rg2/rb2 : (R, 1, C)             BN gamma/beta of the two BNs per block
        # gg/gb_ref       : (R+M, 1, C)           gate BN gamma/beta per channel group
        # mgate_ref       : (R+M, L, L)           per-group block-diagonal 1x1 weights
        # rr_ref / re_ref : (L, C) / (C, L)       channel group selectors
        # pad_ref         : (N*H/2 + 16, L)       halo scratch (rows 7 and 8+rows stay 0)
        NHP, L = x_ref.shape
        C = rr_ref.shape[1]
        R = mres_ref.shape[0]
        M = long_ref.shape[0]
        count = NHP * (L // C)                 # = N*H*W elements per BN channel
        inv_count = 1.0 / count

        rr = rr_ref[...]
        re = re_ref[...]
        ones_row = jnp.ones((1, NHP), jnp.float32)

        # image-boundary masks for the vertical (dy) conv taps (hoisted, reused)
        row_ids = jax.lax.broadcasted_iota(jnp.int32, (NHP, 1), 0)
        up_mask = (row_ids % hp != 0).astype(jnp.float32)
        down_mask = (row_ids % hp != hp - 1).astype(jnp.float32)

        # zero ONLY the two halo rows, once; interior writes never touch them
        zrow = jnp.zeros((1, L), jnp.float32)
        pad_ref[_PAD_OFF - 1:_PAD_OFF, :] = zrow
        pad_ref[_PAD_OFF + NHP:_PAD_OFF + NHP + 1, :] = zrow

        def bn_relu(flat, grow, brow):
            # training BatchNorm (batch stats, biased var) + ReLU on packed lanes.
            # 4 tiny MXU matmuls: 2 column sums, 1 stacked group-reduce, 1 stacked
            # scale/shift broadcast; rsqrt on the EUP; stats stay in f32.
            s1 = jnp.dot(ones_row, flat, preferred_element_type=jnp.float32)        # (1, L)
            s2 = jnp.dot(ones_row, flat * flat, preferred_element_type=jnp.float32)
            cc = jnp.dot(jnp.concatenate([s1, s2], axis=0), rr,
                         preferred_element_type=jnp.float32)                        # (2, C)
            mean = cc[0:1, :] * inv_count
            var = cc[1:2, :] * inv_count - mean * mean       # biased variance
            scale = grow * jax.lax.rsqrt(var + EPS)
            shift = brow - mean * scale
            ss = jnp.dot(jnp.concatenate([scale, shift], axis=0), re,
                         preferred_element_type=jnp.float32)                        # (2, L)
            return jnp.maximum(flat * ss[0:1, :] + ss[1:2, :], 0.0)

        def conv3x3(flat, band):
            # 3x3 conv (stride 1, pad 1, no bias) as ONE MXU matmul:
            # im2col of the previous / current / next row-pair along lanes, times
            # the K-stacked (3L, L) block-Toeplitz weight (dx taps + W-padding are
            # already folded into each 128x128 band).
            pad_ref[_PAD_OFF:_PAD_OFF + NHP, :] = flat                  # aligned write
            up = pad_ref[_PAD_OFF - 1:_PAD_OFF - 1 + NHP, :] * up_mask
            down = pad_ref[_PAD_OFF + 1:_PAD_OFF + 1 + NHP, :] * down_mask
            cols = jnp.concatenate([up, flat, down], axis=1)            # (NHP, 3L)
            return jnp.dot(cols, band, preferred_element_type=jnp.float32)

        act = x_ref[...]
        gate_acc = jnp.zeros((NHP, L), jnp.float32)

        # R outer recursions x R residual blocks, fully resident (no HBM traffic).
        # TODO(synk): for large R switch to lax.fori_loop with dynamic weight
        # indexing instead of this static unroll.
        for r in range(R):
            for b in range(R):
                h = bn_relu(act, rg1_ref[b], rb1_ref[b])
                h = conv3x3(h, mres_ref[b, 0])
                h = bn_relu(h, rg2_ref[b], rb2_ref[b])
                h = conv3x3(h, mres_ref[b, 1])
                act = act + h                                   # residual add
            # gate contribution of short_out[r]: per-channel BN is group-separable,
            # so BN+ReLU+1x1-conv of this group can be accumulated immediately.
            y = bn_relu(act, gg_ref[r], gb_ref[r])
            gate_acc = gate_acc + jnp.dot(y, mgate_ref[r],
                                          preferred_element_type=jnp.float32)

        for m in range(M):
            y = bn_relu(long_ref[m], gg_ref[R + m], gb_ref[R + m])
            gate_acc = gate_acc + jnp.dot(y, mgate_ref[R + m],
                                          preferred_element_type=jnp.float32)

        out_ref[...] = gate_acc

    return kernel


# -----------------------------------------------------------------------------
# wrapper-side layout / weight plumbing (built once per forward, under jit)
# -----------------------------------------------------------------------------
def _pair_pack(x_nchw):
    # NCHW -> lane-dense row-pair packing (N*H/2, 2*W*C); lane = (h_par*W + w)*C + c
    N, C, H, W = x_nchw.shape
    x = jnp.transpose(x_nchw, (0, 2, 3, 1)).reshape(N, H // 2, 2, W, C)
    return x.reshape(N * (H // 2), 2 * W * C).astype(jnp.float32)


def _pair_unpack(flat, N, C, H, W):
    x = flat.reshape(N, H // 2, 2, W, C).reshape(N, H, W, C)
    return jnp.transpose(x, (0, 3, 1, 2))


def _channel_selectors(lanes_per_c, C):
    # rr[p*C + c, c'] = 1[c == c'] ; re = rr.T
    rr = jnp.kron(jnp.ones((lanes_per_c, 1), jnp.float32), jnp.eye(C, dtype=jnp.float32))
    return rr, jnp.transpose(rr)


def _width_band(wt_dy, W):
    # wt_dy: (3, Cin, Cout) taps of one kernel row -> (W*Cin, W*Cout) banded matrix
    band = None
    for dx in range(3):
        term = jnp.kron(jnp.eye(W, k=1 - dx, dtype=jnp.float32), wt_dy[dx])
        band = term if band is None else band + term
    return band


def _conv3x3_pair_band(w_oihw, W):
    """(Cout, Cin, 3, 3) -> (3*2*W*Cin, 2*W*Cout) K-stacked row-pair band.

    The three stacked (2WC, 2WC) blocks act on the previous / current / next
    row-pair; within each block the dx taps and the width zero-padding are
    folded into the band (block-Toeplitz via kron).
    """
    wt = jnp.transpose(w_oihw, (2, 3, 1, 0)).astype(jnp.float32)   # (ky, kx, cin, cout)
    m = [_width_band(wt[dy], W) for dy in range(3)]                # per-ky bands
    z = jnp.zeros_like(m[0])
    m_up = jnp.block([[z, z], [m[0], z]])
    m_mid = jnp.block([[m[1], m[0]], [m[2], m[1]]])
    m_down = jnp.block([[z, m[2]], [z, z]])
    return jnp.concatenate([m_up, m_mid, m_down], axis=0)


def _gate_group_weights(gate_w, C, W):
    # (Cout, G, 1, 1) -> (G//C, 2WC, 2WCout) block-diagonal per-group 1x1 weights
    Cout, G = gate_w.shape[0], gate_w.shape[1]
    wg = gate_w.reshape(Cout, G).astype(jnp.float32)
    eye2w = jnp.eye(2 * W, dtype=jnp.float32)
    mats = []
    for g in range(G // C):
        wm = jnp.transpose(wg[:, g * C:(g + 1) * C])   # (Cin, Cout)
        mats.append(jnp.kron(eye2w, wm))
    return jnp.stack(mats)


def _memory_block_impl(x_nchw, res_params, gate_gamma, gate_beta, gate_w, long_outs):
    x_nchw = x_nchw.astype(jnp.float32)
    N, C, H, W = x_nchw.shape
    assert H % 2 == 0, "row-pair packed layout needs even H"
    R = len(res_params)
    M = len(long_outs)
    HP = H // 2
    L = 2 * W * C

    # weights / layout plumbing (hoisted: built once per forward)
    mres = jnp.stack([jnp.stack([_conv3x3_pair_band(w1, W), _conv3x3_pair_band(w2, W)])
                      for (w1, g1, b1, w2, g2, b2) in res_params])          # (R,2,3L,L)
    rg1 = jnp.stack([g1.reshape(1, C).astype(jnp.float32)
                     for (w1, g1, b1, w2, g2, b2) in res_params])
    rb1 = jnp.stack([b1.reshape(1, C).astype(jnp.float32)
                     for (w1, g1, b1, w2, g2, b2) in res_params])
    rg2 = jnp.stack([g2.reshape(1, C).astype(jnp.float32)
                     for (w1, g1, b1, w2, g2, b2) in res_params])
    rb2 = jnp.stack([b2.reshape(1, C).astype(jnp.float32)
                     for (w1, g1, b1, w2, g2, b2) in res_params])
    gg = gate_gamma.reshape(R + M, 1, C).astype(jnp.float32)
    gb = gate_beta.reshape(R + M, 1, C).astype(jnp.float32)
    mgate = _gate_group_weights(gate_w, C, W)                               # (R+M,L,L)
    rr, re = _channel_selectors(2 * W, C)

    x_pack = _pair_pack(x_nchw)                                             # (N*HP, L)
    long_pack = jnp.stack([_pair_pack(lo.astype(jnp.float32)) for lo in long_outs])

    out_pack = pl.pallas_call(
        _make_memory_block_kernel(HP),
        out_shape=jax.ShapeDtypeStruct((N * HP, L), jnp.float32),
        in_specs=[pl.BlockSpec(memory_space=pltpu.MemorySpace.VMEM)] * 12,
        out_specs=pl.BlockSpec(memory_space=pltpu.MemorySpace.VMEM),
        scratch_shapes=[pltpu.VMEM((N * HP + 2 * _PAD_OFF, L), jnp.float32)],
        compiler_params=pltpu.CompilerParams(vmem_limit_bytes=_VMEM_LIMIT),
    )(x_pack, long_pack, mres, rg1, rb1, rg2, rb2, gg, gb, mgate, rr, re)

    return _pair_unpack(out_pack, N, C, H, W)


_memory_block_jit = jax.jit(_memory_block_impl)


def memory_block(x_nchw, res_params, gate_gamma, gate_beta, gate_w, long_outs):
    """Forward of `_MemoryBlock`.

    x_nchw:     (N, C, H, W)
    res_params: list of R tuples (w1, g1, b1, w2, g2, b2) for the R residual
                blocks of `recursive_unit` (PyTorch layouts).
    gate_*:     BN gamma/beta (G,), conv weight (C, G, 1, 1), G = (R+M)*C.
    long_outs:  python list of M tensors (N, C, H, W); gate_out is appended.
    Returns gate_out (N, C, H, W).
    """
    gate_out = _memory_block_jit(
        x_nchw, tuple(tuple(p) for p in res_params),
        gate_gamma, gate_beta, gate_w, tuple(long_outs))
    long_outs.append(gate_out)          # module side effect
    return gate_out


# -----------------------------------------------------------------------------
# pure-JAX reference (NCHW) for verification
# -----------------------------------------------------------------------------
def _reference_memory_block(x, res_params, gate_gamma, gate_beta, gate_w, long_outs):
    def bn_relu(v, g, b):
        mean = v.mean(axis=(0, 2, 3), keepdims=True)
        var = jnp.square(v - mean).mean(axis=(0, 2, 3), keepdims=True)
        y = (v - mean) / jnp.sqrt(var + EPS) * g.reshape(1, -1, 1, 1) + b.reshape(1, -1, 1, 1)
        return jnp.maximum(y, 0.0)

    def conv(v, w, pad):
        return jax.lax.conv_general_dilated(
            v, w, window_strides=(1, 1), padding=((pad, pad), (pad, pad)),
            dimension_numbers=("NCHW", "OIHW", "NCHW"))

    def res_block(v, params):
        w1, g1, b1, w2, g2, b2 = params
        h = conv(bn_relu(v, g1, b1), w1, 1)
        h = conv(bn_relu(h, g2, b2), w2, 1)
        return h + v

    out = x
    short_outs = []
    for _ in range(len(res_params)):
        for p in res_params:
            out = res_block(out, p)
        short_outs.append(out)
    cat = jnp.concatenate(short_outs + list(long_outs), axis=1)
    return conv(bn_relu(cat, gate_gamma, gate_beta), gate_w, 0)


if __name__ == "__main__":
    N, C, H, W = 2, 4, 16, 16
    R = 2          # num_residual_blocks
    M = 2          # num_memory_blocks == len(long_outs) for this call
    G = (R + M) * C

    keys = jax.random.split(jax.random.PRNGKey(0), 32)
    kit = iter(range(32))
    nk = lambda: keys[next(kit)]

    x = jax.random.normal(nk(), (N, C, H, W), jnp.float32)
    long_outs = [0.5 * jax.random.normal(nk(), (N, C, H, W), jnp.float32)
                 for _ in range(M)]

    res_params = []
    for _ in range(R):
        w1 = 0.1 * jax.random.normal(nk(), (C, C, 3, 3), jnp.float32)
        g1 = 1.0 + 0.1 * jax.random.normal(nk(), (C,), jnp.float32)
        b1 = 0.1 * jax.random.normal(nk(), (C,), jnp.float32)
        w2 = 0.1 * jax.random.normal(nk(), (C, C, 3, 3), jnp.float32)
        g2 = 1.0 + 0.1 * jax.random.normal(nk(), (C,), jnp.float32)
        b2 = 0.1 * jax.random.normal(nk(), (C,), jnp.float32)
        res_params.append((w1, g1, b1, w2, g2, b2))

    gate_gamma = 1.0 + 0.1 * jax.random.normal(nk(), (G,), jnp.float32)
    gate_beta = 0.1 * jax.random.normal(nk(), (G,), jnp.float32)
    gate_w = 0.1 * jax.random.normal(nk(), (C, G, 1, 1), jnp.float32)

    long_outs_kernel = list(long_outs)   # memory_block mutates its list arg
    out = jax.block_until_ready(
        memory_block(x, res_params, gate_gamma, gate_beta, gate_w, long_outs_kernel))
    ref = jax.block_until_ready(
        _reference_memory_block(x, res_params, gate_gamma, gate_beta, gate_w, long_outs))

    assert out.shape == (N, C, H, W)
    assert len(long_outs_kernel) == M + 1
    err = float(jnp.max(jnp.abs(out - ref)))
    assert jnp.allclose(out, ref, atol=2e-3, rtol=2e-3), f"max abs err {err}"
    print("KERNEL_OK")
</pallas_src>

<mosaic_0001>
module attributes {stable_mosaic.version = 11 : i64} {
  func.func @kernel(%arg0: memref<16x128xf32, #tpu.memory_space<vmem>>, %arg1: memref<2x16x128xf32, #tpu.memory_space<vmem>>, %arg2: memref<2x2x384x128xf32, #tpu.memory_space<vmem>>, %arg3: memref<2x1x4xf32, #tpu.memory_space<vmem>>, %arg4: memref<2x1x4xf32, #tpu.memory_space<vmem>>, %arg5: memref<2x1x4xf32, #tpu.memory_space<vmem>>, %arg6: memref<2x1x4xf32, #tpu.memory_space<vmem>>, %arg7: memref<4x1x4xf32, #tpu.memory_space<vmem>>, %arg8: memref<4x1x4xf32, #tpu.memory_space<vmem>>, %arg9: memref<4x128x128xf32, #tpu.memory_space<vmem>>, %arg10: memref<128x4xf32, #tpu.memory_space<vmem>>, %arg11: memref<4x128xf32, #tpu.memory_space<vmem>>, %arg12: memref<16x128xf32, #tpu.memory_space<vmem>>, %arg13: memref<32x128xf32, #tpu.memory_space<vmem>>) attributes {dimension_semantics = [], scalar_prefetch = 0 : i64, scratch_operands = 1 : i64, tpu.core_type = #tpu.core_type<tc>} {
    %c0 = arith.constant 0 : index
    %c0_0 = arith.constant 0 : index
    %0 = vector.load %arg10[%c0, %c0_0] : memref<128x4xf32, #tpu.memory_space<vmem>>, vector<128x4xf32>
    %c0_1 = arith.constant 0 : index
    %c0_2 = arith.constant 0 : index
    %1 = vector.load %arg11[%c0_1, %c0_2] : memref<4x128xf32, #tpu.memory_space<vmem>>, vector<4x128xf32>
    %cst = arith.constant 1.000000e+00 : f32
    %2 = vector.broadcast %cst : f32 to vector<1x16xf32>
    %3 = tpu.iota {dimensions = array<i32: 0>} : vector<16x1xi32>
    %c8_i32 = arith.constant 8 : i32
    %c0_i32 = arith.constant 0 : i32
    %4 = arith.cmpi eq, %c8_i32, %c0_i32 : i32
    %c1_i32 = arith.constant 1 : i32
    %5 = arith.select %4, %c1_i32, %c8_i32 : i32
    %6 = vector.broadcast %5 : i32 to vector<16x1xi32>
    %7 = arith.remsi %3, %6 : vector<16x1xi32>
    %c0_i32_3 = arith.constant 0 : i32
    %8 = vector.broadcast %c0_i32_3 : i32 to vector<16x1xi32>
    %9 = arith.cmpi ne, %7, %8 : vector<16x1xi32>
    %c0_i32_4 = arith.constant 0 : i32
    %10 = vector.broadcast %c0_i32_4 : i32 to vector<16x1xi32>
    %11 = arith.cmpi slt, %7, %10 : vector<16x1xi32>
    %c0_i32_5 = arith.constant 0 : i32
    %12 = arith.cmpi slt, %5, %c0_i32_5 : i32
    %13 = vector.broadcast %12 : i1 to vector<16x1xi1>
    %14 = vector.broadcast %13 : vector<16x1xi1> to vector<16x1xi1>
    %15 = arith.xori %11, %14 : vector<16x1xi1>
    %16 = arith.andi %15, %9 : vector<16x1xi1>
    %17 = vector.broadcast %5 : i32 to vector<16x1xi32>
    %18 = arith.addi %7, %17 : vector<16x1xi32>
    %19 = arith.select %16, %18, %7 : vector<16x1xi1>, vector<16x1xi32>
    %c0_i32_6 = arith.constant 0 : i32
    %20 = vector.broadcast %c0_i32_6 : i32 to vector<16x1xi32>
    %21 = arith.cmpi ne, %19, %20 : vector<16x1xi32>
    %22 = arith.extui %21 : vector<16x1xi1> to vector<16x1xi32>
    %23 = arith.sitofp %22 : vector<16x1xi32> to vector<16x1xf32>
    %c8_i32_7 = arith.constant 8 : i32
    %c0_i32_8 = arith.constant 0 : i32
    %24 = arith.cmpi eq, %c8_i32_7, %c0_i32_8 : i32
    %c1_i32_9 = arith.constant 1 : i32
    %25 = arith.select %24, %c1_i32_9, %c8_i32_7 : i32
    %26 = vector.broadcast %25 : i32 to vector<16x1xi32>
    %27 = arith.remsi %3, %26 : vector<16x1xi32>
    %c0_i32_10 = arith.constant 0 : i32
    %28 = vector.broadcast %c0_i32_10 : i32 to vector<16x1xi32>
    %29 = arith.cmpi ne, %27, %28 : vector<16x1xi32>
    %c0_i32_11 = arith.constant 0 : i32
    %30 = vector.broadcast %c0_i32_11 : i32 to vector<16x1xi32>
    %31 = arith.cmpi slt, %27, %30 : vector<16x1xi32>
    %c0_i32_12 = arith.constant 0 : i32
    %32 = arith.cmpi slt, %25, %c0_i32_12 : i32
    %33 = vector.broadcast %32 : i1 to vector<16x1xi1>
    %34 = vector.broadcast %33 : vector<16x1xi1> to vector<16x1xi1>
    %35 = arith.xori %31, %34 : vector<16x1xi1>
    %36 = arith.andi %35, %29 : vector<16x1xi1>
    %37 = vector.broadcast %25 : i32 to vector<16x1xi32>
    %38 = arith.addi %27, %37 : vector<16x1xi32>
    %39 = arith.select %36, %38, %27 : vector<16x1xi1>, vector<16x1xi32>
    %c7_i32 = arith.constant 7 : i32
    %40 = vector.broadcast %c7_i32 : i32 to vector<16x1xi32>
    %41 = arith.cmpi ne, %39, %40 : vector<16x1xi32>
    %42 = arith.extui %41 : vector<16x1xi1> to vector<16x1xi32>
    %43 = arith.sitofp %42 : vector<16x1xi32> to vector<16x1xf32>
    %cst_13 = arith.constant 0.000000e+00 : f32
    %44 = vector.broadcast %cst_13 : f32 to vector<1x128xf32>
    %c7 = arith.constant 7 : index
    %c0_14 = arith.constant 0 : index
    %45 = vector.load %arg13[%c7, %c0_14] : memref<32x128xf32, #tpu.memory_space<vmem>>, vector<1x128xf32>
    tpu.vector_store %arg13[%c7, %c0_14], %44 {strides = array<i32>} : memref<32x128xf32, #tpu.memory_space<vmem>>, vector<1x128xf32>,
    %c24 = arith.constant 24 : index
    %c0_15 = arith.constant 0 : index
    %46 = vector.load %arg13[%c24, %c0_15] : memref<32x128xf32, #tpu.memory_space<vmem>>, vector<1x128xf32>
    tpu.vector_store %arg13[%c24, %c0_15], %44 {strides = array<i32>} : memref<32x128xf32, #tpu.memory_space<vmem>>, vector<1x128xf32>,
    %c0_16 = arith.constant 0 : index
    %c0_17 = arith.constant 0 : index
    %47 = vector.load %arg0[%c0_16, %c0_17] : memref<16x128xf32, #tpu.memory_space<vmem>>, vector<16x128xf32>
    %cst_18 = arith.constant 0.000000e+00 : f32
    %48 = vector.broadcast %cst_18 : f32 to vector<16x128xf32>
    %c0_19 = arith.constant 0 : index
    %c0_20 = arith.constant 0 : index
    %c0_21 = arith.constant 0 : index
    %49 = vector.load %arg3[%c0_19, %c0_20, %c0_21] : memref<2x1x4xf32, #tpu.memory_space<vmem>>, vector<1x1x4xf32>
    %50 = vector.shape_cast %49 : vector<1x1x4xf32> to vector<1x4xf32>
    %c0_22 = arith.constant 0 : index
    %c0_23 = arith.constant 0 : index
    %c0_24 = arith.constant 0 : index
    %51 = vector.load %arg4[%c0_22, %c0_23, %c0_24] : memref<2x1x4xf32, #tpu.memory_space<vmem>>, vector<1x1x4xf32>
    %52 = vector.shape_cast %51 : vector<1x1x4xf32> to vector<1x4xf32>
    %cst_25 = arith.constant dense<0.000000e+00> : vector<1x128xf32>
    %53 = tpu.matmul %2, %47, %cst_25 {dimension_numbers = #tpu.dot_dimension_numbers<[1], [0], [0], [1], [0, 0, 1, 1], [], []>} : vector<1x16xf32>, vector<16x128xf32>, vector<1x128xf32> -> vector<1x128xf32>
    %54 = arith.mulf %47, %47 : vector<16x128xf32>
    %cst_26 = arith.constant dense<0.000000e+00> : vector<1x128xf32>
    %55 = tpu.matmul %2, %54, %cst_26 {dimension_numbers = #tpu.dot_dimension_numbers<[1], [0], [0], [1], [0, 0, 1, 1], [], []>} : vector<1x16xf32>, vector<16x128xf32>, vector<1x128xf32> -> vector<1x128xf32>
    %56 = tpu.concatenate %53, %55 in 0 : vector<1x128xf32>, vector<1x128xf32> -> vector<2x128xf32>
    %cst_27 = arith.constant dense<0.000000e+00> : vector<2x4xf32>
    %57 = tpu.matmul %56, %0, %cst_27 {dimension_numbers = #tpu.dot_dimension_numbers<[1], [0], [0], [1], [0, 0, 1, 1], [], []>} : vector<2x128xf32>, vector<128x4xf32>, vector<2x4xf32> -> vector<2x4xf32>
    %58 = vector.extract_strided_slice %57 {offsets = [0, 0], sizes = [1, 4], strides = [1, 1]} : vector<2x4xf32> to vector<1x4xf32>
    %cst_28 = arith.constant 0.001953125 : f32
    %59 = vector.broadcast %cst_28 : f32 to vector<1x4xf32>
    %60 = arith.mulf %58, %59 : vector<1x4xf32>
    %61 = vector.extract_strided_slice %57 {offsets = [1, 0], sizes = [1, 4], strides = [1, 1]} : vector<2x4xf32> to vector<1x4xf32>
    %cst_29 = arith.constant 0.001953125 : f32
    %62 = vector.broadcast %cst_29 : f32 to vector<1x4xf32>
    %63 = arith.mulf %61, %62 : vector<1x4xf32>
    %64 = arith.mulf %60, %60 : vector<1x4xf32>
    %65 = arith.subf %63, %64 : vector<1x4xf32>
    %cst_30 = arith.constant 9.99999974E-6 : f32
    %66 = vector.broadcast %cst_30 : f32 to vector<1x4xf32>
    %67 = arith.addf %65, %66 : vector<1x4xf32>
    %68 = math.rsqrt %67 : vector<1x4xf32>
    %69 = arith.mulf %50, %68 : vector<1x4xf32>
    %70 = arith.mulf %60, %69 : vector<1x4xf32>
    %71 = arith.subf %52, %70 : vector<1x4xf32>
    %72 = tpu.concatenate %69, %71 in 0 : vector<1x4xf32>, vector<1x4xf32> -> vector<2x4xf32>
    %cst_31 = arith.constant dense<0.000000e+00> : vector<2x128xf32>
    %73 = tpu.matmul %72, %1, %cst_31 {dimension_numbers = #tpu.dot_dimension_numbers<[1], [0], [0], [1], [0, 0, 1, 1], [], []>} : vector<2x4xf32>, vector<4x128xf32>, vector<2x128xf32> -> vector<2x128xf32>
    %74 = vector.extract_strided_slice %73 {offsets = [0, 0], sizes = [1, 128], strides = [1, 1]} : vector<2x128xf32> to vector<1x128xf32>
    %75 = vector.broadcast %74 : vector<1x128xf32> to vector<16x128xf32>
    %76 = arith.mulf %47, %75 : vector<16x128xf32>
    %77 = vector.extract_strided_slice %73 {offsets = [1, 0], sizes = [1, 128], strides = [1, 1]} : vector<2x128xf32> to vector<1x128xf32>
    %78 = vector.broadcast %77 : vector<1x128xf32> to vector<16x128xf32>
    %79 = arith.addf %76, %78 : vector<16x128xf32>
    %cst_32 = arith.constant 0.000000e+00 : f32
    %80 = vector.broadcast %cst_32 : f32 to vector<16x128xf32>
    %81 = arith.maximumf %79, %80 : vector<16x128xf32>
    %c0_33 = arith.constant 0 : index
    %c0_34 = arith.constant 0 : index
    %c0_35 = arith.constant 0 : index
    %c0_36 = arith.constant 0 : index
    %82 = vector.load %arg2[%c0_33, %c0_34, %c0_35, %c0_36] : memref<2x2x384x128xf32, #tpu.memory_space<vmem>>, vector<1x1x384x128xf32>
    %83 = vector.shape_cast %82 : vector<1x1x384x128xf32> to vector<384x128xf32>
    %c8 = arith.constant 8 : index
    %c0_37 = arith.constant 0 : index
    %84 = vector.load %arg13[%c8, %c0_37] : memref<32x128xf32, #tpu.memory_space<vmem>>, vector<16x128xf32>
    tpu.vector_store %arg13[%c8, %c0_37], %81 {strides = array<i32>} : memref<32x128xf32, #tpu.memory_space<vmem>>, vector<16x128xf32>,
    %c7_38 = arith.constant 7 : index
    %c0_39 = arith.constant 0 : index
    %85 = vector.load %arg13[%c7_38, %c0_39] : memref<32x128xf32, #tpu.memory_space<vmem>>, vector<16x128xf32>
    %86 = vector.broadcast %23 : vector<16x1xf32> to vector<16x128xf32>
    %87 = arith.mulf %85, %86 : vector<16x128xf32>
    %c9 = arith.constant 9 : index
    %c0_40 = arith.constant 0 : index
    %88 = vector.load %arg13[%c9, %c0_40] : memref<32x128xf32, #tpu.memory_space<vmem>>, vector<16x128xf32>
    %89 = vector.broadcast %43 : vector<16x1xf32> to vector<16x128xf32>
    %90 = arith.mulf %88, %89 : vector<16x128xf32>
    %91 = tpu.concatenate %87, %81, %90 in 1 : vector<16x128xf32>, vector<16x128xf32>, vector<16x128xf32> -> vector<16x384xf32>
    %cst_41 = arith.constant dense<0.000000e+00> : vector<16x128xf32>
    %92 = tpu.matmul %91, %83, %cst_41 {dimension_numbers = #tpu.dot_dimension_numbers<[1], [0], [0], [1], [0, 0, 1, 1], [], []>} : vector<16x384xf32>, vector<384x128xf32>, vector<16x128xf32> -> vector<16x128xf32>
    %c0_42 = arith.constant 0 : index
    %c0_43 = arith.constant 0 : index
    %c0_44 = arith.constant 0 : index
    %93 = vector.load %arg5[%c0_42, %c0_43, %c0_44] : memref<2x1x4xf32, #tpu.memory_space<vmem>>, vector<1x1x4xf32>
    %94 = vector.shape_cast %93 : vector<1x1x4xf32> to vector<1x4xf32>
    %c0_45 = arith.constant 0 : index
    %c0_46 = arith.constant 0 : index
    %c0_47 = arith.constant 0 : index
    %95 = vector.load %arg6[%c0_45, %c0_46, %c0_47] : memref<2x1x4xf32, #tpu.memory_space<vmem>>, vector<1x1x4xf32>
    %96 = vector.shape_cast %95 : vector<1x1x4xf32> to vector<1x4xf32>
    %cst_48 = arith.constant dense<0.000000e+00> : vector<1x128xf32>
    %97 = tpu.matmul %2, %92, %cst_48 {dimension_numbers = #tpu.dot_dimension_numbers<[1], [0], [0], [1], [0, 0, 1, 1], [], []>} : vector<1x16xf32>, vector<16x128xf32>, vector<1x128xf32> -> vector<1x128xf32>
    %98 = arith.mulf %92, %92 : vector<16x128xf32>
    %cst_49 = arith.constant dense<0.000000e+00> : vector<1x128xf32>
    %99 = tpu.matmul %2, %98, %cst_49 {dimension_numbers = #tpu.dot_dimension_numbers<[1], [0], [0], [1], [0, 0, 1, 1], [], []>} : vector<1x16xf32>, vector<16x128xf32>, vector<1x128xf32> -> vector<1x128xf32>
    %100 = tpu.concatenate %97, %99 in 0 : vector<1x128xf32>, vector<1x128xf32> -> vector<2x128xf32>
    %cst_50 = arith.constant dense<0.000000e+00> : vector<2x4xf32>
    %101 = tpu.matmul %100, %0, %cst_50 {dimension_numbers = #tpu.dot_dimension_numbers<[1], [0], [0], [1], [0, 0, 1, 1], [], []>} : vector<2x128xf32>, vector<128x4xf32>, vector<2x4xf32> -> vector<2x4xf32>
    %102 = vector.extract_strided_slice %101 {offsets = [0, 0], sizes = [1, 4], strides = [1, 1]} : vector<2x4xf32> to vector<1x4xf32>
    %cst_51 = arith.constant 0.001953125 : f32
    %103 = vector.broadcast %cst_51 : f32 to vector<1x4xf32>
    %104 = arith.mulf %102, %103 : vector<1x4xf32>
    %105 = vector.extract_strided_slice %101 {offsets = [1, 0], sizes = [1, 4], strides = [1, 1]} : vector<2x4xf32> to vector<1x4xf32>
    %cst_52 = arith.constant 0.001953125 : f32
    %106 = vector.broadcast %cst_52 : f32 to vector<1x4xf32>
    %107 = arith.mulf %105, %106 : vector<1x4xf32>
    %108 = arith.mulf %104, %104 : vector<1x4xf32>
    %109 = arith.subf %107, %108 : vector<1x4xf32>
    %cst_53 = arith.constant 9.99999974E-6 : f32
    %110 = vector.broadcast %cst_53 : f32 to vector<1x4xf32>
    %111 = arith.addf %109, %110 : vector<1x4xf32>
    %112 = math.rsqrt %111 : vector<1x4xf32>
    %113 = arith.mulf %94, %112 : vector<1x4xf32>
    %114 = arith.mulf %104, %113 : vector<1x4xf32>
    %115 = arith.subf %96, %114 : vector<1x4xf32>
    %116 = tpu.concatenate %113, %115 in 0 : vector<1x4xf32>, vector<1x4xf32> -> vector<2x4xf32>
    %cst_54 = arith.constant dense<0.000000e+00> : vector<2x128xf32>
    %117 = tpu.matmul %116, %1, %cst_54 {dimension_numbers = #tpu.dot_dimension_numbers<[1], [0], [0], [1], [0, 0, 1, 1], [], []>} : vector<2x4xf32>, vector<4x128xf32>, vector<2x128xf32> -> vector<2x128xf32>
    %118 = vector.extract_strided_slice %117 {offsets = [0, 0], sizes = [1, 128], strides = [1, 1]} : vector<2x128xf32> to vector<1x128xf32>
    %119 = vector.broadcast %118 : vector<1x128xf32> to vector<16x128xf32>
    %120 = arith.mulf %92, %119 : vector<16x128xf32>
    %121 = vector.extract_strided_slice %117 {offsets = [1, 0], sizes = [1, 128], strides = [1, 1]} : vector<2x128xf32> to vector<1x128xf32>
    %122 = vector.broadcast %121 : vector<1x128xf32> to vector<16x128xf32>
    %123 = arith.addf %120, %122 : vector<16x128xf32>
    %cst_55 = arith.constant 0.000000e+00 : f32
    %124 = vector.broadcast %cst_55 : f32 to vector<16x128xf32>
    %125 = arith.maximumf %123, %124 : vector<16x128xf32>
    %c0_56 = arith.constant 0 : index
    %c1 = arith.constant 1 : index
    %c0_57 = arith.constant 0 : index
    %c0_58 = arith.constant 0 : index
    %126 = vector.load %arg2[%c0_56, %c1, %c0_57, %c0_58] : memref<2x2x384x128xf32, #tpu.memory_space<vmem>>, vector<1x1x384x128xf32>
    %127 = vector.shape_cast %126 : vector<1x1x384x128xf32> to vector<384x128xf32>
    %c8_59 = arith.constant 8 : index
    %c0_60 = arith.constant 0 : index
    %128 = vector.load %arg13[%c8_59, %c0_60] : memref<32x128xf32, #tpu.memory_space<vmem>>, vector<16x128xf32>
    tpu.vector_store %arg13[%c8_59, %c0_60], %125 {strides = array<i32>} : memref<32x128xf32, #tpu.memory_space<vmem>>, vector<16x128xf32>,
    %c7_61 = arith.constant 7 : index
    %c0_62 = arith.constant 0 : index
    %129 = vector.load %arg13[%c7_61, %c0_62] : memref<32x128xf32, #tpu.memory_space<vmem>>, vector<16x128xf32>
    %130 = vector.broadcast %23 : vector<16x1xf32> to vector<16x128xf32>
    %131 = arith.mulf %129, %130 : vector<16x128xf32>
    %c9_63 = arith.constant 9 : index
    %c0_64 = arith.constant 0 : index
    %132 = vector.load %arg13[%c9_63, %c0_64] : memref<32x128xf32, #tpu.memory_space<vmem>>, vector<16x128xf32>
    %133 = vector.broadcast %43 : vector<16x1xf32> to vector<16x128xf32>
    %134 = arith.mulf %132, %133 : vector<16x128xf32>
    %135 = tpu.concatenate %131, %125, %134 in 1 : vector<16x128xf32>, vector<16x128xf32>, vector<16x128xf32> -> vector<16x384xf32>
    %cst_65 = arith.constant dense<0.000000e+00> : vector<16x128xf32>
    %136 = tpu.matmul %135, %127, %cst_65 {dimension_numbers = #tpu.dot_dimension_numbers<[1], [0], [0], [1], [0, 0, 1, 1], [], []>} : vector<16x384xf32>, vector<384x128xf32>, vector<16x128xf32> -> vector<16x128xf32>
    %137 = arith.addf %47, %136 : vector<16x128xf32>
    %c1_66 = arith.constant 1 : index
    %c0_67 = arith.constant 0 : index
    %c0_68 = arith.constant 0 : index
    %138 = vector.load %arg3[%c1_66, %c0_67, %c0_68] : memref<2x1x4xf32, #tpu.memory_space<vmem>>, vector<1x1x4xf32>
    %139 = vector.shape_cast %138 : vector<1x1x4xf32> to vector<1x4xf32>
    %c1_69 = arith.constant 1 : index
    %c0_70 = arith.constant 0 : index
    %c0_71 = arith.constant 0 : index
    %140 = vector.load %arg4[%c1_69, %c0_70, %c0_71] : memref<2x1x4xf32, #tpu.memory_space<vmem>>, vector<1x1x4xf32>
    %141 = vector.shape_cast %140 : vector<1x1x4xf32> to vector<1x4xf32>
    %cst_72 = arith.constant dense<0.000000e+00> : vector<1x128xf32>
    %142 = tpu.matmul %2, %137, %cst_72 {dimension_numbers = #tpu.dot_dimension_numbers<[1], [0], [0], [1], [0, 0, 1, 1], [], []>} : vector<1x16xf32>, vector<16x128xf32>, vector<1x128xf32> -> vector<1x128xf32>
    %143 = arith.mulf %137, %137 : vector<16x128xf32>
    %cst_73 = arith.constant dense<0.000000e+00> : vector<1x128xf32>
    %144 = tpu.matmul %2, %143, %cst_73 {dimension_numbers = #tpu.dot_dimension_numbers<[1], [0], [0], [1], [0, 0, 1, 1], [], []>} : vector<1x16xf32>, vector<16x128xf32>, vector<1x128xf32> -> vector<1x128xf32>
    %145 = tpu.concatenate %142, %144 in 0 : vector<1x128xf32>, vector<1x128xf32> -> vector<2x128xf32>
    %cst_74 = arith.constant dense<0.000000e+00> : vector<2x4xf32>
    %146 = tpu.matmul %145, %0, %cst_74 {dimension_numbers = #tpu.dot_dimension_numbers<[1], [0], [0], [1], [0, 0, 1, 1], [], []>} : vector<2x128xf32>, vector<128x4xf32>, vector<2x4xf32> -> vector<2x4xf32>
    %147 = vector.extract_strided_slice %146 {offsets = [0, 0], sizes = [1, 4], strides = [1, 1]} : vector<2x4xf32> to vector<1x4xf32>
    %cst_75 = arith.constant 0.001953125 : f32
    %148 = vector.broadcast %cst_75 : f32 to vector<1x4xf32>
    %149 = arith.mulf %147, %148 : vector<1x4xf32>
    %150 = vector.extract_strided_slice %146 {offsets = [1, 0], sizes = [1, 4], strides = [1, 1]} : vector<2x4xf32> to vector<1x4xf32>
    %cst_76 = arith.constant 0.001953125 : f32
    %151 = vector.broadcast %cst_76 : f32 to vector<1x4xf32>
    %152 = arith.mulf %150, %151 : vector<1x4xf32>
    %153 = arith.mulf %149, %149 : vector<1x4xf32>
    %154 = arith.subf %152, %153 : vector<1x4xf32>
    %cst_77 = arith.constant 9.99999974E-6 : f32
    %155 = vector.broadcast %cst_77 : f32 to vector<1x4xf32>
    %156 = arith.addf %154, %155 : vector<1x4xf32>
    %157 = math.rsqrt %156 : vector<1x4xf32>
    %158 = arith.mulf %139, %157 : vector<1x4xf32>
    %159 = arith.mulf %149, %158 : vector<1x4xf32>
    %160 = arith.subf %141, %159 : vector<1x4xf32>
    %161 = tpu.concatenate %158, %160 in 0 : vector<1x4xf32>, vector<1x4xf32> -> vector<2x4xf32>
    %cst_78 = arith.constant dense<0.000000e+00> : vector<2x128xf32>
    %162 = tpu.matmul %161, %1, %cst_78 {dimension_numbers = #tpu.dot_dimension_numbers<[1], [0], [0], [1], [0, 0, 1, 1], [], []>} : vector<2x4xf32>, vector<4x128xf32>, vector<2x128xf32> -> vector<2x128xf32>
    %163 = vector.extract_strided_slice %162 {offsets = [0, 0], sizes = [1, 128], strides = [1, 1]} : vector<2x128xf32> to vector<1x128xf32>
    %164 = vector.broadcast %163 : vector<1x128xf32> to vector<16x128xf32>
    %165 = arith.mulf %137, %164 : vector<16x128xf32>
    %166 = vector.extract_strided_slice %162 {offsets = [1, 0], sizes = [1, 128], strides = [1, 1]} : vector<2x128xf32> to vector<1x128xf32>
    %167 = vector.broadcast %166 : vector<1x128xf32> to vector<16x128xf32>
    %168 = arith.addf %165, %167 : vector<16x128xf32>
    %cst_79 = arith.constant 0.000000e+00 : f32
    %169 = vector.broadcast %cst_79 : f32 to vector<16x128xf32>
    %170 = arith.maximumf %168, %169 : vector<16x128xf32>
    %c1_80 = arith.constant 1 : index
    %c0_81 = arith.constant 0 : index
    %c0_82 = arith.constant 0 : index
    %c0_83 = arith.constant 0 : index
    %171 = vector.load %arg2[%c1_80, %c0_81, %c0_82, %c0_83] : memref<2x2x384x128xf32, #tpu.memory_space<vmem>>, vector<1x1x384x128xf32>
    %172 = vector.shape_cast %171 : vector<1x1x384x128xf32> to vector<384x128xf32>
    %c8_84 = arith.constant 8 : index
    %c0_85 = arith.constant 0 : index
    %173 = vector.load %arg13[%c8_84, %c0_85] : memref<32x128xf32, #tpu.memory_space<vmem>>, vector<16x128xf32>
    tpu.vector_store %arg13[%c8_84, %c0_85], %170 {strides = array<i32>} : memref<32x128xf32, #tpu.memory_space<vmem>>, vector<16x128xf32>,
    %c7_86 = arith.constant 7 : index
    %c0_87 = arith.constant 0 : index
    %174 = vector.load %arg13[%c7_86, %c0_87] : memref<32x128xf32, #tpu.memory_space<vmem>>, vector<16x128xf32>
    %175 = vector.broadcast %23 : vector<16x1xf32> to vector<16x128xf32>
    %176 = arith.mulf %174, %175 : vector<16x128xf32>
    %c9_88 = arith.constant 9 : index
    %c0_89 = arith.constant 0 : index
    %177 = vector.load %arg13[%c9_88, %c0_89] : memref<32x128xf32, #tpu.memory_space<vmem>>, vector<16x128xf32>
    %178 = vector.broadcast %43 : vector<16x1xf32> to vector<16x128xf32>
    %179 = arith.mulf %177, %178 : vector<16x128xf32>
    %180 = tpu.concatenate %176, %170, %179 in 1 : vector<16x128xf32>, vector<16x128xf32>, vector<16x128xf32> -> vector<16x384xf32>
    %cst_90 = arith.constant dense<0.000000e+00> : vector<16x128xf32>
    %181 = tpu.matmul %180, %172, %cst_90 {dimension_numbers = #tpu.dot_dimension_numbers<[1], [0], [0], [1], [0, 0, 1, 1], [], []>} : vector<16x384xf32>, vector<384x128xf32>, vector<16x128xf32> -> vector<16x128xf32>
    %c1_91 = arith.constant 1 : index
    %c0_92 = arith.constant 0 : index
    %c0_93 = arith.constant 0 : index
    %182 = vector.load %arg5[%c1_91, %c0_92, %c0_93] : memref<2x1x4xf32, #tpu.memory_space<vmem>>, vector<1x1x4xf32>
    %183 = vector.shape_cast %182 : vector<1x1x4xf32> to vector<1x4xf32>
    %c1_94 = arith.constant 1 : index
    %c0_95 = arith.constant 0 : index
    %c0_96 = arith.constant 0 : index
    %184 = vector.load %arg6[%c1_94, %c0_95, %c0_96] : memref<2x1x4xf32, #tpu.memory_space<vmem>>, vector<1x1x4xf32>
    %185 = vector.shape_cast %184 : vector<1x1x4xf32> to vector<1x4xf32>
    %cst_97 = arith.constant dense<0.000000e+00> : vector<1x128xf32>
    %186 = tpu.matmul %2, %181, %cst_97 {dimension_numbers = #tpu.dot_dimension_numbers<[1], [0], [0], [1], [0, 0, 1, 1], [], []>} : vector<1x16xf32>, vector<16x128xf32>, vector<1x128xf32> -> vector<1x128xf32>
    %187 = arith.mulf %181, %181 : vector<16x128xf32>
    %cst_98 = arith.constant dense<0.000000e+00> : vector<1x128xf32>
    %188 = tpu.matmul %2, %187, %cst_98 {dimension_numbers = #tpu.dot_dimension_numbers<[1], [0], [0], [1], [0, 0, 1, 1], [], []>} : vector<1x16xf32>, vector<16x128xf32>, vector<1x128xf32> -> vector<1x128xf32>
    %189 = tpu.concatenate %186, %188 in 0 : vector<1x128xf32>, vector<1x128xf32> -> vector<2x128xf32>
    %cst_99 = arith.constant dense<0.000000e+00> : vector<2x4xf32>
    %190 = tpu.matmul %189, %0, %cst_99 {dimension_numbers = #tpu.dot_dimension_numbers<[1], [0], [0], [1], [0, 0, 1, 1], [], []>} : vector<2x128xf32>, vector<128x4xf32>, vector<2x4xf32> -> vector<2x4xf32>
    %191 = vector.extract_strided_slice %190 {offsets = [0, 0], sizes = [1, 4], strides = [1, 1]} : vector<2x4xf32> to vector<1x4xf32>
    %cst_100 = arith.constant 0.001953125 : f32
    %192 = vector.broadcast %cst_100 : f32 to vector<1x4xf32>
    %193 = arith.mulf %191, %192 : vector<1x4xf32>
    %194 = vector.extract_strided_slice %190 {offsets = [1, 0], sizes = [1, 4], strides = [1, 1]} : vector<2x4xf32> to vector<1x4xf32>
    %cst_101 = arith.constant 0.001953125 : f32
    %195 = vector.broadcast %cst_101 : f32 to vector<1x4xf32>
    %196 = arith.mulf %194, %195 : vector<1x4xf32>
    %197 = arith.mulf %193, %193 : vector<1x4xf32>
    %198 = arith.subf %196, %197 : vector<1x4xf32>
    %cst_102 = arith.constant 9.99999974E-6 : f32
    %199 = vector.broadcast %cst_102 : f32 to vector<1x4xf32>
    %200 = arith.addf %198, %199 : vector<1x4xf32>
    %201 = math.rsqrt %200 : vector<1x4xf32>
    %202 = arith.mulf %183, %201 : vector<1x4xf32>
    %203 = arith.mulf %193, %202 : vector<1x4xf32>
    %204 = arith.subf %185, %203 : vector<1x4xf32>
    %205 = tpu.concatenate %202, %204 in 0 : vector<1x4xf32>, vector<1x4xf32> -> vector<2x4xf32>
    %cst_103 = arith.constant dense<0.000000e+00> : vector<2x128xf32>
    %206 = tpu.matmul %205, %1, %cst_103 {dimension_numbers = #tpu.dot_dimension_numbers<[1], [0], [0], [1], [0, 0, 1, 1], [], []>} : vector<2x4xf32>, vector<4x128xf32>, vector<2x128xf32> -> vector<2x128xf32>
    %207 = vector.extract_strided_slice %206 {offsets = [0, 0], sizes = [1, 128], strides = [1, 1]} : vector<2x128xf32> to vector<1x128xf32>
    %208 = vector.broadcast %207 : vector<1x128xf32> to vector<16x128xf32>
    %209 = arith.mulf %181, %208 : vector<16x128xf32>
    %210 = vector.extract_strided_slice %206 {offsets = [1, 0], sizes = [1, 128], strides = [1, 1]} : vector<2x128xf32> to vector<1x128xf32>
    %211 = vector.broadcast %210 : vector<1x128xf32> to vector<16x128xf32>
    %212 = arith.addf %209, %211 : vector<16x128xf32>
    %cst_104 = arith.constant 0.000000e+00 : f32
    %213 = vector.broadcast %cst_104 : f32 to vector<16x128xf32>
    %214 = arith.maximumf %212, %213 : vector<16x128xf32>
    %c1_105 = arith.constant 1 : index
    %c1_106 = arith.constant 1 : index
    %c0_107 = arith.constant 0 : index
    %c0_108 = arith.constant 0 : index
    %215 = vector.load %arg2[%c1_105, %c1_106, %c0_107, %c0_108] : memref<2x2x384x128xf32, #tpu.memory_space<vmem>>, vector<1x1x384x128xf32>
    %216 = vector.shape_cast %215 : vector<1x1x384x128xf32> to vector<384x128xf32>
    %c8_109 = arith.constant 8 : index
    %c0_110 = arith.constant 0 : index
    %217 = vector.load %arg13[%c8_109, %c0_110] : memref<32x128xf32, #tpu.memory_space<vmem>>, vector<16x128xf32>
    tpu.vector_store %arg13[%c8_109, %c0_110], %214 {strides = array<i32>} : memref<32x128xf32, #tpu.memory_space<vmem>>, vector<16x128xf32>,
    %c7_111 = arith.constant 7 : index
    %c0_112 = arith.constant 0 : index
    %218 = vector.load %arg13[%c7_111, %c0_112] : memref<32x128xf32, #tpu.memory_space<vmem>>, vector<16x128xf32>
    %219 = vector.broadcast %23 : vector<16x1xf32> to vector<16x128xf32>
    %220 = arith.mulf %218, %219 : vector<16x128xf32>
    %c9_113 = arith.constant 9 : index
    %c0_114 = arith.constant 0 : index
    %221 = vector.load %arg13[%c9_113, %c0_114] : memref<32x128xf32, #tpu.memory_space<vmem>>, vector<16x128xf32>
    %222 = vector.broadcast %43 : vector<16x1xf32> to vector<16x128xf32>
    %223 = arith.mulf %221, %222 : vector<16x128xf32>
    %224 = tpu.concatenate %220, %214, %223 in 1 : vector<16x128xf32>, vector<16x128xf32>, vector<16x128xf32> -> vector<16x384xf32>
    %cst_115 = arith.constant dense<0.000000e+00> : vector<16x128xf32>
    %225 = tpu.matmul %224, %216, %cst_115 {dimension_numbers = #tpu.dot_dimension_numbers<[1], [0], [0], [1], [0, 0, 1, 1], [], []>} : vector<16x384xf32>, vector<384x128xf32>, vector<16x128xf32> -> vector<16x128xf32>
    %226 = arith.addf %137, %225 : vector<16x128xf32>
    %c0_116 = arith.constant 0 : index
    %c0_117 = arith.constant 0 : index
    %c0_118 = arith.constant 0 : index
    %227 = vector.load %arg7[%c0_116, %c0_117, %c0_118] : memref<4x1x4xf32, #tpu.memory_space<vmem>>, vector<1x1x4xf32>
    %228 = vector.shape_cast %227 : vector<1x1x4xf32> to vector<1x4xf32>
    %c0_119 = arith.constant 0 : index
    %c0_120 = arith.constant 0 : index
    %c0_121 = arith.constant 0 : index
    %229 = vector.load %arg8[%c0_119, %c0_120, %c0_121] : memref<4x1x4xf32, #tpu.memory_space<vmem>>, vector<1x1x4xf32>
    %230 = vector.shape_cast %229 : vector<1x1x4xf32> to vector<1x4xf32>
    %cst_122 = arith.constant dense<0.000000e+00> : vector<1x128xf32>
    %231 = tpu.matmul %2, %226, %cst_122 {dimension_numbers = #tpu.dot_dimension_numbers<[1], [0], [0], [1], [0, 0, 1, 1], [], []>} : vector<1x16xf32>, vector<16x128xf32>, vector<1x128xf32> -> vector<1x128xf32>
    %232 = arith.mulf %226, %226 : vector<16x128xf32>
    %cst_123 = arith.constant dense<0.000000e+00> : vector<1x128xf32>
    %233 = tpu.matmul %2, %232, %cst_123 {dimension_numbers = #tpu.dot_dimension_numbers<[1], [0], [0], [1], [0, 0, 1, 1], [], []>} : vector<1x16xf32>, vector<16x128xf32>, vector<1x128xf32> -> vector<1x128xf32>
    %234 = tpu.concatenate %231, %233 in 0 : vector<1x128xf32>, vector<1x128xf32> -> vector<2x128xf32>
    %cst_124 = arith.constant dense<0.000000e+00> : vector<2x4xf32>
    %235 = tpu.matmul %234, %0, %cst_124 {dimension_numbers = #tpu.dot_dimension_numbers<[1], [0], [0], [1], [0, 0, 1, 1], [], []>} : vector<2x128xf32>, vector<128x4xf32>, vector<2x4xf32> -> vector<2x4xf32>
    %236 = vector.extract_strided_slice %235 {offsets = [0, 0], sizes = [1, 4], strides = [1, 1]} : vector<2x4xf32> to vector<1x4xf32>
    %cst_125 = arith.constant 0.001953125 : f32
    %237 = vector.broadcast %cst_125 : f32 to vector<1x4xf32>
    %238 = arith.mulf %236, %237 : vector<1x4xf32>
    %239 = vector.extract_strided_slice %235 {offsets = [1, 0], sizes = [1, 4], strides = [1, 1]} : vector<2x4xf32> to vector<1x4xf32>
    %cst_126 = arith.constant 0.001953125 : f32
    %240 = vector.broadcast %cst_126 : f32 to vector<1x4xf32>
    %241 = arith.mulf %239, %240 : vector<1x4xf32>
    %242 = arith.mulf %238, %238 : vector<1x4xf32>
    %243 = arith.subf %241, %242 : vector<1x4xf32>
    %cst_127 = arith.constant 9.99999974E-6 : f32
    %244 = vector.broadcast %cst_127 : f32 to vector<1x4xf32>
    %245 = arith.addf %243, %244 : vector<1x4xf32>
    %246 = math.rsqrt %245 : vector<1x4xf32>
    %247 = arith.mulf %228, %246 : vector<1x4xf32>
    %248 = arith.mulf %238, %247 : vector<1x4xf32>
    %249 = arith.subf %230, %248 : vector<1x4xf32>
    %250 = tpu.concatenate %247, %249 in 0 : vector<1x4xf32>, vector<1x4xf32> -> vector<2x4xf32>
    %cst_128 = arith.constant dense<0.000000e+00> : vector<2x128xf32>
    %251 = tpu.matmul %250, %1, %cst_128 {dimension_numbers = #tpu.dot_dimension_numbers<[1], [0], [0], [1], [0, 0, 1, 1], [], []>} : vector<2x4xf32>, vector<4x128xf32>, vector<2x128xf32> -> vector<2x128xf32>
    %252 = vector.extract_strided_slice %251 {offsets = [0, 0], sizes = [1, 128], strides = [1, 1]} : vector<2x128xf32> to vector<1x128xf32>
    %253 = vector.broadcast %252 : vector<1x128xf32> to vector<16x128xf32>
    %254 = arith.mulf %226, %253 : vector<16x128xf32>
    %255 = vector.extract_strided_slice %251 {offsets = [1, 0], sizes = [1, 128], strides = [1, 1]} : vector<2x128xf32> to vector<1x128xf32>
    %256 = vector.broadcast %255 : vector<1x128xf32> to vector<16x128xf32>
    %257 = arith.addf %254, %256 : vector<16x128xf32>
    %cst_129 = arith.constant 0.000000e+00 : f32
    %258 = vector.broadcast %cst_129 : f32 to vector<16x128xf32>
    %259 = arith.maximumf %257, %258 : vector<16x128xf32>
    %c0_130 = arith.constant 0 : index
    %c0_131 = arith.constant 0 : index
    %c0_132 = arith.constant 0 : index
    %260 = vector.load %arg9[%c0_130, %c0_131, %c0_132] : memref<4x128x128xf32, #tpu.memory_space<vmem>>, vector<1x128x128xf32>
    %261 = vector.shape_cast %260 : vector<1x128x128xf32> to vector<128x128xf32>
    %cst_133 = arith.constant dense<0.000000e+00> : vector<16x128xf32>
    %262 = tpu.matmul %259, %261, %cst_133 {dimension_numbers = #tpu.dot_dimension_numbers<[1], [0], [0], [1], [0, 0, 1, 1], [], []>} : vector<16x128xf32>, vector<128x128xf32>, vector<16x128xf32> -> vector<16x128xf32>
    %263 = arith.addf %48, %262 : vector<16x128xf32>
    %c0_134 = arith.constant 0 : index
    %c0_135 = arith.constant 0 : index
    %c0_136 = arith.constant 0 : index
    %264 = vector.load %arg3[%c0_134, %c0_135, %c0_136] : memref<2x1x4xf32, #tpu.memory_space<vmem>>, vector<1x1x4xf32>
    %265 = vector.shape_cast %264 : vector<1x1x4xf32> to vector<1x4xf32>
    %c0_137 = arith.constant 0 : index
    %c0_138 = arith.constant 0 : index
    %c0_139 = arith.constant 0 : index
    %266 = vector.load %arg4[%c0_137, %c0_138, %c0_139] : memref<2x1x4xf32, #tpu.memory_space<vmem>>, vector<1x1x4xf32>
    %267 = vector.shape_cast %266 : vector<1x1x4xf32> to vector<1x4xf32>
    %cst_140 = arith.constant dense<0.000000e+00> : vector<1x128xf32>
    %268 = tpu.matmul %2, %226, %cst_140 {dimension_numbers = #tpu.dot_dimension_numbers<[1], [0], [0], [1], [0, 0, 1, 1], [], []>} : vector<1x16xf32>, vector<16x128xf32>, vector<1x128xf32> -> vector<1x128xf32>
    %269 = arith.mulf %226, %226 : vector<16x128xf32>
    %cst_141 = arith.constant dense<0.000000e+00> : vector<1x128xf32>
    %270 = tpu.matmul %2, %269, %cst_141 {dimension_numbers = #tpu.dot_dimension_numbers<[1], [0], [0], [1], [0, 0, 1, 1], [], []>} : vector<1x16xf32>, vector<16x128xf32>, vector<1x128xf32> -> vector<1x128xf32>
    %271 = tpu.concatenate %268, %270 in 0 : vector<1x128xf32>, vector<1x128xf32> -> vector<2x128xf32>
    %cst_142 = arith.constant dense<0.000000e+00> : vector<2x4xf32>
    %272 = tpu.matmul %271, %0, %cst_142 {dimension_numbers = #tpu.dot_dimension_numbers<[1], [0], [0], [1], [0, 0, 1, 1], [], []>} : vector<2x128xf32>, vector<128x4xf32>, vector<2x4xf32> -> vector<2x4xf32>
    %273 = vector.extract_strided_slice %272 {offsets = [0, 0], sizes = [1, 4], strides = [1, 1]} : vector<2x4xf32> to vector<1x4xf32>
    %cst_143 = arith.constant 0.001953125 : f32
    %274 = vector.broadcast %cst_143 : f32 to vector<1x4xf32>
    %275 = arith.mulf %273, %274 : vector<1x4xf32>
    %276 = vector.extract_strided_slice %272 {offsets = [1, 0], sizes = [1, 4], strides = [1, 1]} : vector<2x4xf32> to vector<1x4xf32>
    %cst_144 = arith.constant 0.001953125 : f32
    %277 = vector.broadcast %cst_144 : f32 to vector<1x4xf32>
    %278 = arith.mulf %276, %277 : vector<1x4xf32>
    %279 = arith.mulf %275, %275 : vector<1x4xf32>
    %280 = arith.subf %278, %279 : vector<1x4xf32>
    %cst_145 = arith.constant 9.99999974E-6 : f32
    %281 = vector.broadcast %cst_145 : f32 to vector<1x4xf32>
    %282 = arith.addf %280, %281 : vector<1x4xf32>
    %283 = math.rsqrt %282 : vector<1x4xf32>
    %284 = arith.mulf %265, %283 : vector<1x4xf32>
    %285 = arith.mulf %275, %284 : vector<1x4xf32>
    %286 = arith.subf %267, %285 : vector<1x4xf32>
    %287 = tpu.concatenate %284, %286 in 0 : vector<1x4xf32>, vector<1x4xf32> -> vector<2x4xf32>
    %cst_146 = arith.constant dense<0.000000e+00> : vector<2x128xf32>
    %288 = tpu.matmul %287, %1, %cst_146 {dimension_numbers = #tpu.dot_dimension_numbers<[1], [0], [0], [1], [0, 0, 1, 1], [], []>} : vector<2x4xf32>, vector<4x128xf32>, vector<2x128xf32> -> vector<2x128xf32>
    %289 = vector.extract_strided_slice %288 {offsets = [0, 0], sizes = [1, 128], strides = [1, 1]} : vector<2x128xf32> to vector<1x128xf32>
    %290 = vector.broadcast %289 : vector<1x128xf32> to vector<16x128xf32>
    %291 = arith.mulf %226, %290 : vector<16x128xf32>
    %292 = vector.extract_strided_slice %288 {offsets = [1, 0], sizes = [1, 128], strides = [1, 1]} : vector<2x128xf32> to vector<1x128xf32>
    %293 = vector.broadcast %292 : vector<1x128xf32> to vector<16x128xf32>
    %294 = arith.addf %291, %293 : vector<16x128xf32>
    %cst_147 = arith.constant 0.000000e+00 : f32
    %295 = vector.broadcast %cst_147 : f32 to vector<16x128xf32>
    %296 = arith.maximumf %294, %295 : vector<16x128xf32>
    %c0_148 = arith.constant 0 : index
    %c0_149 = arith.constant 0 : index
    %c0_150 = arith.constant 0 : index
    %c0_151 = arith.constant 0 : index
    %297 = vector.load %arg2[%c0_148, %c0_149, %c0_150, %c0_151] : memref<2x2x384x128xf32, #tpu.memory_space<vmem>>, vector<1x1x384x128xf32>
    %298 = vector.shape_cast %297 : vector<1x1x384x128xf32> to vector<384x128xf32>
    %c8_152 = arith.constant 8 : index
    %c0_153 = arith.constant 0 : index
    %299 = vector.load %arg13[%c8_152, %c0_153] : memref<32x128xf32, #tpu.memory_space<vmem>>, vector<16x128xf32>
    tpu.vector_store %arg13[%c8_152, %c0_153], %296 {strides = array<i32>} : memref<32x128xf32, #tpu.memory_space<vmem>>, vector<16x128xf32>,
    %c7_154 = arith.constant 7 : index
    %c0_155 = arith.constant 0 : index
    %300 = vector.load %arg13[%c7_154, %c0_155] : memref<32x128xf32, #tpu.memory_space<vmem>>, vector<16x128xf32>
    %301 = vector.broadcast %23 : vector<16x1xf32> to vector<16x128xf32>
    %302 = arith.mulf %300, %301 : vector<16x128xf32>
    %c9_156 = arith.constant 9 : index
    %c0_157 = arith.constant 0 : index
    %303 = vector.load %arg13[%c9_156, %c0_157] : memref<32x128xf32, #tpu.memory_space<vmem>>, vector<16x128xf32>
    %304 = vector.broadcast %43 : vector<16x1xf32> to vector<16x128xf32>
    %305 = arith.mulf %303, %304 : vector<16x128xf32>
    %306 = tpu.concatenate %302, %296, %305 in 1 : vector<16x128xf32>, vector<16x128xf32>, vector<16x128xf32> -> vector<16x384xf32>
    %cst_158 = arith.constant dense<0.000000e+00> : vector<16x128xf32>
    %307 = tpu.matmul %306, %298, %cst_158 {dimension_numbers = #tpu.dot_dimension_numbers<[1], [0], [0], [1], [0, 0, 1, 1], [], []>} : vector<16x384xf32>, vector<384x128xf32>, vector<16x128xf32> -> vector<16x128xf32>
    %c0_159 = arith.constant 0 : index
    %c0_160 = arith.constant 0 : index
    %c0_161 = arith.constant 0 : index
    %308 = vector.load %arg5[%c0_159, %c0_160, %c0_161] : memref<2x1x4xf32, #tpu.memory_space<vmem>>, vector<1x1x4xf32>
    %309 = vector.shape_cast %308 : vector<1x1x4xf32> to vector<1x4xf32>
    %c0_162 = arith.constant 0 : index
    %c0_163 = arith.constant 0 : index
    %c0_164 = arith.constant 0 : index
    %310 = vector.load %arg6[%c0_162, %c0_163, %c0_164] : memref<2x1x4xf32, #tpu.memory_space<vmem>>, vector<1x1x4xf32>
    %311 = vector.shape_cast %310 : vector<1x1x4xf32> to vector<1x4xf32>
    %cst_165 = arith.constant dense<0.000000e+00> : vector<1x128xf32>
    %312 = tpu.matmul %2, %307, %cst_165 {dimension_numbers = #tpu.dot_dimension_numbers<[1], [0], [0], [1], [0, 0, 1, 1], [], []>} : vector<1x16xf32>, vector<16x128xf32>, vector<1x128xf32> -> vector<1x128xf32>
    %313 = arith.mulf %307, %307 : vector<16x128xf32>
    %cst_166 = arith.constant dense<0.000000e+00> : vector<1x128xf32>
    %314 = tpu.matmul %2, %313, %cst_166 {dimension_numbers = #tpu.dot_dimension_numbers<[1], [0], [0], [1], [0, 0, 1, 1], [], []>} : vector<1x16xf32>, vector<16x128xf32>, vector<1x128xf32> -> vector<1x128xf32>
    %315 = tpu.concatenate %312, %314 in 0 : vector<1x128xf32>, vector<1x128xf32> -> vector<2x128xf32>
    %cst_167 = arith.constant dense<0.000000e+00> : vector<2x4xf32>
    %316 = tpu.matmul %315, %0, %cst_167 {dimension_numbers = #tpu.dot_dimension_numbers<[1], [0], [0], [1], [0, 0, 1, 1], [], []>} : vector<2x128xf32>, vector<128x4xf32>, vector<2x4xf32> -> vector<2x4xf32>
    %317 = vector.extract_strided_slice %316 {offsets = [0, 0], sizes = [1, 4], strides = [1, 1]} : vector<2x4xf32> to vector<1x4xf32>
    %cst_168 = arith.constant 0.001953125 : f32
    %318 = vector.broadcast %cst_168 : f32 to vector<1x4xf32>
    %319 = arith.mulf %317, %318 : vector<1x4xf32>
    %320 = vector.extract_strided_slice %316 {offsets = [1, 0], sizes = [1, 4], strides = [1, 1]} : vector<2x4xf32> to vector<1x4xf32>
    %cst_169 = arith.constant 0.001953125 : f32
    %321 = vector.broadcast %cst_169 : f32 to vector<1x4xf32>
    %322 = arith.mulf %320, %321 : vector<1x4xf32>
    %323 = arith.mulf %319, %319 : vector<1x4xf32>
    %324 = arith.subf %322, %323 : vector<1x4xf32>
    %cst_170 = arith.constant 9.99999974E-6 : f32
    %325 = vector.broadcast %cst_170 : f32 to vector<1x4xf32>
    %326 = arith.addf %324, %325 : vector<1x4xf32>
    %327 = math.rsqrt %326 : vector<1x4xf32>
    %328 = arith.mulf %309, %327 : vector<1x4xf32>
    %329 = arith.mulf %319, %328 : vector<1x4xf32>
    %330 = arith.subf %311, %329 : vector<1x4xf32>
    %331 = tpu.concatenate %328, %330 in 0 : vector<1x4xf32>, vector<1x4xf32> -> vector<2x4xf32>
    %cst_171 = arith.constant dense<0.000000e+00> : vector<2x128xf32>
    %332 = tpu.matmul %331, %1, %cst_171 {dimension_numbers = #tpu.dot_dimension_numbers<[1], [0], [0], [1], [0, 0, 1, 1], [], []>} : vector<2x4xf32>, vector<4x128xf32>, vector<2x128xf32> -> vector<2x128xf32>
    %333 = vector.extract_strided_slice %332 {offsets = [0, 0], sizes = [1, 128], strides = [1, 1]} : vector<2x128xf32> to vector<1x128xf32>
    %334 = vector.broadcast %333 : vector<1x128xf32> to vector<16x128xf32>
    %335 = arith.mulf %307, %334 : vector<16x128xf32>
    %336 = vector.extract_strided_slice %332 {offsets = [1, 0], sizes = [1, 128], strides = [1, 1]} : vector<2x128xf32> to vector<1x128xf32>
    %337 = vector.broadcast %336 : vector<1x128xf32> to vector<16x128xf32>
    %338 = arith.addf %335, %337 : vector<16x128xf32>
    %cst_172 = arith.constant 0.000000e+00 : f32
    %339 = vector.broadcast %cst_172 : f32 to vector<16x128xf32>
    %340 = arith.maximumf %338, %339 : vector<16x128xf32>
    %c0_173 = arith.constant 0 : index
    %c1_174 = arith.constant 1 : index
    %c0_175 = arith.constant 0 : index
    %c0_176 = arith.constant 0 : index
    %341 = vector.load %arg2[%c0_173, %c1_174, %c0_175, %c0_176] : memref<2x2x384x128xf32, #tpu.memory_space<vmem>>, vector<1x1x384x128xf32>
    %342 = vector.shape_cast %341 : vector<1x1x384x128xf32> to vector<384x128xf32>
    %c8_177 = arith.constant 8 : index
    %c0_178 = arith.constant 0 : index
    %343 = vector.load %arg13[%c8_177, %c0_178] : memref<32x128xf32, #tpu.memory_space<vmem>>, vector<16x128xf32>
    tpu.vector_store %arg13[%c8_177, %c0_178], %340 {strides = array<i32>} : memref<32x128xf32, #tpu.memory_space<vmem>>, vector<16x128xf32>,
    %c7_179 = arith.constant 7 : index
    %c0_180 = arith.constant 0 : index
    %344 = vector.load %arg13[%c7_179, %c0_180] : memref<32x128xf32, #tpu.memory_space<vmem>>, vector<16x128xf32>
    %345 = vector.broadcast %23 : vector<16x1xf32> to vector<16x128xf32>
    %346 = arith.mulf %344, %345 : vector<16x128xf32>
    %c9_181 = arith.constant 9 : index
    %c0_182 = arith.constant 0 : index
    %347 = vector.load %arg13[%c9_181, %c0_182] : memref<32x128xf32, #tpu.memory_space<vmem>>, vector<16x128xf32>
    %348 = vector.broadcast %43 : vector<16x1xf32> to vector<16x128xf32>
    %349 = arith.mulf %347, %348 : vector<16x128xf32>
    %350 = tpu.concatenate %346, %340, %349 in 1 : vector<16x128xf32>, vector<16x128xf32>, vector<16x128xf32> -> vector<16x384xf32>
    %cst_183 = arith.constant dense<0.000000e+00> : vector<16x128xf32>
    %351 = tpu.matmul %350, %342, %cst_183 {dimension_numbers = #tpu.dot_dimension_numbers<[1], [0], [0], [1], [0, 0, 1, 1], [], []>} : vector<16x384xf32>, vector<384x128xf32>, vector<16x128xf32> -> vector<16x128xf32>
    %352 = arith.addf %226, %351 : vector<16x128xf32>
    %c1_184 = arith.constant 1 : index
    %c0_185 = arith.constant 0 : index
    %c0_186 = arith.constant 0 : index
    %353 = vector.load %arg3[%c1_184, %c0_185, %c0_186] : memref<2x1x4xf32, #tpu.memory_space<vmem>>, vector<1x1x4xf32>
    %354 = vector.shape_cast %353 : vector<1x1x4xf32> to vector<1x4xf32>
    %c1_187 = arith.constant 1 : index
    %c0_188 = arith.constant 0 : index
    %c0_189 = arith.constant 0 : index
    %355 = vector.load %arg4[%c1_187, %c0_188, %c0_189] : memref<2x1x4xf32, #tpu.memory_space<vmem>>, vector<1x1x4xf32>
    %356 = vector.shape_cast %355 : vector<1x1x4xf32> to vector<1x4xf32>
    %cst_190 = arith.constant dense<0.000000e+00> : vector<1x128xf32>
    %357 = tpu.matmul %2, %352, %cst_190 {dimension_numbers = #tpu.dot_dimension_numbers<[1], [0], [0], [1], [0, 0, 1, 1], [], []>} : vector<1x16xf32>, vector<16x128xf32>, vector<1x128xf32> -> vector<1x128xf32>
    %358 = arith.mulf %352, %352 : vector<16x128xf32>
    %cst_191 = arith.constant dense<0.000000e+00> : vector<1x128xf32>
    %359 = tpu.matmul %2, %358, %cst_191 {dimension_numbers = #tpu.dot_dimension_numbers<[1], [0], [0], [1], [0, 0, 1, 1], [], []>} : vector<1x16xf32>, vector<16x128xf32>, vector<1x128xf32> -> vector<1x128xf32>
    %360 = tpu.concatenate %357, %359 in 0 : vector<1x128xf32>, vector<1x128xf32> -> vector<2x128xf32>
    %cst_192 = arith.constant dense<0.000000e+00> : vector<2x4xf32>
    %361 = tpu.matmul %360, %0, %cst_192 {dimension_numbers = #tpu.dot_dimension_numbers<[1], [0], [0], [1], [0, 0, 1, 1], [], []>} : vector<2x128xf32>, vector<128x4xf32>, vector<2x4xf32> -> vector<2x4xf32>
    %362 = vector.extract_strided_slice %361 {offsets = [0, 0], sizes = [1, 4], strides = [1, 1]} : vector<2x4xf32> to vector<1x4xf32>
    %cst_193 = arith.constant 0.001953125 : f32
    %363 = vector.broadcast %cst_193 : f32 to vector<1x4xf32>
    %364 = arith.mulf %362, %363 : vector<1x4xf32>
    %365 = vector.extract_strided_slice %361 {offsets = [1, 0], sizes = [1, 4], strides = [1, 1]} : vector<2x4xf32> to vector<1x4xf32>
    %cst_194 = arith.constant 0.001953125 : f32
    %366 = vector.broadcast %cst_194 : f32 to vector<1x4xf32>
    %367 = arith.mulf %365, %366 : vector<1x4xf32>
    %368 = arith.mulf %364, %364 : vector<1x4xf32>
    %369 = arith.subf %367, %368 : vector<1x4xf32>
    %cst_195 = arith.constant 9.99999974E-6 : f32
    %370 = vector.broadcast %cst_195 : f32 to vector<1x4xf32>
    %371 = arith.addf %369, %370 : vector<1x4xf32>
    %372 = math.rsqrt %371 : vector<1x4xf32>
    %373 = arith.mulf %354, %372 : vector<1x4xf32>
    %374 = arith.mulf %364, %373 : vector<1x4xf32>
    %375 = arith.subf %356, %374 : vector<1x4xf32>
    %376 = tpu.concatenate %373, %375 in 0 : vector<1x4xf32>, vector<1x4xf32> -> vector<2x4xf32>
    %cst_196 = arith.constant dense<0.000000e+00> : vector<2x128xf32>
    %377 = tpu.matmul %376, %1, %cst_196 {dimension_numbers = #tpu.dot_dimension_numbers<[1], [0], [0], [1], [0, 0, 1, 1], [], []>} : vector<2x4xf32>, vector<4x128xf32>, vector<2x128xf32> -> vector<2x128xf32>
    %378 = vector.extract_strided_slice %377 {offsets = [0, 0], sizes = [1, 128], strides = [1, 1]} : vector<2x128xf32> to vector<1x128xf32>
    %379 = vector.broadcast %378 : vector<1x128xf32> to vector<16x128xf32>
    %380 = arith.mulf %352, %379 : vector<16x128xf32>
    %381 = vector.extract_strided_slice %377 {offsets = [1, 0], sizes = [1, 128], strides = [1, 1]} : vector<2x128xf32> to vector<1x128xf32>
    %382 = vector.broadcast %381 : vector<1x128xf32> to vector<16x128xf32>
    %383 = arith.addf %380, %382 : vector<16x128xf32>
    %cst_197 = arith.constant 0.000000e+00 : f32
    %384 = vector.broadcast %cst_197 : f32 to vector<16x128xf32>
    %385 = arith.maximumf %383, %384 : vector<16x128xf32>
    %c1_198 = arith.constant 1 : index
    %c0_199 = arith.constant 0 : index
    %c0_200 = arith.constant 0 : index
    %c0_201 = arith.constant 0 : index
    %386 = vector.load %arg2[%c1_198, %c0_199, %c0_200, %c0_201] : memref<2x2x384x128xf32, #tpu.memory_space<vmem>>, vector<1x1x384x128xf32>
    %387 = vector.shape_cast %386 : vector<1x1x384x128xf32> to vector<384x128xf32>
    %c8_202 = arith.constant 8 : index
    %c0_203 = arith.constant 0 : index
    %388 = vector.load %arg13[%c8_202, %c0_203] : memref<32x128xf32, #tpu.memory_space<vmem>>, vector<16x128xf32>
    tpu.vector_store %arg13[%c8_202, %c0_203], %385 {strides = array<i32>} : memref<32x128xf32, #tpu.memory_space<vmem>>, vector<16x128xf32>,
    %c7_204 = arith.constant 7 : index
    %c0_205 = arith.constant 0 : index
    %389 = vector.load %arg13[%c7_204, %c0_205] : memref<32x128xf32, #tpu.memory_space<vmem>>, vector<16x128xf32>
    %390 = vector.broadcast %23 : vector<16x1xf32> to vector<16x128xf32>
    %391 = arith.mulf %389, %390 : vector<16x128xf32>
    %c9_206 = arith.constant 9 : index
    %c0_207 = arith.constant 0 : index
    %392 = vector.load %arg13[%c9_206, %c0_207] : memref<32x128xf32, #tpu.memory_space<vmem>>, vector<16x128xf32>
    %393 = vector.broadcast %43 : vector<16x1xf32> to vector<16x128xf32>
    %394 = arith.mulf %392, %393 : vector<16x128xf32>
    %395 = tpu.concatenate %391, %385, %394 in 1 : vector<16x128xf32>, vector<16x128xf32>, vector<16x128xf32> -> vector<16x384xf32>
    %cst_208 = arith.constant dense<0.000000e+00> : vector<16x128xf32>
    %396 = tpu.matmul %395, %387, %cst_208 {dimension_numbers = #tpu.dot_dimension_numbers<[1], [0], [0], [1], [0, 0, 1, 1], [], []>} : vector<16x384xf32>, vector<384x128xf32>, vector<16x128xf32> -> vector<16x128xf32>
    %c1_209 = arith.constant 1 : index
    %c0_210 = arith.constant 0 : index
    %c0_211 = arith.constant 0 : index
    %397 = vector.load %arg5[%c1_209, %c0_210, %c0_211] : memref<2x1x4xf32, #tpu.memory_space<vmem>>, vector<1x1x4xf32>
    %398 = vector.shape_cast %397 : vector<1x1x4xf32> to vector<1x4xf32>
    %c1_212 = arith.constant 1 : index
    %c0_213 = arith.constant 0 : index
    %c0_214 = arith.constant 0 : index
    %399 = vector.load %arg6[%c1_212, %c0_213, %c0_214] : memref<2x1x4xf32, #tpu.memory_space<vmem>>, vector<1x1x4xf32>
    %400 = vector.shape_cast %399 : vector<1x1x4xf32> to vector<1x4xf32>
    %cst_215 = arith.constant dense<0.000000e+00> : vector<1x128xf32>
    %401 = tpu.matmul %2, %396, %cst_215 {dimension_numbers = #tpu.dot_dimension_numbers<[1], [0], [0], [1], [0, 0, 1, 1], [], []>} : vector<1x16xf32>, vector<16x128xf32>, vector<1x128xf32> -> vector<1x128xf32>
    %402 = arith.mulf %396, %396 : vector<16x128xf32>
    %cst_216 = arith.constant dense<0.000000e+00> : vector<1x128xf32>
    %403 = tpu.matmul %2, %402, %cst_216 {dimension_numbers = #tpu.dot_dimension_numbers<[1], [0], [0], [1], [0, 0, 1, 1], [], []>} : vector<1x16xf32>, vector<16x128xf32>, vector<1x128xf32> -> vector<1x128xf32>
    %404 = tpu.concatenate %401, %403 in 0 : vector<1x128xf32>, vector<1x128xf32> -> vector<2x128xf32>
    %cst_217 = arith.constant dense<0.000000e+00> : vector<2x4xf32>
    %405 = tpu.matmul %404, %0, %cst_217 {dimension_numbers = #tpu.dot_dimension_numbers<[1], [0], [0], [1], [0, 0, 1, 1], [], []>} : vector<2x128xf32>, vector<128x4xf32>, vector<2x4xf32> -> vector<2x4xf32>
    %406 = vector.extract_strided_slice %405 {offsets = [0, 0], sizes = [1, 4], strides = [1, 1]} : vector<2x4xf32> to vector<1x4xf32>
    %cst_218 = arith.constant 0.001953125 : f32
    %407 = vector.broadcast %cst_218 : f32 to vector<1x4xf32>
    %408 = arith.mulf %406, %407 : vector<1x4xf32>
    %409 = vector.extract_strided_slice %405 {offsets = [1, 0], sizes = [1, 4], strides = [1, 1]} : vector<2x4xf32> to vector<1x4xf32>
    %cst_219 = arith.constant 0.001953125 : f32
    %410 = vector.broadcast %cst_219 : f32 to vector<1x4xf32>
    %411 = arith.mulf %409, %410 : vector<1x4xf32>
    %412 = arith.mulf %408, %408 : vector<1x4xf32>
    %413 = arith.subf %411, %412 : vector<1x4xf32>
    %cst_220 = arith.constant 9.99999974E-6 : f32
    %414 = vector.broadcast %cst_220 : f32 to vector<1x4xf32>
    %415 = arith.addf %413, %414 : vector<1x4xf32>
    %416 = math.rsqrt %415 : vector<1x4xf32>
    %417 = arith.mulf %398, %416 : vector<1x4xf32>
    %418 = arith.mulf %408, %417 : vector<1x4xf32>
    %419 = arith.subf %400, %418 : vector<1x4xf32>
    %420 = tpu.concatenate %417, %419 in 0 : vector<1x4xf32>, vector<1x4xf32> -> vector<2x4xf32>
    %cst_221 = arith.constant dense<0.000000e+00> : vector<2x128xf32>
    %421 = tpu.matmul %420, %1, %cst_221 {dimension_numbers = #tpu.dot_dimension_numbers<[1], [0], [0], [1], [0, 0, 1, 1], [], []>} : vector<2x4xf32>, vector<4x128xf32>, vector<2x128xf32> -> vector<2x128xf32>
    %422 = vector.extract_strided_slice %421 {offsets = [0, 0], sizes = [1, 128], strides = [1, 1]} : vector<2x128xf32> to vector<1x128xf32>
    %423 = vector.broadcast %422 : vector<1x128xf32> to vector<16x128xf32>
    %424 = arith.mulf %396, %423 : vector<16x128xf32>
    %425 = vector.extract_strided_slice %421 {offsets = [1, 0], sizes = [1, 128], strides = [1, 1]} : vector<2x128xf32> to vector<1x128xf32>
    %426 = vector.broadcast %425 : vector<1x128xf32> to vector<16x128xf32>
    %427 = arith.addf %424, %426 : vector<16x128xf32>
    %cst_222 = arith.constant 0.000000e+00 : f32
    %428 = vector.broadcast %cst_222 : f32 to vector<16x128xf32>
    %429 = arith.maximumf %427, %428 : vector<16x128xf32>
    %c1_223 = arith.constant 1 : index
    %c1_224 = arith.constant 1 : index
    %c0_225 = arith.constant 0 : index
    %c0_226 = arith.constant 0 : index
    %430 = vector.load %arg2[%c1_223, %c1_224, %c0_225, %c0_226] : memref<2x2x384x128xf32, #tpu.memory_space<vmem>>, vector<1x1x384x128xf32>
    %431 = vector.shape_cast %430 : vector<1x1x384x128xf32> to vector<384x128xf32>
    %c8_227 = arith.constant 8 : index
    %c0_228 = arith.constant 0 : index
    %432 = vector.load %arg13[%c8_227, %c0_228] : memref<32x128xf32, #tpu.memory_space<vmem>>, vector<16x128xf32>
    tpu.vector_store %arg13[%c8_227, %c0_228], %429 {strides = array<i32>} : memref<32x128xf32, #tpu.memory_space<vmem>>, vector<16x128xf32>,
    %c7_229 = arith.constant 7 : index
    %c0_230 = arith.constant 0 : index
    %433 = vector.load %arg13[%c7_229, %c0_230] : memref<32x128xf32, #tpu.memory_space<vmem>>, vector<16x128xf32>
    %434 = vector.broadcast %23 : vector<16x1xf32> to vector<16x128xf32>
    %435 = arith.mulf %433, %434 : vector<16x128xf32>
    %c9_231 = arith.constant 9 : index
    %c0_232 = arith.constant 0 : index
    %436 = vector.load %arg13[%c9_231, %c0_232] : memref<32x128xf32, #tpu.memory_space<vmem>>, vector<16x128xf32>
    %437 = vector.broadcast %43 : vector<16x1xf32> to vector<16x128xf32>
    %438 = arith.mulf %436, %437 : vector<16x128xf32>
    %439 = tpu.concatenate %435, %429, %438 in 1 : vector<16x128xf32>, vector<16x128xf32>, vector<16x128xf32> -> vector<16x384xf32>
    %cst_233 = arith.constant dense<0.000000e+00> : vector<16x128xf32>
    %440 = tpu.matmul %439, %431, %cst_233 {dimension_numbers = #tpu.dot_dimension_numbers<[1], [0], [0], [1], [0, 0, 1, 1], [], []>} : vector<16x384xf32>, vector<384x128xf32>, vector<16x128xf32> -> vector<16x128xf32>
    %441 = arith.addf %352, %440 : vector<16x128xf32>
    %c1_234 = arith.constant 1 : index
    %c0_235 = arith.constant 0 : index
    %c0_236 = arith.constant 0 : index
    %442 = vector.load %arg7[%c1_234, %c0_235, %c0_236] : memref<4x1x4xf32, #tpu.memory_space<vmem>>, vector<1x1x4xf32>
    %443 = vector.shape_cast %442 : vector<1x1x4xf32> to vector<1x4xf32>
    %c1_237 = arith.constant 1 : index
    %c0_238 = arith.constant 0 : index
    %c0_239 = arith.constant 0 : index
    %444 = vector.load %arg8[%c1_237, %c0_238, %c0_239] : memref<4x1x4xf32, #tpu.memory_space<vmem>>, vector<1x1x4xf32>
    %445 = vector.shape_cast %444 : vector<1x1x4xf32> to vector<1x4xf32>
    %cst_240 = arith.constant dense<0.000000e+00> : vector<1x128xf32>
    %446 = tpu.matmul %2, %441, %cst_240 {dimension_numbers = #tpu.dot_dimension_numbers<[1], [0], [0], [1], [0, 0, 1, 1], [], []>} : vector<1x16xf32>, vector<16x128xf32>, vector<1x128xf32> -> vector<1x128xf32>
    %447 = arith.mulf %441, %441 : vector<16x128xf32>
    %cst_241 = arith.constant dense<0.000000e+00> : vector<1x128xf32>
    %448 = tpu.matmul %2, %447, %cst_241 {dimension_numbers = #tpu.dot_dimension_numbers<[1], [0], [0], [1], [0, 0, 1, 1], [], []>} : vector<1x16xf32>, vector<16x128xf32>, vector<1x128xf32> -> vector<1x128xf32>
    %449 = tpu.concatenate %446, %448 in 0 : vector<1x128xf32>, vector<1x128xf32> -> vector<2x128xf32>
    %cst_242 = arith.constant dense<0.000000e+00> : vector<2x4xf32>
    %450 = tpu.matmul %449, %0, %cst_242 {dimension_numbers = #tpu.dot_dimension_numbers<[1], [0], [0], [1], [0, 0, 1, 1], [], []>} : vector<2x128xf32>, vector<128x4xf32>, vector<2x4xf32> -> vector<2x4xf32>
    %451 = vector.extract_strided_slice %450 {offsets = [0, 0], sizes = [1, 4], strides = [1, 1]} : vector<2x4xf32> to vector<1x4xf32>
    %cst_243 = arith.constant 0.001953125 : f32
    %452 = vector.broadcast %cst_243 : f32 to vector<1x4xf32>
    %453 = arith.mulf %451, %452 : vector<1x4xf32>
    %454 = vector.extract_strided_slice %450 {offsets = [1, 0], sizes = [1, 4], strides = [1, 1]} : vector<2x4xf32> to vector<1x4xf32>
    %cst_244 = arith.constant 0.001953125 : f32
    %455 = vector.broadcast %cst_244 : f32 to vector<1x4xf32>
    %456 = arith.mulf %454, %455 : vector<1x4xf32>
    %457 = arith.mulf %453, %453 : vector<1x4xf32>
    %458 = arith.subf %456, %457 : vector<1x4xf32>
    %cst_245 = arith.constant 9.99999974E-6 : f32
    %459 = vector.broadcast %cst_245 : f32 to vector<1x4xf32>
    %460 = arith.addf %458, %459 : vector<1x4xf32>
    %461 = math.rsqrt %460 : vector<1x4xf32>
    %462 = arith.mulf %443, %461 : vector<1x4xf32>
    %463 = arith.mulf %453, %462 : vector<1x4xf32>
    %464 = arith.subf %445, %463 : vector<1x4xf32>
    %465 = tpu.concatenate %462, %464 in 0 : vector<1x4xf32>, vector<1x4xf32> -> vector<2x4xf32>
    %cst_246 = arith.constant dense<0.000000e+00> : vector<2x128xf32>
    %466 = tpu.matmul %465, %1, %cst_246 {dimension_numbers = #tpu.dot_dimension_numbers<[1], [0], [0], [1], [0, 0, 1, 1], [], []>} : vector<2x4xf32>, vector<4x128xf32>, vector<2x128xf32> -> vector<2x128xf32>
    %467 = vector.extract_strided_slice %466 {offsets = [0, 0], sizes = [1, 128], strides = [1, 1]} : vector<2x128xf32> to vector<1x128xf32>
    %468 = vector.broadcast %467 : vector<1x128xf32> to vector<16x128xf32>
    %469 = arith.mulf %441, %468 : vector<16x128xf32>
    %470 = vector.extract_strided_slice %466 {offsets = [1, 0], sizes = [1, 128], strides = [1, 1]} : vector<2x128xf32> to vector<1x128xf32>
    %471 = vector.broadcast %470 : vector<1x128xf32> to vector<16x128xf32>
    %472 = arith.addf %469, %471 : vector<16x128xf32>
    %cst_247 = arith.constant 0.000000e+00 : f32
    %473 = vector.broadcast %cst_247 : f32 to vector<16x128xf32>
    %474 = arith.maximumf %472, %473 : vector<16x128xf32>
    %c1_248 = arith.constant 1 : index
    %c0_249 = arith.constant 0 : index
    %c0_250 = arith.constant 0 : index
    %475 = vector.load %arg9[%c1_248, %c0_249, %c0_250] : memref<4x128x128xf32, #tpu.memory_space<vmem>>, vector<1x128x128xf32>
    %476 = vector.shape_cast %475 : vector<1x128x128xf32> to vector<128x128xf32>
    %cst_251 = arith.constant dense<0.000000e+00> : vector<16x128xf32>
    %477 = tpu.matmul %474, %476, %cst_251 {dimension_numbers = #tpu.dot_dimension_numbers<[1], [0], [0], [1], [0, 0, 1, 1], [], []>} : vector<16x128xf32>, vector<128x128xf32>, vector<16x128xf32> -> vector<16x128xf32>
    %478 = arith.addf %263, %477 : vector<16x128xf32>
    %c0_252 = arith.constant 0 : index
    %c0_253 = arith.constant 0 : index
    %c0_254 = arith.constant 0 : index
    %479 = vector.load %arg1[%c0_252, %c0_253, %c0_254] : memref<2x16x128xf32, #tpu.memory_space<vmem>>, vector<1x16x128xf32>
    %480 = vector.shape_cast %479 : vector<1x16x128xf32> to vector<16x128xf32>
    %c2 = arith.constant 2 : index
    %c0_255 = arith.constant 0 : index
    %c0_256 = arith.constant 0 : index
    %481 = vector.load %arg7[%c2, %c0_255, %c0_256] : memref<4x1x4xf32, #tpu.memory_space<vmem>>, vector<1x1x4xf32>
    %482 = vector.shape_cast %481 : vector<1x1x4xf32> to vector<1x4xf32>
    %c2_257 = arith.constant 2 : index
    %c0_258 = arith.constant 0 : index
    %c0_259 = arith.constant 0 : index
    %483 = vector.load %arg8[%c2_257, %c0_258, %c0_259] : memref<4x1x4xf32, #tpu.memory_space<vmem>>, vector<1x1x4xf32>
    %484 = vector.shape_cast %483 : vector<1x1x4xf32> to vector<1x4xf32>
    %cst_260 = arith.constant dense<0.000000e+00> : vector<1x128xf32>
    %485 = tpu.matmul %2, %480, %cst_260 {dimension_numbers = #tpu.dot_dimension_numbers<[1], [0], [0], [1], [0, 0, 1, 1], [], []>} : vector<1x16xf32>, vector<16x128xf32>, vector<1x128xf32> -> vector<1x128xf32>
    %486 = arith.mulf %480, %480 : vector<16x128xf32>
    %cst_261 = arith.constant dense<0.000000e+00> : vector<1x128xf32>
    %487 = tpu.matmul %2, %486, %cst_261 {dimension_numbers = #tpu.dot_dimension_numbers<[1], [0], [0], [1], [0, 0, 1, 1], [], []>} : vector<1x16xf32>, vector<16x128xf32>, vector<1x128xf32> -> vector<1x128xf32>
    %488 = tpu.concatenate %485, %487 in 0 : vector<1x128xf32>, vector<1x128xf32> -> vector<2x128xf32>
    %cst_262 = arith.constant dense<0.000000e+00> : vector<2x4xf32>
    %489 = tpu.matmul %488, %0, %cst_262 {dimension_numbers = #tpu.dot_dimension_numbers<[1], [0], [0], [1], [0, 0, 1, 1], [], []>} : vector<2x128xf32>, vector<128x4xf32>, vector<2x4xf32> -> vector<2x4xf32>
    %490 = vector.extract_strided_slice %489 {offsets = [0, 0], sizes = [1, 4], strides = [1, 1]} : vector<2x4xf32> to vector<1x4xf32>
    %cst_263 = arith.constant 0.001953125 : f32
    %491 = vector.broadcast %cst_263 : f32 to vector<1x4xf32>
    %492 = arith.mulf %490, %491 : vector<1x4xf32>
    %493 = vector.extract_strided_slice %489 {offsets = [1, 0], sizes = [1, 4], strides = [1, 1]} : vector<2x4xf32> to vector<1x4xf32>
    %cst_264 = arith.constant 0.001953125 : f32
    %494 = vector.broadcast %cst_264 : f32 to vector<1x4xf32>
    %495 = arith.mulf %493, %494 : vector<1x4xf32>
    %496 = arith.mulf %492, %492 : vector<1x4xf32>
    %497 = arith.subf %495, %496 : vector<1x4xf32>
    %cst_265 = arith.constant 9.99999974E-6 : f32
    %498 = vector.broadcast %cst_265 : f32 to vector<1x4xf32>
    %499 = arith.addf %497, %498 : vector<1x4xf32>
    %500 = math.rsqrt %499 : vector<1x4xf32>
    %501 = arith.mulf %482, %500 : vector<1x4xf32>
    %502 = arith.mulf %492, %501 : vector<1x4xf32>
    %503 = arith.subf %484, %502 : vector<1x4xf32>
    %504 = tpu.concatenate %501, %503 in 0 : vector<1x4xf32>, vector<1x4xf32> -> vector<2x4xf32>
    %cst_266 = arith.constant dense<0.000000e+00> : vector<2x128xf32>
    %505 = tpu.matmul %504, %1, %cst_266 {dimension_numbers = #tpu.dot_dimension_numbers<[1], [0], [0], [1], [0, 0, 1, 1], [], []>} : vector<2x4xf32>, vector<4x128xf32>, vector<2x128xf32> -> vector<2x128xf32>
    %506 = vector.extract_strided_slice %505 {offsets = [0, 0], sizes = [1, 128], strides = [1, 1]} : vector<2x128xf32> to vector<1x128xf32>
    %507 = vector.broadcast %506 : vector<1x128xf32> to vector<16x128xf32>
    %508 = arith.mulf %480, %507 : vector<16x128xf32>
    %509 = vector.extract_strided_slice %505 {offsets = [1, 0], sizes = [1, 128], strides = [1, 1]} : vector<2x128xf32> to vector<1x128xf32>
    %510 = vector.broadcast %509 : vector<1x128xf32> to vector<16x128xf32>
    %511 = arith.addf %508, %510 : vector<16x128xf32>
    %cst_267 = arith.constant 0.000000e+00 : f32
    %512 = vector.broadcast %cst_267 : f32 to vector<16x128xf32>
    %513 = arith.maximumf %511, %512 : vector<16x128xf32>
    %c2_268 = arith.constant 2 : index
    %c0_269 = arith.constant 0 : index
    %c0_270 = arith.constant 0 : index
    %514 = vector.load %arg9[%c2_268, %c0_269, %c0_270] : memref<4x128x128xf32, #tpu.memory_space<vmem>>, vector<1x128x128xf32>
    %515 = vector.shape_cast %514 : vector<1x128x128xf32> to vector<128x128xf32>
    %cst_271 = arith.constant dense<0.000000e+00> : vector<16x128xf32>
    %516 = tpu.matmul %513, %515, %cst_271 {dimension_numbers = #tpu.dot_dimension_numbers<[1], [0], [0], [1], [0, 0, 1, 1], [], []>} : vector<16x128xf32>, vector<128x128xf32>, vector<16x128xf32> -> vector<16x128xf32>
    %517 = arith.addf %478, %516 : vector<16x128xf32>
    %c1_272 = arith.constant 1 : index
    %c0_273 = arith.constant 0 : index
    %c0_274 = arith.constant 0 : index
    %518 = vector.load %arg1[%c1_272, %c0_273, %c0_274] : memref<2x16x128xf32, #tpu.memory_space<vmem>>, vector<1x16x128xf32>
    %519 = vector.shape_cast %518 : vector<1x16x128xf32> to vector<16x128xf32>
    %c3 = arith.constant 3 : index
    %c0_275 = arith.constant 0 : index
    %c0_276 = arith.constant 0 : index
    %520 = vector.load %arg7[%c3, %c0_275, %c0_276] : memref<4x1x4xf32, #tpu.memory_space<vmem>>, vector<1x1x4xf32>
    %521 = vector.shape_cast %520 : vector<1x1x4xf32> to vector<1x4xf32>
    %c3_277 = arith.constant 3 : index
    %c0_278 = arith.constant 0 : index
    %c0_279 = arith.constant 0 : index
    %522 = vector.load %arg8[%c3_277, %c0_278, %c0_279] : memref<4x1x4xf32, #tpu.memory_space<vmem>>, vector<1x1x4xf32>
    %523 = vector.shape_cast %522 : vector<1x1x4xf32> to vector<1x4xf32>
    %cst_280 = arith.constant dense<0.000000e+00> : vector<1x128xf32>
    %524 = tpu.matmul %2, %519, %cst_280 {dimension_numbers = #tpu.dot_dimension_numbers<[1], [0], [0], [1], [0, 0, 1, 1], [], []>} : vector<1x16xf32>, vector<16x128xf32>, vector<1x128xf32> -> vector<1x128xf32>
    %525 = arith.mulf %519, %519 : vector<16x128xf32>
    %cst_281 = arith.constant dense<0.000000e+00> : vector<1x128xf32>
    %526 = tpu.matmul %2, %525, %cst_281 {dimension_numbers = #tpu.dot_dimension_numbers<[1], [0], [0], [1], [0, 0, 1, 1], [], []>} : vector<1x16xf32>, vector<16x128xf32>, vector<1x128xf32> -> vector<1x128xf32>
    %527 = tpu.concatenate %524, %526 in 0 : vector<1x128xf32>, vector<1x128xf32> -> vector<2x128xf32>
    %cst_282 = arith.constant dense<0.000000e+00> : vector<2x4xf32>
    %528 = tpu.matmul %527, %0, %cst_282 {dimension_numbers = #tpu.dot_dimension_numbers<[1], [0], [0], [1], [0, 0, 1, 1], [], []>} : vector<2x128xf32>, vector<128x4xf32>, vector<2x4xf32> -> vector<2x4xf32>
    %529 = vector.extract_strided_slice %528 {offsets = [0, 0], sizes = [1, 4], strides = [1, 1]} : vector<2x4xf32> to vector<1x4xf32>
    %cst_283 = arith.constant 0.001953125 : f32
    %530 = vector.broadcast %cst_283 : f32 to vector<1x4xf32>
    %531 = arith.mulf %529, %530 : vector<1x4xf32>
    %532 = vector.extract_strided_slice %528 {offsets = [1, 0], sizes = [1, 4], strides = [1, 1]} : vector<2x4xf32> to vector<1x4xf32>
    %cst_284 = arith.constant 0.001953125 : f32
    %533 = vector.broadcast %cst_284 : f32 to vector<1x4xf32>
    %534 = arith.mulf %532, %533 : vector<1x4xf32>
    %535 = arith.mulf %531, %531 : vector<1x4xf32>
    %536 = arith.subf %534, %535 : vector<1x4xf32>
    %cst_285 = arith.constant 9.99999974E-6 : f32
    %537 = vector.broadcast %cst_285 : f32 to vector<1x4xf32>
    %538 = arith.addf %536, %537 : vector<1x4xf32>
    %539 = math.rsqrt %538 : vector<1x4xf32>
    %540 = arith.mulf %521, %539 : vector<1x4xf32>
    %541 = arith.mulf %531, %540 : vector<1x4xf32>
    %542 = arith.subf %523, %541 : vector<1x4xf32>
    %543 = tpu.concatenate %540, %542 in 0 : vector<1x4xf32>, vector<1x4xf32> -> vector<2x4xf32>
    %cst_286 = arith.constant dense<0.000000e+00> : vector<2x128xf32>
    %544 = tpu.matmul %543, %1, %cst_286 {dimension_numbers = #tpu.dot_dimension_numbers<[1], [0], [0], [1], [0, 0, 1, 1], [], []>} : vector<2x4xf32>, vector<4x128xf32>, vector<2x128xf32> -> vector<2x128xf32>
    %545 = vector.extract_strided_slice %544 {offsets = [0, 0], sizes = [1, 128], strides = [1, 1]} : vector<2x128xf32> to vector<1x128xf32>
    %546 = vector.broadcast %545 : vector<1x128xf32> to vector<16x128xf32>
    %547 = arith.mulf %519, %546 : vector<16x128xf32>
    %548 = vector.extract_strided_slice %544 {offsets = [1, 0], sizes = [1, 128], strides = [1, 1]} : vector<2x128xf32> to vector<1x128xf32>
    %549 = vector.broadcast %548 : vector<1x128xf32> to vector<16x128xf32>
    %550 = arith.addf %547, %549 : vector<16x128xf32>
    %cst_287 = arith.constant 0.000000e+00 : f32
    %551 = vector.broadcast %cst_287 : f32 to vector<16x128xf32>
    %552 = arith.maximumf %550, %551 : vector<16x128xf32>
    %c3_288 = arith.constant 3 : index
    %c0_289 = arith.constant 0 : index
    %c0_290 = arith.constant 0 : index
    %553 = vector.load %arg9[%c3_288, %c0_289, %c0_290] : memref<4x128x128xf32, #tpu.memory_space<vmem>>, vector<1x128x128xf32>
    %554 = vector.shape_cast %553 : vector<1x128x128xf32> to vector<128x128xf32>
    %cst_291 = arith.constant dense<0.000000e+00> : vector<16x128xf32>
    %555 = tpu.matmul %552, %554, %cst_291 {dimension_numbers = #tpu.dot_dimension_numbers<[1], [0], [0], [1], [0, 0, 1, 1], [], []>} : vector<16x128xf32>, vector<128x128xf32>, vector<16x128xf32> -> vector<16x128xf32>
    %556 = arith.addf %517, %555 : vector<16x128xf32>
    %c0_292 = arith.constant 0 : index
    %c0_293 = arith.constant 0 : index
    %557 = vector.load %arg12[%c0_292, %c0_293] : memref<16x128xf32, #tpu.memory_space<vmem>>, vector<16x128xf32>
    tpu.vector_store %arg12[%c0_292, %c0_293], %556 {strides = array<i32>} : memref<16x128xf32, #tpu.memory_space<vmem>>, vector<16x128xf32>,
    return
  }
}

</mosaic_0001>

<bundles_post_ra>
// kernel: _memory_block_impl.1
= control target key start
LH: loop header
LB: loop body
LE: loop exit
PB: predicated region body
PF: predicated region fallthrough
CT: control target
= control target key end

     0   :  { %v8312_v0 = vmov 0.0   ;;  %vm8313_vm0 = vmmov 0   ;;  %vm103_vm1 = vcmask 130048   ;;  %v8314_v7 = vmov 1.0   ;;  %s11017_s0 = inlined_call_operand.vmem [shape: f32[16,128], index: 0, kind: input, shape index: {}]   ;;  %s11018_s10 = inlined_call_operand.vmem [shape: f32[128,4], index: 10, kind: input, shape index: {}]   ;;  %s11019_s11 = inlined_call_operand.vmem [shape: f32[4,128], index: 11, kind: input, shape index: {}]   ;;  %s11020_s2 = inlined_call_operand.vmem [shape: f32[2,2,384,128], index: 2, kind: input, shape index: {}]   ;;  %s11021_s3 = inlined_call_operand.vmem [shape: f32[2,1,4], index: 3, kind: input, shape index: {}]   ;;  %s11022_s4 = inlined_call_operand.vmem [shape: f32[2,1,4], index: 4, kind: input, shape index: {}]   ;;  %s11023_s5 = inlined_call_operand.vmem [shape: f32[2,1,4], index: 5, kind: input, shape index: {}]   ;;  %s11024_s6 = inlined_call_operand.vmem [shape: f32[2,1,4], index: 6, kind: input, shape index: {}]   ;;  %s11025_s7 = inlined_call_operand.vmem [shape: f32[4,1,4], index: 7, kind: input, shape index: {}]   ;;  %s11026_s8 = inlined_call_operand.vmem [shape: f32[4,1,4], index: 8, kind: input, shape index: {}]   ;;  %s11027_s9 = inlined_call_operand.vmem [shape: f32[4,128,128], index: 9, kind: input, shape index: {}]   ;;  %s11028_s1 = inlined_call_operand.vmem [shape: f32[2,16,128], index: 1, kind: input, shape index: {}]   ;;  %s11029_s12 = inlined_call_operand.vmem [shape: f32[16,128], index: 12, kind: output, shape index: {}]  }
   0x1   :  { %7216 = vmatprep.subr.mxu1 %v8312_v0  ;;  %97 = vst [vmem:[#allocation2 + $0x7] sm:$0x1] %v8312_v0  ;;  %98 = vst [vmem:[#allocation2 + $0x18] sm:$0x1] %v8312_v0  ;;  %v8387_v1 = vld [vmem:[%s11017_s0 + $0x8] sm:$0xff]  ;;  %v8392_v2 = vld [vmem:[%s11017_s0] sm:$0xff]  ;;  %7220 = vmatprep.mubr.msk.f32.mxu1 %vm8313_vm0, %v8312_v0  ;;  %v58_v43 = vlaneseq }
   0x2   :  { %v8399_v3 = vld [vmem:[%s11018_s10 + $0x78] sm:$0xff]  ;;  %7217 = vmatpush3.msra.mxu1 %v8387_v1  ;;  %v178_v4 = vmul.f32 %v8387_v1, %v8387_v1  ;;  %7230 = vmatprep.subr.mxu0 %v8312_v0  ;;  %v177_v5 = vmul.f32 %v8392_v2, %v8392_v2  ;;  %v8414_v6 = vld [vmem:[%s11018_s10 + $0x70] sm:$0xff]  ;;  %v8424_v8 = vld [vmem:[%s11018_s10 + $0x68] sm:$0xff]  ;;  %vm252_vm2 = vcmask 1040384   ;;  %vm363_vm3 = vcmask 1043456  }
   0x3   :  { %7218 = vmatprep.subr.mxu1 %v8312_v0  ;;  %7231 = vmatpush3.msra.mxu0 %v8399_v3  ;;  %v8432_v9 = vld [vmem:[%s11018_s10 + $0x60] sm:$0xff]  ;;  %v8441_v10 = vld [vmem:[%s11018_s10 + $0x58] sm:$0xff]  ;;  %v8451_v11 = vld [vmem:[%s11018_s10 + $0x50] sm:$0xff]  ;;  %v8315_v44 = vmov 1966171168   ;;  %v8557_v46 = vshrl.u32 %v58_v43, 7 }
   0x4   :  { %7219 = vmatpush3.msra.mxu1 %v8392_v2  ;;  %7232 = vmatprep.subr.mxu0 %v8312_v0  ;;  %v8460_v12 = vld [vmem:[%s11018_s10 + $0x48] sm:$0xff]  ;;  %v8467_v13 = vld [vmem:[%s11018_s10 + $0x40] sm:$0xff]  ;;  %v8474_v14 = vld [vmem:[%s11018_s10 + $0x38] sm:$0xff]  ;;  %v334_v45 = vunpack.c.l.s4 %v8315_v44  ;;  %vm359_vm4 = vcmask 31744  }
   0x5   :  { %7221 = vmatmul.mubr.msk.f32.vlgmr.msra.gmra.mxu1 %vm103_vm1, %v8314_v7  ;;  %7223 = vmatprep.subr.mxu1 %v8312_v0  ;;  %v8481_v15 = vld [vmem:[%s11018_s10 + $0x30] sm:$0xff]  ;;  %v8488_v16 = vld [vmem:[%s11018_s10 + $0x28] sm:$0xff]  ;;  %v8495_v17 = vld [vmem:[%s11018_s10 + $0x20] sm:$0xff]  ;;  %v8571_v57 = vsub.s32 0, %v8557_v46 }
   0x6   :  { %7224 = vmatpush3.msra.mxu1 %v178_v4  ;;  %7227 = vmatprep.mubr.msk.f32.mxu1 %vm8313_vm0, %v8312_v0  ;;  %v8504_v18 = vld [vmem:[%s11018_s10 + $0x18] sm:$0xff]  ;;  %v8511_v19 = vld [vmem:[%s11018_s10 + $0x10] sm:$0xff]  ;;  %v8518_v20 = vld [vmem:[%s11018_s10 + $0x8] sm:$0xff]  ;;  %v335_v47 = vunpack.c.0.s8 %v334_v45 }
   0x7   :  { %7225 = vmatprep.subr.mxu1 %v8312_v0  ;;  %7233 = vmatpush3.msra.mxu0 %v8414_v6  ;;  %v8525_v21 = vld [vmem:[%s11018_s10] sm:$0xff]  ;;  %v482_v29 = vld [vmem:[%s11020_s2 + $0xf8] sm:$0xff]  ;;  %v497_v31 = vld [vmem:[%s11020_s2 + $0x170] sm:$0xff] }
   0x8   :  { %7226 = vmatpush3.msra.mxu1 %v177_v5  ;;  %7234 = vmatprep.subr.mxu0 %v8312_v0  ;;  %v8532_v28 = vld [vmem:[%s11019_s11] sm:$0xf]  ;;  %v498_v30 = vld [vmem:[%s11020_s2 + $0x178] sm:$0xff]  ;;  %v496_v32 = vld [vmem:[%s11020_s2 + $0x168] sm:$0xff]  ;;  %v8560_v48 = vsub.s32 %v335_v47, %v8557_v46 }
   0x9   :  { %7228 = vmatmul.mubr.msk.f32.vlgmr.msra.gmra.mxu1 %vm103_vm1, %v8314_v7  ;;  %7235 = vmatpush3.msra.mxu0 %v8424_v8  ;;  %v495_v33 = vld [vmem:[%s11020_s2 + $0x160] sm:$0xff]  ;;  %v494_v34 = vld [vmem:[%s11020_s2 + $0x158] sm:$0xff]  ;;  %v493_v35 = vld [vmem:[%s11020_s2 + $0x150] sm:$0xff] }
   0xa   :  { %7236 = vmatprep.subr.mxu0 %v8312_v0  ;;  %7262 = vmatprep.mubr.msk.f32.mxu0 %vm8313_vm0, %v8312_v0  ;;  %v101_v52 = vld [vmem:[%s11021_s3] sm:$0x1]  ;;  %v466_v60 = vld [vmem:[%s11020_s2 + $0x78] sm:$0xff]  ;;  %v481_v62 = vld [vmem:[%s11020_s2 + $0xf0] sm:$0xff] }
   0xb   :  { %7237 = vmatpush3.msra.mxu0 %v8432_v9  ;;  %7265 = vmatprep.subr.mxu1 %v8312_v0  ;;  %v102_v55 = vld [vmem:[%s11022_s4] sm:$0x1]  ;;  %v465_v63 = vld [vmem:[%s11020_s2 + $0x70] sm:$0xff]  ;;  %v480_v4 = vld [vmem:[%s11020_s2 + $0xe8] sm:$0xff] }
   0xc   :  { %7238 = vmatprep.subr.mxu0 %v8312_v0  ;;  %7267 = vmatprep.mubr.msk.f32.mxu1 %vm8313_vm0, %v8312_v0  ;;  %v464_v5 = vld [vmem:[%s11020_s2 + $0x68] sm:$0xff]  ;;  %v471_v44 = vld [vmem:[%s11020_s2 + $0xa0] sm:$0xff] }
   0xd   :  { %7239 = vmatpush3.msra.mxu0 %v8441_v10  ;;  %7266 = vmatpush3.msk.msra.mxu1 %vm363_vm3, %v8532_v28  ;;  %v488_v43 = vld [vmem:[%s11020_s2 + $0x128] sm:$0xff]  ;;  %v455_v45 = vld [vmem:[%s11020_s2 + $0x20] sm:$0xff] }
   0xe   :  { %7240 = vmatprep.subr.mxu0 %v8312_v0  ;;  %6444 = vmatprep.subr.mxu1 %v482_v29  ;;  %v476_v29 = vld [vmem:[%s11020_s2 + $0xc8] sm:$0xff]  ;;  %v487_v47 = vld [vmem:[%s11020_s2 + $0x120] sm:$0xff] }
   0xf   :  { %7241 = vmatpush3.msra.mxu0 %v8451_v11 }
  0x10   :  { %7242 = vmatprep.subr.mxu0 %v8312_v0 }
  0x11   :  { %7243 = vmatpush3.msra.mxu0 %v8460_v12 }
  0x12   :  { %7244 = vmatprep.subr.mxu0 %v8312_v0 }
  0x13   :  { %7245 = vmatpush3.msra.mxu0 %v8467_v13 }
  0x14   :  { %7246 = vmatprep.subr.mxu0 %v8312_v0 }
  0x15   :  { %7247 = vmatpush3.msra.mxu0 %v8474_v14 }
  0x16   :  { %7248 = vmatprep.subr.mxu0 %v8312_v0 }
  0x17   :  { %7249 = vmatpush3.msra.mxu0 %v8481_v15 }
  0x18   :  { %7250 = vmatprep.subr.mxu0 %v8312_v0 }
  0x19   :  { %7251 = vmatpush3.msra.mxu0 %v8488_v16 }
  0x1a   :  { %7252 = vmatprep.subr.mxu0 %v8312_v0 }
  0x1b   :  { %7253 = vmatpush3.msra.mxu0 %v8495_v17 }
  0x1c   :  { %7254 = vmatprep.subr.mxu0 %v8312_v0 }
  0x1d   :  { %7255 = vmatpush3.msra.mxu0 %v8504_v18 }
  0x1e   :  { %7256 = vmatprep.subr.mxu0 %v8312_v0 }
  0x1f   :  { %7257 = vmatpush3.msra.mxu0 %v8511_v19 }
  0x20   :  { %7258 = vmatprep.subr.mxu0 %v8312_v0 }
  0x21   :  { %7259 = vmatpush3.msra.mxu0 %v8518_v20 }
  0x22   :  { %7260 = vmatprep.subr.mxu0 %v8312_v0 }
  0x23   :  { %7261 = vmatpush3.msra.mxu0 %v8525_v21 }
  0x24   :  { %7270 = vmatprep.subr.mxu0 %v498_v30 }
  0xc5   :  { %v173_v22 = vpop.f32.mrf.mxu1 }
  0xc7   :  { %v7222_v23 = vpop.f32.mrf.mxu1 }
  0xc8   :  { %v463_v23 = vld [vmem:[%s11020_s2 + $0x60] sm:$0xff] }
  0xc9   :  { %v245_v24 = vpop.f32.mrf.mxu1 }
  0xca   :  { %v250_v25 = vrot.slane %v245_v24, 7  ;;  %v478_v24 = vld [vmem:[%s11020_s2 + $0xd8] sm:$0xff] }
  0xcb   :  { %v7229_v26 = vpop.f32.mrf.mxu1 }
  0xcc   :  { %v253_v27 = vsel %vm252_vm2, %v173_v22, %v250_v25  ;;  %v479_v22 = vld [vmem:[%s11020_s2 + $0xe0] sm:$0xff]  ;;  %v462_v25 = vld [vmem:[%s11020_s2 + $0x58] sm:$0xff]  ;;  %v477_v26 = vld [vmem:[%s11020_s2 + $0xd0] sm:$0xff] }
  0xcd   :  { %7263 = vmatmul.mubr.f32.vlgmr.msra.gmra.mxu0 %v253_v27  ;;  %v461_v27 = vld [vmem:[%s11020_s2 + $0x50] sm:$0xff] }
  0xce   :  { %7271 = vmatpush3.msra.mxu0 %v498_v30  ;;  %v460_v30 = vld [vmem:[%s11020_s2 + $0x48] sm:$0xff] }
  0xcf   :  { %7272 = vmatprep.subr.mxu0 %v497_v31 }
  0xd0   :  { %7273 = vmatpush3.msra.mxu0 %v497_v31  ;;  %v492_v31 = vld [vmem:[%s11020_s2 + $0x148] sm:$0xff] }
  0xd1   :  { %7274 = vmatprep.subr.mxu0 %v496_v32 }
  0xd2   :  { %7275 = vmatpush3.msra.mxu0 %v496_v32  ;;  %v475_v32 = vld [vmem:[%s11020_s2 + $0xc0] sm:$0xff] }
  0xd3   :  { %7276 = vmatprep.subr.mxu0 %v495_v33 }
  0xd4   :  { %7277 = vmatpush3.msra.mxu0 %v495_v33  ;;  %v459_v33 = vld [vmem:[%s11020_s2 + $0x40] sm:$0xff] }
  0xd5   :  { %7278 = vmatprep.subr.mxu0 %v494_v34 }
  0xd6   :  { %7279 = vmatpush3.msra.mxu0 %v494_v34  ;;  %v491_v34 = vld [vmem:[%s11020_s2 + $0x140] sm:$0xff] }
  0xd7   :  { %7280 = vmatprep.subr.mxu0 %v493_v35 }
  0xd8   :  { %7281 = vmatpush3.msra.mxu0 %v493_v35  ;;  %v474_v35 = vld [vmem:[%s11020_s2 + $0xb8] sm:$0xff] }
  0xd9   :  { %7282 = vmatprep.subr.mxu0 %v492_v31 }
  0xda   :  { %7283 = vmatpush3.msra.mxu0 %v492_v31  ;;  %v65_v31 = vand.u32 7, %v8557_v46 }
  0xdb   :  { %7284 = vmatprep.subr.mxu0 %v491_v34 }
  0xdc   :  { %7285 = vmatpush3.msra.mxu0 %v491_v34  ;;  %vm85_vm5 = vcmp.ne.s32.totalorder %v65_v31, 0  ;;  %vm91_vm6 = vcmp.ne.s32.totalorder %v65_v31, 7  ;;  %v6056_v31 = vld [vmem:[%s11020_s2 + $0x258] sm:$0xff] }
  0xdd   :  { %v8713_v34 = vsel %vm91_vm6, 1.0, %v8312_v0 }
 0x18d   :  { %v320_v36 = vpop.f32.mrf.mxu0 }
 0x18e   :  { %v324_v37 = vmul.f32 0.001953125, %v320_v36  ;;  %v458_v36 = vld [vmem:[%s11020_s2 + $0x38] sm:$0xff] }
 0x18f   :  { %v7264_v38 = vpop.f32.mrf.mxu0 }
 0x190   :  { %v325_v39 = vmul.f32 %v324_v37, %v324_v37  ;;  %v473_v38 = vld [vmem:[%s11020_s2 + $0xb0] sm:$0xff] }
 0x192   :  { %v327_v40 = vrot.slane %v325_v39, 7  ;;  %v457_v39 = vld [vmem:[%s11020_s2 + $0x30] sm:$0xff] }
 0x194   :  { %v329_v41 = vsub.f32 %v324_v37, %v327_v40  ;;  %v489_v40 = vld [vmem:[%s11020_s2 + $0x130] sm:$0xff] }
 0x196   :  { %v330_v42 = vadd.f32 1e-05, %v329_v41  ;;  %v472_v41 = vld [vmem:[%s11020_s2 + $0xa8] sm:$0xff] }
 0x198   :  { %8239 = vrsqrt.f32 %v330_v42  ;;  %v456_v42 = vld [vmem:[%s11020_s2 + $0x28] sm:$0xff] }
 0x1a5   :  { %v8240_v49 = vpop.eup %8239 }
 0x1a6   :  { %v339_v50 = vrot.slane %v8240_v49, %v8560_v48  ;;  %v470_v49 = vld [vmem:[%s11020_s2 + $0x98] sm:$0xff] }
 0x1a8   :  { %v340_v51 = vcombine.high %v339_v50, %v339_v50  ;;  %v454_v50 = vld [vmem:[%s11020_s2 + $0x18] sm:$0xff] }
 0x1aa   :  { %v347_v53 = vrot.slane %v340_v51, %v8560_v48  ;;  %v486_v51 = vld [vmem:[%s11020_s2 + $0x118] sm:$0xff] }
 0x1ac   :  { %v349_v54 = vmul.f32 %v347_v53, %v101_v52  ;;  %v469_v52 = vld [vmem:[%s11020_s2 + $0x90] sm:$0xff] }
 0x1ad   :  { %v453_v53 = vld [vmem:[%s11020_s2 + $0x10] sm:$0xff] }
 0x1ae   :  { %v350_v56 = vmul.f32 %v349_v54, %v324_v37  ;;  %v490_v37 = vld [vmem:[%s11020_s2 + $0x138] sm:$0xff] }
 0x1af   :  { %7286 = vmatprep.subr.mxu0 %v490_v37 }
 0x1b0   :  { %v351_v58 = vsub.f32 %v102_v55, %v350_v56  ;;  %7287 = vmatpush3.msra.mxu0 %v490_v37  ;;  %v468_v55 = vld [vmem:[%s11020_s2 + $0x88] sm:$0xff] }
 0x1b1   :  { %7288 = vmatprep.subr.mxu0 %v489_v40  ;;  %v452_v56 = vld [vmem:[%s11020_s2 + $0x8] sm:$0xff] }
 0x1b2   :  { %v356_v59 = vrot.slane %v351_v58, %v8571_v57  ;;  %7289 = vmatpush3.msra.mxu0 %v489_v40  ;;  %v484_v58 = vld [vmem:[%s11020_s2 + $0x108] sm:$0xff] }
 0x1b3   :  { %7290 = vmatprep.subr.mxu0 %v488_v43 }
 0x1b4   :  { %v358_v61 = vsel %vm252_vm2, %v349_v54, %v356_v59  ;;  %7291 = vmatpush3.msra.mxu0 %v488_v43  ;;  %v485_v54 = vld [vmem:[%s11020_s2 + $0x110] sm:$0xff]  ;;  %v467_v59 = vld [vmem:[%s11020_s2 + $0x80] sm:$0xff] }
 0x1b5   :  { %7268 = vmatmul.mubr.msk.f32.vlgmr.msra.gmra.mxu1 %vm359_vm4, %v358_v61  ;;  %7292 = vmatprep.subr.mxu0 %v487_v47  ;;  %v483_v61 = vld [vmem:[%s11020_s2 + $0x100] sm:$0xff] }
 0x1b6   :  { %6445 = vmatpush3.msra.mxu1 %v466_v60  ;;  %7293 = vmatpush3.msra.mxu0 %v487_v47  ;;  %v451_v60 = vld [vmem:[%s11020_s2] sm:$0xff] }
 0x1b7   :  { %6446 = vmatprep.subr.mxu1 %v481_v62  ;;  %7294 = vmatprep.subr.mxu0 %v486_v51  ;;  %v8701_v62 = vsub.s32 1, %v8557_v46 }
 0x1b8   :  { %6447 = vmatpush3.msra.mxu1 %v465_v63  ;;  %7295 = vmatpush3.msra.mxu0 %v486_v51 }
 0x1b9   :  { %6448 = vmatprep.subr.mxu1 %v480_v4  ;;  %7296 = vmatprep.subr.mxu0 %v485_v54 }
 0x1ba   :  { %6449 = vmatpush3.msra.mxu1 %v464_v5  ;;  %7297 = vmatpush3.msra.mxu0 %v485_v54 }
 0x1bb   :  { %6450 = vmatprep.subr.mxu1 %v479_v22  ;;  %7298 = vmatprep.subr.mxu0 %v484_v58 }
 0x1bc   :  { %6451 = vmatpush3.msra.mxu1 %v463_v23  ;;  %7299 = vmatpush3.msra.mxu0 %v484_v58 }
 0x1bd   :  { %6452 = vmatprep.subr.mxu1 %v478_v24  ;;  %7300 = vmatprep.subr.mxu0 %v483_v61 }
 0x1be   :  { %6453 = vmatpush3.msra.mxu1 %v462_v25  ;;  %7301 = vmatpush3.msra.mxu0 %v483_v61  ;;  %v60_v25 = vadd.s32 8, %v8557_v46 }
 0x1bf   :  { %6454 = vmatprep.subr.mxu1 %v477_v26 }
 0x1c0   :  { %6455 = vmatpush3.msra.mxu1 %v461_v27 }
 0x1c1   :  { %6456 = vmatprep.subr.mxu1 %v476_v29 }
 0x1c2   :  { %6457 = vmatpush3.msra.mxu1 %v460_v30 }
 0x1c3   :  { %6458 = vmatprep.subr.mxu1 %v475_v32  ;;  %v72_v32 = vand.u32 7, %v60_v25  ;;  %v6043_v25 = vld [vmem:[%s11020_s2 + $0x1f0] sm:$0xff] }
 0x1c4   :  { %6459 = vmatpush3.msra.mxu1 %v459_v33  ;;  %v8710_v33 = vsel %vm85_vm5, 1.0, %v8312_v0 }
 0x1c5   :  { %6460 = vmatprep.subr.mxu1 %v474_v35  ;;  %vm92_vm7 = vcmp.ne.s32.totalorder %v72_v32, 7  ;;  %vm86_vm8 = vcmp.ne.s32.totalorder %v72_v32, 0  ;;  %v6040_v32 = vld [vmem:[%s11020_s2 + $0x1d8] sm:$0xff] }
 0x1c6   :  { %6461 = vmatpush3.msra.mxu1 %v458_v36  ;;  %v8716_v35 = vsel %vm92_vm7, 1.0, %v8312_v0 }
 0x1c7   :  { %6462 = vmatprep.subr.mxu1 %v473_v38 }
 0x1c8   :  { %6463 = vmatpush3.msra.mxu1 %v457_v39 }
 0x1c9   :  { %6464 = vmatprep.subr.mxu1 %v472_v41 }
 0x1ca   :  { %6465 = vmatpush3.msra.mxu1 %v456_v42  ;;  %v8722_v42 = vsel %vm86_vm8, 1.0, %v8312_v0 }
 0x1cb   :  { %6466 = vmatprep.subr.mxu1 %v471_v44 }
 0x1cc   :  { %6467 = vmatpush3.msra.mxu1 %v455_v45 }
 0x1cd   :  { %6468 = vmatprep.subr.mxu1 %v470_v49 }
 0x1ce   :  { %6469 = vmatpush3.msra.mxu1 %v454_v50 }
 0x1cf   :  { %6470 = vmatprep.subr.mxu1 %v469_v52 }
 0x1d0   :  { %6471 = vmatpush3.msra.mxu1 %v453_v53 }
 0x1d1   :  { %6472 = vmatprep.subr.mxu1 %v468_v55 }
 0x1d2   :  { %6473 = vmatpush3.msra.mxu1 %v452_v56 }
 0x1d3   :  { %6474 = vmatprep.subr.mxu1 %v467_v59 }
 0x1d4   :  { %6475 = vmatpush3.msra.mxu1 %v451_v60 }
 0x1d5   :  { %7305 = vmatprep.subr.mxu1 %v8312_v0 }
 0x275   :  { %v433_v63 = vpop.f32.mrf.mxu1 }
 0x276   :  { %v440_v4 = vrot.slane %v433_v63, %v8571_v57  ;;  %v446_v24 = vrot.slane %v433_v63, %v8701_v62 }
 0x277   :  { %v7269_v5 = vpop.f32.mrf.mxu1 }
 0x278   :  { %v441_v22 = vmul.f32 %v440_v4, %v8392_v2  ;;  %v442_v23 = vmul.f32 %v440_v4, %v8387_v1  ;;  %v6060_v5 = vld [vmem:[%s11020_s2 + $0x278] sm:$0xff] }
 0x279   :  { %6525 = vmatprep.subr.mxu0 %v6060_v5  ;;  %v6072_v5 = vld [vmem:[%s11020_s2 + $0x2d8] sm:$0xff] }
 0x27a   :  { %v447_v26 = vadd.f32 %v446_v24, %v441_v22  ;;  %v448_v27 = vadd.f32 %v446_v24, %v442_v23  ;;  %v6044_v22 = vld [vmem:[%s11020_s2 + $0x1f8] sm:$0xff]  ;;  %v6059_v24 = vld [vmem:[%s11020_s2 + $0x270] sm:$0xff] }
 0x27b   :  { %v6076_v23 = vld [vmem:[%s11020_s2 + $0x2f8] sm:$0xff] }
 0x27c   :  { %v450_v29 = vmax.f32 %v448_v27, 0.0  ;;  %v449_v30 = vmax.f32 %v447_v26, 0.0  ;;  %v6058_v26 = vld [vmem:[%s11020_s2 + $0x268] sm:$0xff] }
 0x27d   :  { %v6042_v27 = vld [vmem:[%s11020_s2 + $0x1e8] sm:$0xff] }
 0x27e   :  { %500 = vst [vmem:[#allocation2 + $0x10] sm:$0xff] %v450_v29  ;;  %499 = vst [vmem:[#allocation2 + $0x8] sm:$0xff] %v449_v30  ;;  %573 = vmatprep.mubr.f32.mxu1 %v449_v30  ;;  %v6041_v30 = vld [vmem:[%s11020_s2 + $0x1e0] sm:$0xff] }
 0x285   :  { %v505_v36 = vld [vmem:[#allocation2 + $0x9] sm:$0xff]  ;;  %v506_v39 = vld [vmem:[#allocation2 + $0x11] sm:$0xff] }
 0x286   :  { %v501_v37 = vld [vmem:[#allocation2 + $0x7] sm:$0xff]  ;;  %v507_v38 = vmul.f32 %v8713_v34, %v505_v36  ;;  %v502_v40 = vld [vmem:[#allocation2 + $0xf] sm:$0xff]  ;;  %v508_v41 = vmul.f32 %v8716_v35, %v506_v39 }
 0x287   :  { %v503_v46 = vmul.f32 %v8710_v33, %v501_v37  ;;  %v504_v43 = vmul.f32 %v8722_v42, %v502_v40  ;;  %v6055_v36 = vld [vmem:[%s11020_s2 + $0x250] sm:$0xff] }
 0x288   :  { %7302 = vmatprep.mubr.f32.mxu0 %v507_v38  ;;  %v6039_v37 = vld [vmem:[%s11020_s2 + $0x1d0] sm:$0xff] }
 0x289   :  { %574 = vmatmul.mubr.f32.vlgmr.msra.gmra.mxu1 %v503_v46  ;;  %7303 = vmatmul.mubr.f32.vlgmr.msra.gmra.mxu0 %v508_v41  ;;  %v6054_v46 = vld [vmem:[%s11020_s2 + $0x248] sm:$0xff] }
 0x28a   :  { %578 = vmatprep.mubr.f32.mxu1 %v450_v29  ;;  %6526 = vmatpush3.msra.mxu0 %v6044_v22  ;;  %v6057_v29 = vld [vmem:[%s11020_s2 + $0x260] sm:$0xff]  ;;  %v6071_v22 = vld [vmem:[%s11020_s2 + $0x2d0] sm:$0xff] }
 0x28b   :  { %6527 = vmatprep.subr.mxu0 %v6059_v24  ;;  %v6070_v24 = vld [vmem:[%s11020_s2 + $0x2c8] sm:$0xff] }
 0x28c   :  { %6528 = vmatpush3.msra.mxu0 %v6043_v25  ;;  %v6053_v25 = vld [vmem:[%s11020_s2 + $0x240] sm:$0xff] }
 0x28d   :  { %579 = vmatmul.mubr.f32.gmra.mxu1 %v504_v43  ;;  %6529 = vmatprep.subr.mxu0 %v6058_v26  ;;  %v6037_v26 = vld [vmem:[%s11020_s2 + $0x1c0] sm:$0xff] }
 0x28e   :  { %7309 = vmatprep.mubr.msk.f32.mxu1 %vm8313_vm0, %v8312_v0  ;;  %6530 = vmatpush3.msra.mxu0 %v6042_v27  ;;  %v6069_v27 = vld [vmem:[%s11020_s2 + $0x2c0] sm:$0xff] }
 0x28f   :  { %6531 = vmatprep.subr.mxu0 %v6057_v29  ;;  %v6052_v29 = vld [vmem:[%s11020_s2 + $0x238] sm:$0xff] }
 0x290   :  { %6532 = vmatpush3.msra.mxu0 %v6041_v30  ;;  %v6036_v30 = vld [vmem:[%s11020_s2 + $0x1b8] sm:$0xff] }
 0x291   :  { %6533 = vmatprep.subr.mxu0 %v6056_v31  ;;  %v6068_v31 = vld [vmem:[%s11020_s2 + $0x2b8] sm:$0xff] }
 0x292   :  { %6534 = vmatpush3.msra.mxu0 %v6040_v32  ;;  %v6051_v32 = vld [vmem:[%s11020_s2 + $0x230] sm:$0xff] }
 0x293   :  { %6535 = vmatprep.subr.mxu0 %v6055_v36  ;;  %v6035_v36 = vld [vmem:[%s11020_s2 + $0x1b0] sm:$0xff] }
 0x294   :  { %6536 = vmatpush3.msra.mxu0 %v6039_v37  ;;  %v6067_v37 = vld [vmem:[%s11020_s2 + $0x2b0] sm:$0xff] }
 0x295   :  { %6537 = vmatprep.subr.mxu0 %v6054_v46  ;;  %v6050_v46 = vld [vmem:[%s11020_s2 + $0x228] sm:$0xff] }
 0x349   :  { %v6476_v44 = vpop.f32.mrf.mxu1  ;;  %v7304_v47 = vpop.f32.mrf.mxu0 }
 0x34b   :  { %v6477_v45 = vpop.f32.mrf.mxu1  ;;  %v650_v53 = vpop.f32.mrf.mxu0 }
 0x34c   :  { %v6478_v51 = vadd.f32 %v6477_v45, %v6476_v44 }
 0x34d   :  { %v6479_v49 = vpop.f32.mrf.mxu1 }
 0x34e   :  { %v8729_v55 = vadd.f32 %v6478_v51, %v650_v53  ;;  %v659_v51 = vld [vmem:[%s11023_s5] sm:$0x1] }
 0x34f   :  { %v6480_v50 = vpop.f32.mrf.mxu1 }
 0x350   :  { %v6481_v52 = vadd.f32 %v6480_v50, %v6479_v49  ;;  %v731_v58 = vmul.f32 %v8729_v55, %v8729_v55 }
 0x352   :  { %v8727_v54 = vadd.f32 %v7304_v47, %v6481_v52 }
 0x354   :  { %7306 = vmatpush3.msra.mxu1 %v8727_v54  ;;  %v732_v56 = vmul.f32 %v8727_v54, %v8727_v54 }
 0x355   :  { %7307 = vmatprep.subr.mxu1 %v8312_v0 }
 0x356   :  { %7308 = vmatpush3.msra.mxu1 %v8729_v55 }
 0x357   :  { %7310 = vmatmul.mubr.msk.f32.vlgmr.msra.gmra.mxu1 %vm103_vm1, %v8314_v7  ;;  %7312 = vmatprep.subr.mxu1 %v8312_v0 }
 0x358   :  { %7313 = vmatpush3.msra.mxu1 %v732_v56  ;;  %7316 = vmatprep.mubr.msk.f32.mxu1 %vm8313_vm0, %v8312_v0  ;;  %v660_v56 = vld [vmem:[%s11024_s6] sm:$0x1] }
 0x359   :  { %7314 = vmatprep.subr.mxu1 %v8312_v0 }
 0x35a   :  { %7315 = vmatpush3.msra.mxu1 %v731_v58 }
 0x35b   :  { %7317 = vmatmul.mubr.msk.f32.vlgmr.msra.gmra.mxu1 %vm103_vm1, %v8314_v7  ;;  %7319 = vmatprep.subr.mxu1 %v8312_v0 }
 0x35c   :  { %7320 = vmatpush3.msra.mxu1 %v8399_v3  ;;  %7351 = vmatprep.mubr.msk.f32.mxu1 %vm8313_vm0, %v8312_v0 }
 0x35d   :  { %7321 = vmatprep.subr.mxu1 %v8312_v0 }
 0x35e   :  { %7322 = vmatpush3.msra.mxu1 %v8414_v6 }
 0x35f   :  { %7323 = vmatprep.subr.mxu1 %v8312_v0 }
 0x360   :  { %7324 = vmatpush3.msra.mxu1 %v8424_v8 }
 0x361   :  { %7325 = vmatprep.subr.mxu1 %v8312_v0 }
 0x362   :  { %7326 = vmatpush3.msra.mxu1 %v8432_v9 }
 0x363   :  { %7327 = vmatprep.subr.mxu1 %v8312_v0 }
 0x364   :  { %7328 = vmatpush3.msra.mxu1 %v8441_v10 }
 0x365   :  { %7329 = vmatprep.subr.mxu1 %v8312_v0 }
 0x366   :  { %7330 = vmatpush3.msra.mxu1 %v8451_v11 }
 0x367   :  { %7331 = vmatprep.subr.mxu1 %v8312_v0 }
 0x368   :  { %7332 = vmatpush3.msra.mxu1 %v8460_v12 }
 0x369   :  { %7333 = vmatprep.subr.mxu1 %v8312_v0 }
 0x36a   :  { %7334 = vmatpush3.msra.mxu1 %v8467_v13 }
 0x36b   :  { %7335 = vmatprep.subr.mxu1 %v8312_v0 }
 0x36c   :  { %7336 = vmatpush3.msra.mxu1 %v8474_v14 }
 0x36d   :  { %7337 = vmatprep.subr.mxu1 %v8312_v0 }
 0x36e   :  { %7338 = vmatpush3.msra.mxu1 %v8481_v15 }
 0x36f   :  { %7339 = vmatprep.subr.mxu1 %v8312_v0 }
 0x370   :  { %7340 = vmatpush3.msra.mxu1 %v8488_v16 }
 0x371   :  { %7341 = vmatprep.subr.mxu1 %v8312_v0 }
 0x372   :  { %7342 = vmatpush3.msra.mxu1 %v8495_v17 }
 0x373   :  { %7343 = vmatprep.subr.mxu1 %v8312_v0 }
 0x374   :  { %7344 = vmatpush3.msra.mxu1 %v8504_v18 }
 0x375   :  { %7345 = vmatprep.subr.mxu1 %v8312_v0 }
 0x376   :  { %7346 = vmatpush3.msra.mxu1 %v8511_v19 }
 0x377   :  { %7347 = vmatprep.subr.mxu1 %v8312_v0 }
 0x378   :  { %7348 = vmatpush3.msra.mxu1 %v8518_v20 }
 0x379   :  { %7349 = vmatprep.subr.mxu1 %v8312_v0 }
 0x37a   :  { %7350 = vmatpush3.msra.mxu1 %v8525_v21 }
 0x37b   :  { %7354 = vmatprep.subr.mxu1 %v8312_v0 }
 0x417   :  { %v727_v3 = vpop.f32.mrf.mxu1 }
 0x419   :  { %v7311_v59 = vpop.f32.mrf.mxu1 }
 0x41b   :  { %v799_v60 = vpop.f32.mrf.mxu1 }
 0x41c   :  { %v804_v61 = vrot.slane %v799_v60, 7 }
 0x41d   :  { %v7318_v63 = vpop.f32.mrf.mxu1 }
 0x41e   :  { %v806_v4 = vsel %vm252_vm2, %v727_v3, %v804_v61  ;;  %v6075_v61 = vld [vmem:[%s11020_s2 + $0x2f0] sm:$0xff]  ;;  %v6074_v63 = vld [vmem:[%s11020_s2 + $0x2e8] sm:$0xff] }
 0x41f   :  { %7352 = vmatmul.mubr.f32.vlgmr.msra.gmra.mxu1 %v806_v4  ;;  %v6073_v4 = vld [vmem:[%s11020_s2 + $0x2e0] sm:$0xff] }
 0x420   :  { %7355 = vmatpush3.msk.msra.mxu1 %vm363_vm3, %v8532_v28  ;;  %7356 = vmatprep.mubr.msk.f32.mxu1 %vm8313_vm0, %v8312_v0 }
 0x421   :  { %7359 = vmatprep.subr.mxu1 %v6076_v23 }
 0x4df   :  { %v873_v38 = vpop.f32.mrf.mxu1 }
 0x4e0   :  { %v877_v39 = vmul.f32 0.001953125, %v873_v38  ;;  %v6034_v38 = vld [vmem:[%s11020_s2 + $0x1a8] sm:$0xff] }
 0x4e1   :  { %v7353_v40 = vpop.f32.mrf.mxu1 }
 0x4e2   :  { %v878_v41 = vmul.f32 %v877_v39, %v877_v39  ;;  %v6049_v40 = vld [vmem:[%s11020_s2 + $0x220] sm:$0xff] }
 0x4e4   :  { %v880_v43 = vrot.slane %v878_v41, 7  ;;  %v6033_v41 = vld [vmem:[%s11020_s2 + $0x1a0] sm:$0xff] }
 0x4e6   :  { %v882_v44 = vsub.f32 %v877_v39, %v880_v43  ;;  %v6065_v43 = vld [vmem:[%s11020_s2 + $0x2a0] sm:$0xff] }
 0x4e8   :  { %v883_v45 = vadd.f32 1e-05, %v882_v44  ;;  %v6048_v44 = vld [vmem:[%s11020_s2 + $0x218] sm:$0xff] }
 0x4ea   :  { %8241 = vrsqrt.f32 %v883_v45  ;;  %v6032_v45 = vld [vmem:[%s11020_s2 + $0x198] sm:$0xff] }
 0x4f7   :  { %v8242_v47 = vpop.eup %8241 }
 0x4f8   :  { %v892_v49 = vrot.slane %v8242_v47, %v8560_v48  ;;  %v6064_v47 = vld [vmem:[%s11020_s2 + $0x298] sm:$0xff] }
 0x4fa   :  { %v893_v50 = vcombine.high %v892_v49, %v892_v49  ;;  %v6047_v49 = vld [vmem:[%s11020_s2 + $0x210] sm:$0xff] }
 0x4fc   :  { %v900_v52 = vrot.slane %v893_v50, %v8560_v48  ;;  %v6031_v50 = vld [vmem:[%s11020_s2 + $0x190] sm:$0xff] }
 0x4fe   :  { %v902_v53 = vmul.f32 %v900_v52, %v659_v51  ;;  %v6063_v51 = vld [vmem:[%s11020_s2 + $0x290] sm:$0xff]  ;;  %v6046_v52 = vld [vmem:[%s11020_s2 + $0x208] sm:$0xff] }
 0x500   :  { %v903_v58 = vmul.f32 %v902_v53, %v877_v39  ;;  %v6066_v39 = vld [vmem:[%s11020_s2 + $0x2a8] sm:$0xff] }
 0x502   :  { %v904_v3 = vsub.f32 %v660_v56, %v903_v58  ;;  %v6062_v56 = vld [vmem:[%s11020_s2 + $0x288] sm:$0xff]  ;;  %v6045_v58 = vld [vmem:[%s11020_s2 + $0x200] sm:$0xff] }
 0x504   :  { %v909_v59 = vrot.slane %v904_v3, %v8571_v57  ;;  %v6029_v3 = vld [vmem:[%s11020_s2 + $0x180] sm:$0xff] }
 0x506   :  { %v911_v60 = vsel %vm252_vm2, %v902_v53, %v909_v59  ;;  %v6030_v53 = vld [vmem:[%s11020_s2 + $0x188] sm:$0xff]  ;;  %v6061_v59 = vld [vmem:[%s11020_s2 + $0x280] sm:$0xff] }
 0x507   :  { %7357 = vmatmul.mubr.msk.f32.vlgmr.msra.gmra.mxu1 %vm359_vm4, %v911_v60 }
 0x508   :  { %7360 = vmatpush3.msra.mxu1 %v6076_v23  ;;  %v6038_v23 = vld [vmem:[%s11020_s2 + $0x1c8] sm:$0xff] }
 0x509   :  { %7361 = vmatprep.subr.mxu1 %v6075_v61  ;;  %6538 = vmatpush3.msra.mxu0 %v6038_v23 }
 0x50a   :  { %7362 = vmatpush3.msra.mxu1 %v6075_v61  ;;  %6539 = vmatprep.subr.mxu0 %v6053_v25 }
 0x50b   :  { %7363 = vmatprep.subr.mxu1 %v6074_v63  ;;  %6540 = vmatpush3.msra.mxu0 %v6037_v26 }
 0x50c   :  { %7364 = vmatpush3.msra.mxu1 %v6074_v63  ;;  %6541 = vmatprep.subr.mxu0 %v6052_v29 }
 0x50d   :  { %7365 = vmatprep.subr.mxu1 %v6073_v4  ;;  %6542 = vmatpush3.msra.mxu0 %v6036_v30 }
 0x50e   :  { %7366 = vmatpush3.msra.mxu1 %v6073_v4  ;;  %6543 = vmatprep.subr.mxu0 %v6051_v32 }
 0x50f   :  { %7367 = vmatprep.subr.mxu1 %v6072_v5  ;;  %6544 = vmatpush3.msra.mxu0 %v6035_v36 }
 0x510   :  { %7368 = vmatpush3.msra.mxu1 %v6072_v5  ;;  %6545 = vmatprep.subr.mxu0 %v6050_v46 }
 0x511   :  { %7369 = vmatprep.subr.mxu1 %v6071_v22  ;;  %6546 = vmatpush3.msra.mxu0 %v6034_v38 }
 0x512   :  { %7370 = vmatpush3.msra.mxu1 %v6071_v22  ;;  %6547 = vmatprep.subr.mxu0 %v6049_v40 }
 0x513   :  { %7371 = vmatprep.subr.mxu1 %v6070_v24  ;;  %6548 = vmatpush3.msra.mxu0 %v6033_v41 }
 0x514   :  { %7372 = vmatpush3.msra.mxu1 %v6070_v24  ;;  %6549 = vmatprep.subr.mxu0 %v6048_v44 }
 0x515   :  { %7373 = vmatprep.subr.mxu1 %v6069_v27  ;;  %6550 = vmatpush3.msra.mxu0 %v6032_v45 }
 0x516   :  { %7374 = vmatpush3.msra.mxu1 %v6069_v27  ;;  %6551 = vmatprep.subr.mxu0 %v6047_v49 }
 0x517   :  { %7375 = vmatprep.subr.mxu1 %v6068_v31  ;;  %6552 = vmatpush3.msra.mxu0 %v6031_v50 }
 0x518   :  { %7376 = vmatpush3.msra.mxu1 %v6068_v31  ;;  %6553 = vmatprep.subr.mxu0 %v6046_v52 }
 0x519   :  { %7377 = vmatprep.subr.mxu1 %v6067_v37  ;;  %6554 = vmatpush3.msra.mxu0 %v6030_v53 }
 0x51a   :  { %7378 = vmatpush3.msra.mxu1 %v6067_v37  ;;  %6555 = vmatprep.subr.mxu0 %v6045_v58 }
 0x51b   :  { %7379 = vmatprep.subr.mxu1 %v6066_v39  ;;  %6556 = vmatpush3.msra.mxu0 %v6029_v3 }
 0x51c   :  { %7380 = vmatpush3.msra.mxu1 %v6066_v39  ;;  %7394 = vmatprep.subr.mxu0 %v8312_v0 }
 0x51d   :  { %7381 = vmatprep.subr.mxu1 %v6065_v43 }
 0x51e   :  { %7382 = vmatpush3.msra.mxu1 %v6065_v43 }
 0x51f   :  { %7383 = vmatprep.subr.mxu1 %v6064_v47 }
 0x520   :  { %7384 = vmatpush3.msra.mxu1 %v6064_v47 }
 0x521   :  { %7385 = vmatprep.subr.mxu1 %v6063_v51 }
 0x522   :  { %7386 = vmatpush3.msra.mxu1 %v6063_v51 }
 0x523   :  { %7387 = vmatprep.subr.mxu1 %v6062_v56 }
 0x524   :  { %7388 = vmatpush3.msra.mxu1 %v6062_v56 }
 0x525   :  { %7389 = vmatprep.subr.mxu1 %v6061_v59 }
 0x526   :  { %7390 = vmatpush3.msra.mxu1 %v6061_v59 }
 0x527   :  { %7443 = vmatprep.subr.mxu1 %v8312_v0 }
 0x5c7   :  { %v981_v60 = vpop.f32.mrf.mxu1 }
 0x5c8   :  { %v988_v61 = vrot.slane %v981_v60, %v8571_v57  ;;  %v994_v22 = vrot.slane %v981_v60, %v8701_v62 }
 0x5c9   :  { %v7358_v63 = vpop.f32.mrf.mxu1 }
 0x5ca   :  { %v989_v4 = vmul.f32 %v988_v61, %v8729_v55  ;;  %v990_v5 = vmul.f32 %v988_v61, %v8727_v54  ;;  %v6077_v61 = vld [vmem:[%s11021_s3 + $0x1] sm:$0x1] }
 0x5cc   :  { %v995_v23 = vadd.f32 %v994_v22, %v989_v4  ;;  %v996_v24 = vadd.f32 %v994_v22, %v990_v5  ;;  %v6078_v5 = vld [vmem:[%s11022_s4 + $0x1] sm:$0x1] }
 0x5ce   :  { %v998_v25 = vmax.f32 %v996_v24, 0.0  ;;  %v997_v26 = vmax.f32 %v995_v23, 0.0 }
 0x5d0   :  { %1049 = vst [vmem:[#allocation2 + $0x10] sm:$0xff] %v998_v25  ;;  %1048 = vst [vmem:[#allocation2 + $0x8] sm:$0xff] %v997_v26  ;;  %1122 = vmatprep.mubr.f32.mxu0 %v997_v26 }
 0x5d7   :  { %v1050_v27 = vld [vmem:[#allocation2 + $0x7] sm:$0xff]  ;;  %v1055_v30 = vld [vmem:[#allocation2 + $0x11] sm:$0xff] }
 0x5d8   :  { %v1054_v29 = vld [vmem:[#allocation2 + $0x9] sm:$0xff]  ;;  %v1052_v31 = vmul.f32 %v8710_v33, %v1050_v27  ;;  %v1057_v55 = vmul.f32 %v8716_v35, %v1055_v30 }
 0x5d9   :  { %v1056_v32 = vmul.f32 %v8713_v34, %v1054_v29  ;;  %v1051_v36 = vld [vmem:[#allocation2 + $0xf] sm:$0xff] }
 0x5da   :  { %1123 = vmatmul.mubr.f32.vlgmr.msra.gmra.mxu0 %v1052_v31  ;;  %v1053_v54 = vmul.f32 %v8722_v42, %v1051_v36  ;;  %v6113_v27 = vld [vmem:[%s11020_s2 + $0x3f0] sm:$0xff]  ;;  %v6112_v30 = vld [vmem:[%s11020_s2 + $0x3e8] sm:$0xff]  ;;  %v6110_v36 = vld [vmem:[%s11020_s2 + $0x3d8] sm:$0xff] }
 0x5db   :  { %7391 = vmatprep.mubr.f32.mxu1 %v1056_v32  ;;  %1127 = vmatprep.mubr.f32.mxu0 %v998_v25  ;;  %v6098_v25 = vld [vmem:[%s11020_s2 + $0x378] sm:$0xff]  ;;  %v6097_v29 = vld [vmem:[%s11020_s2 + $0x370] sm:$0xff]  ;;  %v6096_v31 = vld [vmem:[%s11020_s2 + $0x368] sm:$0xff] }
 0x5dc   :  { %7392 = vmatmul.mubr.f32.vlgmr.msra.gmra.mxu1 %v1057_v55  ;;  %v6111_v32 = vld [vmem:[%s11020_s2 + $0x3e0] sm:$0xff] }
 0x5dd   :  { %7444 = vmatpush3.msk.msra.mxu1 %vm363_vm3, %v8532_v28  ;;  %7445 = vmatprep.mubr.msk.f32.mxu1 %vm8313_vm0, %v8312_v0  ;;  %v6095_v55 = vld [vmem:[%s11020_s2 + $0x360] sm:$0xff] }
 0x5de   :  { %1128 = vmatmul.mubr.f32.gmra.mxu0 %v1053_v54  ;;  %v6094_v54 = vld [vmem:[%s11020_s2 + $0x358] sm:$0xff] }
 0x5df   :  { %7398 = vmatprep.mubr.msk.f32.mxu0 %vm8313_vm0, %v8312_v0 }
 0x69a   :  { %v6557_v37 = vpop.f32.mrf.mxu0 }
 0x69c   :  { %v7393_v46 = vpop.f32.mrf.mxu1  ;;  %v6558_v38 = vpop.f32.mrf.mxu0 }
 0x69d   :  { %v6559_v40 = vadd.f32 %v6558_v38, %v6557_v37  ;;  %v6109_v37 = vld [vmem:[%s11020_s2 + $0x3d0] sm:$0xff]  ;;  %v6108_v38 = vld [vmem:[%s11020_s2 + $0x3c8] sm:$0xff] }
 0x69e   :  { %v6560_v39 = vpop.f32.mrf.mxu0  ;;  %v1199_v41 = vpop.f32.mrf.mxu1 }
 0x69f   :  { %v1200_v45 = vadd.f32 %v6559_v40, %v1199_v41  ;;  %v6124_v40 = vld [vmem:[%s11020_s2 + $0x448] sm:$0xff]  ;;  %v6107_v41 = vld [vmem:[%s11020_s2 + $0x3c0] sm:$0xff] }
 0x6a0   :  { %v6561_v43 = vpop.f32.mrf.mxu0 }
 0x6a1   :  { %v6562_v44 = vadd.f32 %v6561_v43, %v6560_v39  ;;  %v8961_v28 = vadd.f32 %v1200_v45, %v8392_v2  ;;  %v8982_v2 = vld [vmem:[%s11018_s10 + $0x78] sm:$0xff]  ;;  %v6092_v39 = vld [vmem:[%s11020_s2 + $0x348] sm:$0xff]  ;;  %v6091_v43 = vld [vmem:[%s11020_s2 + $0x340] sm:$0xff] }
 0x6a2   :  { %v6106_v45 = vld [vmem:[%s11020_s2 + $0x3b8] sm:$0xff] }
 0x6a3   :  { %v1205_v47 = vadd.f32 %v7393_v46, %v6562_v44  ;;  %v6093_v46 = vld [vmem:[%s11020_s2 + $0x350] sm:$0xff]  ;;  %v6123_v44 = vld [vmem:[%s11020_s2 + $0x440] sm:$0xff] }
 0x6a5   :  { %v8958_v49 = vadd.f32 %v1205_v47, %v8387_v1  ;;  %v1284_v1 = vmul.f32 %v8961_v28, %v8961_v28  ;;  %v6090_v47 = vld [vmem:[%s11020_s2 + $0x338] sm:$0xff] }
 0x6a7   :  { %7395 = vmatpush3.msra.mxu0 %v8958_v49  ;;  %v1285_v50 = vmul.f32 %v8958_v49, %v8958_v49 }
 0x6a8   :  { %7396 = vmatprep.subr.mxu0 %v8312_v0 }
 0x6a9   :  { %7397 = vmatpush3.msra.mxu0 %v8961_v28 }
 0x6aa   :  { %7399 = vmatmul.mubr.msk.f32.vlgmr.msra.gmra.mxu0 %vm103_vm1, %v8314_v7  ;;  %7401 = vmatprep.subr.mxu0 %v8312_v0 }
 0x6ab   :  { %7402 = vmatpush3.msra.mxu0 %v1285_v50  ;;  %7405 = vmatprep.mubr.msk.f32.mxu0 %vm8313_vm0, %v8312_v0  ;;  %v6122_v50 = vld [vmem:[%s11020_s2 + $0x438] sm:$0xff] }
 0x6ac   :  { %7403 = vmatprep.subr.mxu0 %v8312_v0 }
 0x6ad   :  { %7404 = vmatpush3.msra.mxu0 %v1284_v1  ;;  %v6105_v1 = vld [vmem:[%s11020_s2 + $0x3b0] sm:$0xff] }
 0x6ae   :  { %7406 = vmatmul.mubr.msk.f32.vlgmr.msra.gmra.mxu0 %vm103_vm1, %v8314_v7  ;;  %7408 = vmatprep.subr.mxu0 %v8312_v0 }
 0x6af   :  { %7409 = vmatpush3.msra.mxu0 %v8982_v2  ;;  %7440 = vmatprep.mubr.msk.f32.mxu0 %vm8313_vm0, %v8312_v0 }
 0x6b0   :  { %7410 = vmatprep.subr.mxu0 %v8312_v0 }
 0x6b1   :  { %7411 = vmatpush3.msra.mxu0 %v8414_v6 }
 0x6b2   :  { %7412 = vmatprep.subr.mxu0 %v8312_v0 }
 0x6b3   :  { %7413 = vmatpush3.msra.mxu0 %v8424_v8 }
 0x6b4   :  { %7414 = vmatprep.subr.mxu0 %v8312_v0 }
 0x6b5   :  { %7415 = vmatpush3.msra.mxu0 %v8432_v9 }
 0x6b6   :  { %7416 = vmatprep.subr.mxu0 %v8312_v0 }
 0x6b7   :  { %7417 = vmatpush3.msra.mxu0 %v8441_v10 }
 0x6b8   :  { %7418 = vmatprep.subr.mxu0 %v8312_v0 }
 0x6b9   :  { %7419 = vmatpush3.msra.mxu0 %v8451_v11 }
 0x6ba   :  { %7420 = vmatprep.subr.mxu0 %v8312_v0 }
 0x6bb   :  { %7421 = vmatpush3.msra.mxu0 %v8460_v12 }
 0x6bc   :  { %7422 = vmatprep.subr.mxu0 %v8312_v0 }
 0x6bd   :  { %7423 = vmatpush3.msra.mxu0 %v8467_v13  ;;  %v6114_v13 = vld [vmem:[%s11020_s2 + $0x3f8] sm:$0xff] }
 0x6be   :  { %7424 = vmatprep.subr.mxu0 %v8312_v0  ;;  %6606 = vmatprep.subr.mxu1 %v6114_v13  ;;  %v6087_v13 = vld [vmem:[%s11020_s2 + $0x320] sm:$0xff] }
 0x6bf   :  { %7425 = vmatpush3.msra.mxu0 %v8474_v14  ;;  %v6130_v14 = vld [vmem:[%s11020_s2 + $0x478] sm:$0xff] }
 0x6c0   :  { %7426 = vmatprep.subr.mxu0 %v8312_v0 }
 0x6c1   :  { %7427 = vmatpush3.msra.mxu0 %v8481_v15  ;;  %v6129_v15 = vld [vmem:[%s11020_s2 + $0x470] sm:$0xff] }
 0x6c2   :  { %7428 = vmatprep.subr.mxu0 %v8312_v0 }
 0x6c3   :  { %7429 = vmatpush3.msra.mxu0 %v8488_v16  ;;  %v6128_v16 = vld [vmem:[%s11020_s2 + $0x468] sm:$0xff] }
 0x6c4   :  { %7430 = vmatprep.subr.mxu0 %v8312_v0 }
 0x6c5   :  { %7431 = vmatpush3.msra.mxu0 %v8495_v17  ;;  %v6127_v17 = vld [vmem:[%s11020_s2 + $0x460] sm:$0xff] }
 0x6c6   :  { %7432 = vmatprep.subr.mxu0 %v8312_v0 }
 0x6c7   :  { %7433 = vmatpush3.msra.mxu0 %v8504_v18  ;;  %v6126_v18 = vld [vmem:[%s11020_s2 + $0x458] sm:$0xff] }
 0x6c8   :  { %7434 = vmatprep.subr.mxu0 %v8312_v0 }
 0x6c9   :  { %7435 = vmatpush3.msra.mxu0 %v8511_v19  ;;  %v6125_v19 = vld [vmem:[%s11020_s2 + $0x450] sm:$0xff] }
 0x6ca   :  { %7436 = vmatprep.subr.mxu0 %v8312_v0 }
 0x6cb   :  { %7437 = vmatpush3.msra.mxu0 %v8518_v20 }
 0x6cc   :  { %7438 = vmatprep.subr.mxu0 %v8312_v0 }
 0x6cd   :  { %7439 = vmatpush3.msra.mxu0 %v8525_v21 }
 0x6ce   :  { %7448 = vmatprep.subr.mxu0 %v6130_v14 }
 0x76a   :  { %v1280_v6 = vpop.f32.mrf.mxu0 }
 0x76c   :  { %v7400_v8 = vpop.f32.mrf.mxu0 }
 0x76d   :  { %v6121_v8 = vld [vmem:[%s11020_s2 + $0x430] sm:$0xff] }
 0x76e   :  { %v1352_v9 = vpop.f32.mrf.mxu0 }
 0x76f   :  { %v1357_v10 = vrot.slane %v1352_v9, 7  ;;  %v6104_v9 = vld [vmem:[%s11020_s2 + $0x3a8] sm:$0xff] }
 0x770   :  { %v7407_v11 = vpop.f32.mrf.mxu0 }
 0x771   :  { %v1359_v12 = vsel %vm252_vm2, %v1280_v6, %v1357_v10  ;;  %v6089_v6 = vld [vmem:[%s11020_s2 + $0x330] sm:$0xff]  ;;  %v6088_v10 = vld [vmem:[%s11020_s2 + $0x328] sm:$0xff] }
 0x772   :  { %7441 = vmatmul.mubr.f32.vlgmr.msra.gmra.mxu0 %v1359_v12  ;;  %v6120_v11 = vld [vmem:[%s11020_s2 + $0x428] sm:$0xff]  ;;  %v6103_v12 = vld [vmem:[%s11020_s2 + $0x3a0] sm:$0xff] }
 0x773   :  { %7449 = vmatpush3.msra.mxu0 %v6130_v14  ;;  %v6119_v14 = vld [vmem:[%s11020_s2 + $0x420] sm:$0xff] }
 0x774   :  { %7450 = vmatprep.subr.mxu0 %v6129_v15 }
 0x775   :  { %7451 = vmatpush3.msra.mxu0 %v6129_v15  ;;  %v6102_v15 = vld [vmem:[%s11020_s2 + $0x398] sm:$0xff] }
 0x776   :  { %7452 = vmatprep.subr.mxu0 %v6128_v16 }
 0x777   :  { %7453 = vmatpush3.msra.mxu0 %v6128_v16  ;;  %v6086_v16 = vld [vmem:[%s11020_s2 + $0x318] sm:$0xff] }
 0x778   :  { %7454 = vmatprep.subr.mxu0 %v6127_v17 }
 0x779   :  { %7455 = vmatpush3.msra.mxu0 %v6127_v17  ;;  %v6118_v17 = vld [vmem:[%s11020_s2 + $0x418] sm:$0xff] }
 0x77a   :  { %7456 = vmatprep.subr.mxu0 %v6126_v18 }
 0x77b   :  { %7457 = vmatpush3.msra.mxu0 %v6126_v18  ;;  %v6101_v18 = vld [vmem:[%s11020_s2 + $0x390] sm:$0xff] }
 0x77c   :  { %7458 = vmatprep.subr.mxu0 %v6125_v19 }
 0x77d   :  { %7459 = vmatpush3.msra.mxu0 %v6125_v19  ;;  %v6085_v19 = vld [vmem:[%s11020_s2 + $0x310] sm:$0xff] }
 0x77e   :  { %7460 = vmatprep.subr.mxu0 %v6124_v40 }
 0x77f   :  { %7461 = vmatpush3.msra.mxu0 %v6124_v40 }
 0x780   :  { %7462 = vmatprep.subr.mxu0 %v6123_v44 }
 0x781   :  { %7463 = vmatpush3.msra.mxu0 %v6123_v44 }
 0x782   :  { %7464 = vmatprep.subr.mxu0 %v6122_v50 }
 0x783   :  { %7465 = vmatpush3.msra.mxu0 %v6122_v50 }
 0x784   :  { %7466 = vmatprep.subr.mxu0 %v6121_v8 }
 0x785   :  { %7467 = vmatpush3.msra.mxu0 %v6121_v8  ;;  %v9235_v8 = vld [vmem:[%s11018_s10 + $0x60] sm:$0xff] }
 0x786   :  { %7468 = vmatprep.subr.mxu0 %v6120_v11 }
 0x787   :  { %7469 = vmatpush3.msra.mxu0 %v6120_v11  ;;  %v9256_v11 = vld [vmem:[%s11018_s10 + $0x48] sm:$0xff] }
 0x788   :  { %7470 = vmatprep.subr.mxu0 %v6119_v14 }
 0x789   :  { %7471 = vmatpush3.msra.mxu0 %v6119_v14  ;;  %v9277_v14 = vld [vmem:[%s11018_s10 + $0x30] sm:$0xff] }
 0x78a   :  { %7472 = vmatprep.subr.mxu0 %v6118_v17 }
 0x78b   :  { %7473 = vmatpush3.msra.mxu0 %v6118_v17  ;;  %v9298_v17 = vld [vmem:[%s11018_s10 + $0x18] sm:$0xff] }
 0x832   :  { %v1426_v20 = vpop.f32.mrf.mxu0 }
 0x833   :  { %v1430_v21 = vmul.f32 0.001953125, %v1426_v20  ;;  %v6117_v20 = vld [vmem:[%s11020_s2 + $0x410] sm:$0xff] }
 0x834   :  { %v7442_v51 = vpop.f32.mrf.mxu0  ;;  %7474 = vmatprep.subr.mxu0 %v6117_v20 }
 0x835   :  { %v1431_v52 = vmul.f32 %v1430_v21, %v1430_v21  ;;  %v6084_v51 = vld [vmem:[%s11020_s2 + $0x308] sm:$0xff]  ;;  %7475 = vmatpush3.msra.mxu0 %v6117_v20  ;;  %v9319_v20 = vld [vmem:[%s11018_s10] sm:$0xff] }
 0x837   :  { %v1433_v53 = vrot.slane %v1431_v52, 7  ;;  %v6116_v52 = vld [vmem:[%s11020_s2 + $0x408] sm:$0xff] }
 0x838   :  { %7476 = vmatprep.subr.mxu0 %v6116_v52 }
 0x839   :  { %v1435_v56 = vsub.f32 %v1430_v21, %v1433_v53  ;;  %v6099_v53 = vld [vmem:[%s11020_s2 + $0x380] sm:$0xff]  ;;  %7477 = vmatpush3.msra.mxu0 %v6116_v52 }
 0x83b   :  { %v1436_v58 = vadd.f32 1e-05, %v1435_v56  ;;  %v6083_v56 = vld [vmem:[%s11020_s2 + $0x300] sm:$0xff] }
 0x83d   :  { %8243 = vrsqrt.f32 %v1436_v58  ;;  %v6115_v58 = vld [vmem:[%s11020_s2 + $0x400] sm:$0xff] }
 0x83e   :  { %7478 = vmatprep.subr.mxu0 %v6115_v58 }
 0x83f   :  { %7479 = vmatpush3.msra.mxu0 %v6115_v58 }
 0x840   :  { %7532 = vmatprep.subr.mxu0 %v8312_v0 }
 0x84a   :  { %v8244_v3 = vpop.eup %8243 }
 0x84b   :  { %v1445_v59 = vrot.slane %v8244_v3, %v8560_v48 }
 0x84d   :  { %v1446_v60 = vcombine.high %v1445_v59, %v1445_v59 }
 0x84f   :  { %v1453_v63 = vrot.slane %v1446_v60, %v8560_v48 }
 0x851   :  { %v1455_v4 = vmul.f32 %v6077_v61, %v1453_v63 }
 0x853   :  { %v1456_v22 = vmul.f32 %v1455_v4, %v1430_v21  ;;  %v6100_v21 = vld [vmem:[%s11020_s2 + $0x388] sm:$0xff] }
 0x855   :  { %v1457_v23 = vsub.f32 %v6078_v5, %v1456_v22 }
 0x857   :  { %v1462_v24 = vrot.slane %v1457_v23, %v8571_v57 }
 0x859   :  { %v1464_v26 = vsel %vm252_vm2, %v1455_v4, %v1462_v24 }
 0x85a   :  { %7446 = vmatmul.mubr.msk.f32.vlgmr.msra.gmra.mxu1 %vm359_vm4, %v1464_v26 }
 0x85b   :  { %6607 = vmatpush3.msra.mxu1 %v6098_v25 }
 0x85c   :  { %6608 = vmatprep.subr.mxu1 %v6113_v27 }
 0x85d   :  { %6609 = vmatpush3.msra.mxu1 %v6097_v29 }
 0x85e   :  { %6610 = vmatprep.subr.mxu1 %v6112_v30 }
 0x85f   :  { %6611 = vmatpush3.msra.mxu1 %v6096_v31 }
 0x860   :  { %6612 = vmatprep.subr.mxu1 %v6111_v32 }
 0x861   :  { %6613 = vmatpush3.msra.mxu1 %v6095_v55 }
 0x862   :  { %6614 = vmatprep.subr.mxu1 %v6110_v36  ;;  %v9186_v36 = vld [vmem:[%s11019_s11] sm:$0xf] }
 0x863   :  { %6615 = vmatpush3.msra.mxu1 %v6094_v54 }
 0x864   :  { %6616 = vmatprep.subr.mxu1 %v6109_v37 }
 0x865   :  { %6617 = vmatpush3.msra.mxu1 %v6093_v46 }
 0x866   :  { %6618 = vmatprep.subr.mxu1 %v6108_v38 }
 0x867   :  { %6619 = vmatpush3.msra.mxu1 %v6092_v39 }
 0x868   :  { %6620 = vmatprep.subr.mxu1 %v6107_v41 }
 0x869   :  { %6621 = vmatpush3.msra.mxu1 %v6091_v43 }
 0x86a   :  { %6622 = vmatprep.subr.mxu1 %v6106_v45 }
 0x86b   :  { %6623 = vmatpush3.msra.mxu1 %v6090_v47 }
 0x86c   :  { %6624 = vmatprep.subr.mxu1 %v6105_v1  ;;  %v9221_v1 = vld [vmem:[%s11018_s10 + $0x70] sm:$0xff] }
 0x86d   :  { %6625 = vmatpush3.msra.mxu1 %v6089_v6  ;;  %v9228_v6 = vld [vmem:[%s11018_s10 + $0x68] sm:$0xff] }
 0x86e   :  { %6626 = vmatprep.subr.mxu1 %v6104_v9  ;;  %v9242_v9 = vld [vmem:[%s11018_s10 + $0x58] sm:$0xff] }
 0x86f   :  { %6627 = vmatpush3.msra.mxu1 %v6088_v10  ;;  %v9249_v10 = vld [vmem:[%s11018_s10 + $0x50] sm:$0xff] }
 0x870   :  { %6628 = vmatprep.subr.mxu1 %v6103_v12  ;;  %v9263_v12 = vld [vmem:[%s11018_s10 + $0x40] sm:$0xff] }
 0x871   :  { %6629 = vmatpush3.msra.mxu1 %v6087_v13  ;;  %v9270_v13 = vld [vmem:[%s11018_s10 + $0x38] sm:$0xff] }
 0x872   :  { %6630 = vmatprep.subr.mxu1 %v6102_v15  ;;  %v9284_v15 = vld [vmem:[%s11018_s10 + $0x28] sm:$0xff] }
 0x873   :  { %6631 = vmatpush3.msra.mxu1 %v6086_v16  ;;  %v9291_v16 = vld [vmem:[%s11018_s10 + $0x20] sm:$0xff] }
 0x874   :  { %6632 = vmatprep.subr.mxu1 %v6101_v18  ;;  %v9305_v18 = vld [vmem:[%s11018_s10 + $0x10] sm:$0xff] }
 0x875   :  { %6633 = vmatpush3.msra.mxu1 %v6085_v19  ;;  %v9312_v19 = vld [vmem:[%s11018_s10 + $0x8] sm:$0xff] }
 0x876   :  { %6634 = vmatprep.subr.mxu1 %v6100_v21 }
 0x877   :  { %6635 = vmatpush3.msra.mxu1 %v6084_v51 }
 0x878   :  { %6636 = vmatprep.subr.mxu1 %v6099_v53 }
 0x879   :  { %6637 = vmatpush3.msra.mxu1 %v6083_v56 }
 0x87a   :  { %7483 = vmatprep.subr.mxu1 %v8312_v0 }
 0x91a   :  { %v1534_v3 = vpop.f32.mrf.mxu1 }
 0x91b   :  { %v1541_v59 = vrot.slane %v1534_v3, %v8571_v57  ;;  %v1547_v4 = vrot.slane %v1534_v3, %v8701_v62  ;;  %v6168_v3 = vld [vmem:[%s11020_s2 + $0x578] sm:$0xff] }
 0x91c   :  { %v7447_v60 = vpop.f32.mrf.mxu1 }
 0x91d   :  { %v1542_v61 = vmul.f32 %v1541_v59, %v8961_v28  ;;  %v1543_v63 = vmul.f32 %v1541_v59, %v8958_v49  ;;  %v6184_v59 = vld [vmem:[%s11020_s2 + $0x5f8] sm:$0xff]  ;;  %v6183_v60 = vld [vmem:[%s11020_s2 + $0x5f0] sm:$0xff] }
 0x91f   :  { %v1548_v5 = vadd.f32 %v1547_v4, %v1542_v61  ;;  %v1549_v22 = vadd.f32 %v1547_v4, %v1543_v63  ;;  %v6182_v61 = vld [vmem:[%s11020_s2 + $0x5e8] sm:$0xff]  ;;  %v6181_v63 = vld [vmem:[%s11020_s2 + $0x5e0] sm:$0xff]  ;;  %v6180_v4 = vld [vmem:[%s11020_s2 + $0x5d8] sm:$0xff] }
 0x921   :  { %v1551_v23 = vmax.f32 %v1549_v22, 0.0  ;;  %v1550_v24 = vmax.f32 %v1548_v5, 0.0  ;;  %v6179_v5 = vld [vmem:[%s11020_s2 + $0x5d0] sm:$0xff] }
 0x923   :  { %1602 = vst [vmem:[#allocation2 + $0x10] sm:$0xff] %v1551_v23  ;;  %1601 = vst [vmem:[#allocation2 + $0x8] sm:$0xff] %v1550_v24  ;;  %1675 = vmatprep.mubr.f32.mxu1 %v1550_v24 }
 0x92a   :  { %v1603_v25 = vld [vmem:[#allocation2 + $0x7] sm:$0xff]  ;;  %v1608_v27 = vld [vmem:[#allocation2 + $0x11] sm:$0xff] }
 0x92b   :  { %v1607_v26 = vld [vmem:[#allocation2 + $0x9] sm:$0xff]  ;;  %v1605_v29 = vmul.f32 %v8710_v33, %v1603_v25  ;;  %v1610_v31 = vmul.f32 %v8716_v35, %v1608_v27 }
 0x92c   :  { %v1609_v30 = vmul.f32 %v8713_v34, %v1607_v26  ;;  %v1604_v32 = vld [vmem:[#allocation2 + $0xf] sm:$0xff] }
 0x92d   :  { %1676 = vmatmul.mubr.f32.vlgmr.msra.gmra.mxu1 %v1605_v29  ;;  %v1606_v55 = vmul.f32 %v8722_v42, %v1604_v32 }
 0x92e   :  { %7480 = vmatprep.mubr.f32.mxu0 %v1609_v30  ;;  %1680 = vmatprep.mubr.f32.mxu1 %v1551_v23 }
 0x92f   :  { %7481 = vmatmul.mubr.f32.vlgmr.msra.gmra.mxu0 %v1610_v31 }
 0x930   :  { %7533 = vmatpush3.msk.msra.mxu0 %vm363_vm3, %v9186_v36  ;;  %7534 = vmatprep.mubr.msk.f32.mxu0 %vm8313_vm0, %v8312_v0 }
 0x931   :  { %1681 = vmatmul.mubr.f32.gmra.mxu1 %v1606_v55  ;;  %6687 = vmatprep.subr.mxu0 %v6168_v3  ;;  %v6131_v55 = vld [vmem:[%s11023_s5 + $0x1] sm:$0x1]  ;;  %v6163_v3 = vld [vmem:[%s11020_s2 + $0x550] sm:$0xff] }
 0x932   :  { %7487 = vmatprep.mubr.msk.f32.mxu1 %vm8313_vm0, %v8312_v0 }
 0x9ed   :  { %v6638_v54 = vpop.f32.mrf.mxu1 }
 0x9ef   :  { %v6639_v37 = vpop.f32.mrf.mxu1  ;;  %v7482_v46 = vpop.f32.mrf.mxu0 }
 0x9f0   :  { %v6640_v40 = vadd.f32 %v6639_v37, %v6638_v54 }
 0x9f1   :  { %v6641_v38 = vpop.f32.mrf.mxu1  ;;  %v1752_v43 = vpop.f32.mrf.mxu0 }
 0x9f2   :  { %v9196_v45 = vadd.f32 %v6640_v40, %v1752_v43 }
 0x9f3   :  { %v6642_v39 = vpop.f32.mrf.mxu1 }
 0x9f4   :  { %v6643_v41 = vadd.f32 %v6642_v39, %v6641_v38  ;;  %v1835_v50 = vmul.f32 %v9196_v45, %v9196_v45 }
 0x9f6   :  { %v9194_v44 = vadd.f32 %v7482_v46, %v6643_v41  ;;  %v6132_v46 = vld [vmem:[%s11024_s6 + $0x1] sm:$0x1]  ;;  %v6152_v41 = vld [vmem:[%s11020_s2 + $0x4f8] sm:$0xff] }
 0x9f8   :  { %7484 = vmatpush3.msra.mxu1 %v9194_v44  ;;  %v1836_v47 = vmul.f32 %v9194_v44, %v9194_v44 }
 0x9f9   :  { %7485 = vmatprep.subr.mxu1 %v8312_v0 }
 0x9fa   :  { %7486 = vmatpush3.msra.mxu1 %v9196_v45 }
 0x9fb   :  { %7488 = vmatmul.mubr.msk.f32.vlgmr.msra.gmra.mxu1 %vm103_vm1, %v8314_v7  ;;  %7490 = vmatprep.subr.mxu1 %v8312_v0 }
 0x9fc   :  { %7491 = vmatpush3.msra.mxu1 %v1836_v47  ;;  %7494 = vmatprep.mubr.msk.f32.mxu1 %vm8313_vm0, %v8312_v0  ;;  %v6167_v47 = vld [vmem:[%s11020_s2 + $0x570] sm:$0xff] }
 0x9fd   :  { %7492 = vmatprep.subr.mxu1 %v8312_v0 }
 0x9fe   :  { %7493 = vmatpush3.msra.mxu1 %v1835_v50  ;;  %v6151_v50 = vld [vmem:[%s11020_s2 + $0x4f0] sm:$0xff] }
 0x9ff   :  { %7495 = vmatmul.mubr.msk.f32.vlgmr.msra.gmra.mxu1 %vm103_vm1, %v8314_v7  ;;  %7497 = vmatprep.subr.mxu1 %v8312_v0 }
 0xa00   :  { %7498 = vmatpush3.msra.mxu1 %v8982_v2  ;;  %7529 = vmatprep.mubr.msk.f32.mxu1 %vm8313_vm0, %v8312_v0 }
 0xa01   :  { %7499 = vmatprep.subr.mxu1 %v8312_v0 }
 0xa02   :  { %7500 = vmatpush3.msra.mxu1 %v9221_v1 }
 0xa03   :  { %7501 = vmatprep.subr.mxu1 %v8312_v0 }
 0xa04   :  { %7502 = vmatpush3.msra.mxu1 %v9228_v6 }
 0xa05   :  { %7503 = vmatprep.subr.mxu1 %v8312_v0 }
 0xa06   :  { %7504 = vmatpush3.msra.mxu1 %v9235_v8 }
 0xa07   :  { %7505 = vmatprep.subr.mxu1 %v8312_v0 }
 0xa08   :  { %7506 = vmatpush3.msra.mxu1 %v9242_v9 }
 0xa09   :  { %7507 = vmatprep.subr.mxu1 %v8312_v0 }
 0xa0a   :  { %7508 = vmatpush3.msra.mxu1 %v9249_v10 }
 0xa0b   :  { %7509 = vmatprep.subr.mxu1 %v8312_v0 }
 0xa0c   :  { %7510 = vmatpush3.msra.mxu1 %v9256_v11 }
 0xa0d   :  { %7511 = vmatprep.subr.mxu1 %v8312_v0 }
 0xa0e   :  { %7512 = vmatpush3.msra.mxu1 %v9263_v12 }
 0xa0f   :  { %7513 = vmatprep.subr.mxu1 %v8312_v0 }
 0xa10   :  { %7514 = vmatpush3.msra.mxu1 %v9270_v13 }
 0xa11   :  { %7515 = vmatprep.subr.mxu1 %v8312_v0 }
 0xa12   :  { %7516 = vmatpush3.msra.mxu1 %v9277_v14 }
 0xa13   :  { %7517 = vmatprep.subr.mxu1 %v8312_v0 }
 0xa14   :  { %7518 = vmatpush3.msra.mxu1 %v9284_v15 }
 0xa15   :  { %7519 = vmatprep.subr.mxu1 %v8312_v0 }
 0xa16   :  { %7520 = vmatpush3.msra.mxu1 %v9291_v16 }
 0xa17   :  { %7521 = vmatprep.subr.mxu1 %v8312_v0 }
 0xa18   :  { %7522 = vmatpush3.msra.mxu1 %v9298_v17 }
 0xa19   :  { %7523 = vmatprep.subr.mxu1 %v8312_v0 }
 0xa1a   :  { %7524 = vmatpush3.msra.mxu1 %v9305_v18 }
 0xa1b   :  { %7525 = vmatprep.subr.mxu1 %v8312_v0 }
 0xa1c   :  { %7526 = vmatpush3.msra.mxu1 %v9312_v19 }
 0xa1d   :  { %7527 = vmatprep.subr.mxu1 %v8312_v0 }
 0xa1e   :  { %7528 = vmatpush3.msra.mxu1 %v9319_v20 }
 0xa1f   :  { %7537 = vmatprep.subr.mxu1 %v6184_v59 }
 0xabb   :  { %v1831_v21 = vpop.f32.mrf.mxu1 }
 0xabd   :  { %v7489_v51 = vpop.f32.mrf.mxu1 }
 0xabe   :  { %v6150_v51 = vld [vmem:[%s11020_s2 + $0x4e8] sm:$0xff] }
 0xabf   :  { %v1903_v52 = vpop.f32.mrf.mxu1 }
 0xac0   :  { %v1908_v53 = vrot.slane %v1903_v52, 7  ;;  %v6165_v52 = vld [vmem:[%s11020_s2 + $0x560] sm:$0xff] }
 0xac1   :  { %v7496_v56 = vpop.f32.mrf.mxu1 }
 0xac2   :  { %v1910_v58 = vsel %vm252_vm2, %v1831_v21, %v1908_v53  ;;  %v6166_v21 = vld [vmem:[%s11020_s2 + $0x568] sm:$0xff]  ;;  %v6149_v53 = vld [vmem:[%s11020_s2 + $0x4e0] sm:$0xff]  ;;  %v6164_v56 = vld [vmem:[%s11020_s2 + $0x558] sm:$0xff] }
 0xac3   :  { %7530 = vmatmul.mubr.f32.vlgmr.msra.gmra.mxu1 %v1910_v58  ;;  %v6148_v58 = vld [vmem:[%s11020_s2 + $0x4d8] sm:$0xff] }
 0xac4   :  { %7538 = vmatpush3.msra.mxu1 %v6184_v59  ;;  %v6147_v59 = vld [vmem:[%s11020_s2 + $0x4d0] sm:$0xff] }
 0xac5   :  { %7539 = vmatprep.subr.mxu1 %v6183_v60 }
 0xac6   :  { %7540 = vmatpush3.msra.mxu1 %v6183_v60  ;;  %v6162_v60 = vld [vmem:[%s11020_s2 + $0x548] sm:$0xff] }
 0xac7   :  { %7541 = vmatprep.subr.mxu1 %v6182_v61 }
 0xac8   :  { %7542 = vmatpush3.msra.mxu1 %v6182_v61  ;;  %v6146_v61 = vld [vmem:[%s11020_s2 + $0x4c8] sm:$0xff] }
 0xac9   :  { %7543 = vmatprep.subr.mxu1 %v6181_v63 }
 0xaca   :  { %7544 = vmatpush3.msra.mxu1 %v6181_v63  ;;  %v6178_v63 = vld [vmem:[%s11020_s2 + $0x5c8] sm:$0xff] }
 0xacb   :  { %7545 = vmatprep.subr.mxu1 %v6180_v4 }
 0xacc   :  { %7546 = vmatpush3.msra.mxu1 %v6180_v4  ;;  %v6161_v4 = vld [vmem:[%s11020_s2 + $0x540] sm:$0xff] }
 0xacd   :  { %7547 = vmatprep.subr.mxu1 %v6179_v5 }
 0xace   :  { %7548 = vmatpush3.msra.mxu1 %v6179_v5  ;;  %v6145_v5 = vld [vmem:[%s11020_s2 + $0x4c0] sm:$0xff] }
 0xacf   :  { %7549 = vmatprep.subr.mxu1 %v6178_v63 }
 0xad0   :  { %7550 = vmatpush3.msra.mxu1 %v6178_v63 }
 0xb83   :  { %v1977_v22 = vpop.f32.mrf.mxu1 }
 0xb84   :  { %v1981_v23 = vmul.f32 0.001953125, %v1977_v22  ;;  %v6177_v22 = vld [vmem:[%s11020_s2 + $0x5c0] sm:$0xff] }
 0xb85   :  { %v7531_v24 = vpop.f32.mrf.mxu1  ;;  %7551 = vmatprep.subr.mxu1 %v6177_v22 }
 0xb86   :  { %v1982_v25 = vmul.f32 %v1981_v23, %v1981_v23  ;;  %7552 = vmatpush3.msra.mxu1 %v6177_v22  ;;  %v6144_v24 = vld [vmem:[%s11020_s2 + $0x4b8] sm:$0xff] }
 0xb88   :  { %v1984_v26 = vrot.slane %v1982_v25, 7  ;;  %v6176_v25 = vld [vmem:[%s11020_s2 + $0x5b8] sm:$0xff] }
 0xb89   :  { %7553 = vmatprep.subr.mxu1 %v6176_v25 }
 0xb8a   :  { %v1986_v27 = vsub.f32 %v1981_v23, %v1984_v26  ;;  %v6159_v26 = vld [vmem:[%s11020_s2 + $0x530] sm:$0xff]  ;;  %7554 = vmatpush3.msra.mxu1 %v6176_v25 }
 0xb8c   :  { %v1987_v29 = vadd.f32 1e-05, %v1986_v27  ;;  %v6143_v27 = vld [vmem:[%s11020_s2 + $0x4b0] sm:$0xff] }
 0xb8e   :  { %8245 = vrsqrt.f32 %v1987_v29  ;;  %v6175_v29 = vld [vmem:[%s11020_s2 + $0x5b0] sm:$0xff] }
 0xb8f   :  { %7555 = vmatprep.subr.mxu1 %v6175_v29 }
 0xb90   :  { %7556 = vmatpush3.msra.mxu1 %v6175_v29 }
 0xb9b   :  { %v8246_v30 = vpop.eup %8245 }
 0xb9c   :  { %v1996_v31 = vrot.slane %v8246_v30, %v8560_v48  ;;  %v6158_v30 = vld [vmem:[%s11020_s2 + $0x528] sm:$0xff] }
 0xb9e   :  { %v1997_v32 = vcombine.high %v1996_v31, %v1996_v31  ;;  %v6142_v31 = vld [vmem:[%s11020_s2 + $0x4a8] sm:$0xff] }
 0xba0   :  { %v2004_v54 = vrot.slane %v1997_v32, %v8560_v48  ;;  %v6174_v32 = vld [vmem:[%s11020_s2 + $0x5a8] sm:$0xff] }
 0xba1   :  { %7557 = vmatprep.subr.mxu1 %v6174_v32 }
 0xba2   :  { %v2006_v37 = vmul.f32 %v6131_v55, %v2004_v54  ;;  %v6157_v55 = vld [vmem:[%s11020_s2 + $0x520] sm:$0xff]  ;;  %7558 = vmatpush3.msra.mxu1 %v6174_v32 }
 0xba3   :  { %v6141_v54 = vld [vmem:[%s11020_s2 + $0x4a0] sm:$0xff] }
 0xba4   :  { %v2007_v38 = vmul.f32 %v2006_v37, %v1981_v23  ;;  %v6160_v23 = vld [vmem:[%s11020_s2 + $0x538] sm:$0xff] }
 0xba6   :  { %v2008_v39 = vsub.f32 %v6132_v46, %v2007_v38  ;;  %v6156_v46 = vld [vmem:[%s11020_s2 + $0x518] sm:$0xff] }
 0xba7   :  { %v6140_v38 = vld [vmem:[%s11020_s2 + $0x498] sm:$0xff] }
 0xba8   :  { %v2013_v40 = vrot.slane %v2008_v39, %v8571_v57  ;;  %v6172_v39 = vld [vmem:[%s11020_s2 + $0x598] sm:$0xff] }
 0xbaa   :  { %v2015_v43 = vsel %vm252_vm2, %v2006_v37, %v2013_v40  ;;  %v6173_v37 = vld [vmem:[%s11020_s2 + $0x5a0] sm:$0xff]  ;;  %v6155_v40 = vld [vmem:[%s11020_s2 + $0x510] sm:$0xff] }
 0xbab   :  { %7535 = vmatmul.mubr.msk.f32.vlgmr.msra.gmra.mxu0 %vm359_vm4, %v2015_v43  ;;  %7559 = vmatprep.subr.mxu1 %v6173_v37  ;;  %v6171_v43 = vld [vmem:[%s11020_s2 + $0x590] sm:$0xff] }
 0xbac   :  { %6688 = vmatpush3.msra.mxu0 %v6152_v41  ;;  %7560 = vmatpush3.msra.mxu1 %v6173_v37  ;;  %v6139_v41 = vld [vmem:[%s11020_s2 + $0x490] sm:$0xff] }
 0xbad   :  { %6689 = vmatprep.subr.mxu0 %v6167_v47  ;;  %7561 = vmatprep.subr.mxu1 %v6172_v39  ;;  %v6154_v47 = vld [vmem:[%s11020_s2 + $0x508] sm:$0xff] }
 0xbae   :  { %6690 = vmatpush3.msra.mxu0 %v6151_v50  ;;  %7562 = vmatpush3.msra.mxu1 %v6172_v39  ;;  %v6138_v50 = vld [vmem:[%s11020_s2 + $0x488] sm:$0xff] }
 0xbaf   :  { %6691 = vmatprep.subr.mxu0 %v6166_v21  ;;  %v6170_v21 = vld [vmem:[%s11020_s2 + $0x588] sm:$0xff]  ;;  %7563 = vmatprep.subr.mxu1 %v6171_v43 }
 0xbb0   :  { %6692 = vmatpush3.msra.mxu0 %v6150_v51  ;;  %v6153_v51 = vld [vmem:[%s11020_s2 + $0x500] sm:$0xff]  ;;  %7564 = vmatpush3.msra.mxu1 %v6171_v43 }
 0xbb1   :  { %6693 = vmatprep.subr.mxu0 %v6165_v52  ;;  %v6137_v52 = vld [vmem:[%s11020_s2 + $0x480] sm:$0xff]  ;;  %7565 = vmatprep.subr.mxu1 %v6170_v21 }
 0xbb2   :  { %6694 = vmatpush3.msra.mxu0 %v6149_v53  ;;  %v6169_v53 = vld [vmem:[%s11020_s2 + $0x580] sm:$0xff]  ;;  %7566 = vmatpush3.msra.mxu1 %v6170_v21 }
 0xbb3   :  { %6695 = vmatprep.subr.mxu0 %v6164_v56  ;;  %7567 = vmatprep.subr.mxu1 %v6169_v53 }
 0xbb4   :  { %6696 = vmatpush3.msra.mxu0 %v6148_v58  ;;  %7568 = vmatpush3.msra.mxu1 %v6169_v53  ;;  %v2816_v53 = vld [vmem:[%s11020_s2 + $0x178] sm:$0xff] }
 0xbb5   :  { %6697 = vmatprep.subr.mxu0 %v6163_v3  ;;  %7621 = vmatprep.subr.mxu1 %v8312_v0 }
 0xbb6   :  { %6698 = vmatpush3.msra.mxu0 %v6147_v59 }
 0xbb7   :  { %6699 = vmatprep.subr.mxu0 %v6162_v60 }
 0xbb8   :  { %6700 = vmatpush3.msra.mxu0 %v6146_v61 }
 0xbb9   :  { %6701 = vmatprep.subr.mxu0 %v6161_v4 }
 0xbba   :  { %6702 = vmatpush3.msra.mxu0 %v6145_v5 }
 0xbbb   :  { %6703 = vmatprep.subr.mxu0 %v6160_v23 }
 0xbbc   :  { %6704 = vmatpush3.msra.mxu0 %v6144_v24 }
 0xbbd   :  { %6705 = vmatprep.subr.mxu0 %v6159_v26 }
 0xbbe   :  { %6706 = vmatpush3.msra.mxu0 %v6143_v27 }
 0xbbf   :  { %6707 = vmatprep.subr.mxu0 %v6158_v30 }
 0xbc0   :  { %6708 = vmatpush3.msra.mxu0 %v6142_v31 }
 0xbc1   :  { %6709 = vmatprep.subr.mxu0 %v6157_v55 }
 0xbc2   :  { %6710 = vmatpush3.msra.mxu0 %v6141_v54 }
 0xbc3   :  { %6711 = vmatprep.subr.mxu0 %v6156_v46 }
 0xbc4   :  { %6712 = vmatpush3.msra.mxu0 %v6140_v38 }
 0xbc5   :  { %6713 = vmatprep.subr.mxu0 %v6155_v40 }
 0xbc6   :  { %6714 = vmatpush3.msra.mxu0 %v6139_v41 }
 0xbc7   :  { %6715 = vmatprep.subr.mxu0 %v6154_v47 }
 0xbc8   :  { %6716 = vmatpush3.msra.mxu0 %v6138_v50 }
 0xbc9   :  { %6717 = vmatprep.subr.mxu0 %v6153_v51 }
 0xbca   :  { %6718 = vmatpush3.msra.mxu0 %v6137_v52 }
 0xbcb   :  { %7572 = vmatprep.subr.mxu0 %v8312_v0 }
 0xc6b   :  { %v2085_v56 = vpop.f32.mrf.mxu0 }
 0xc6c   :  { %v2092_v58 = vrot.slane %v2085_v56, %v8571_v57  ;;  %v2098_v61 = vrot.slane %v2085_v56, %v8701_v62  ;;  %v2815_v56 = vld [vmem:[%s11020_s2 + $0x170] sm:$0xff] }
 0xc6d   :  { %v7536_v3 = vpop.f32.mrf.mxu0 }
 0xc6e   :  { %v2093_v59 = vmul.f32 %v2092_v58, %v9196_v45  ;;  %v2094_v60 = vmul.f32 %v2092_v58, %v9194_v44  ;;  %v2814_v58 = vld [vmem:[%s11020_s2 + $0x168] sm:$0xff]  ;;  %v2813_v3 = vld [vmem:[%s11020_s2 + $0x160] sm:$0xff] }
 0xc70   :  { %v2099_v63 = vadd.f32 %v2098_v61, %v2093_v59  ;;  %v2100_v4 = vadd.f32 %v2098_v61, %v2094_v60 }
 0xc72   :  { %v2102_v5 = vmax.f32 %v2100_v4, 0.0  ;;  %v2101_v22 = vmax.f32 %v2099_v63, 0.0 }
 0xc74   :  { %2153 = vst [vmem:[#allocation2 + $0x10] sm:$0xff] %v2102_v5  ;;  %2226 = vmatprep.mubr.f32.mxu0 %v2101_v22  ;;  %2152 = vst [vmem:[#allocation2 + $0x8] sm:$0xff] %v2101_v22 }
 0xc7b   :  { %v2154_v23 = vld [vmem:[#allocation2 + $0x7] sm:$0xff]  ;;  %v2159_v25 = vld [vmem:[#allocation2 + $0x11] sm:$0xff] }
 0xc7c   :  { %v2158_v24 = vld [vmem:[#allocation2 + $0x9] sm:$0xff]  ;;  %v2156_v26 = vmul.f32 %v8710_v33, %v2154_v23  ;;  %v2161_v45 = vmul.f32 %v8716_v35, %v2159_v25 }
 0xc7d   :  { %v2160_v27 = vmul.f32 %v8713_v34, %v2158_v24  ;;  %v2155_v29 = vld [vmem:[#allocation2 + $0xf] sm:$0xff] }
 0xc7e   :  { %2227 = vmatmul.mubr.f32.vlgmr.msra.gmra.mxu0 %v2156_v26  ;;  %v2157_v44 = vmul.f32 %v8722_v42, %v2155_v29  ;;  %v2314_v26 = vld [vmem:[%s11025_s7] sm:$0x1] }
 0xc7f   :  { %7569 = vmatprep.mubr.f32.mxu1 %v2160_v27  ;;  %2231 = vmatprep.mubr.f32.mxu0 %v2102_v5  ;;  %v2670_v27 = vld [vmem:[%s11021_s3] sm:$0x1] }
 0xc80   :  { %7570 = vmatmul.mubr.f32.vlgmr.msra.gmra.mxu1 %v2161_v45 }
 0xc81   :  { %7622 = vmatpush3.msk.msra.mxu1 %vm363_vm3, %v9186_v36  ;;  %7623 = vmatprep.mubr.msk.f32.mxu1 %vm8313_vm0, %v8312_v0 }
 0xc82   :  { %7626 = vmatprep.subr.mxu1 %v8312_v0  ;;  %2232 = vmatmul.mubr.f32.gmra.mxu0 %v2157_v44 }
 0xc83   :  { %7576 = vmatprep.mubr.msk.f32.mxu0 %vm8313_vm0, %v8312_v0 }
 0xd3e   :  { %v6719_v30 = vpop.f32.mrf.mxu0 }
 0xd40   :  { %v7571_v31 = vpop.f32.mrf.mxu1  ;;  %v6720_v32 = vpop.f32.mrf.mxu0 }
 0xd41   :  { %v6721_v54 = vadd.f32 %v6720_v32, %v6719_v30  ;;  %v2315_v30 = vld [vmem:[%s11026_s8] sm:$0x1] }
 0xd42   :  { %v6722_v55 = vpop.f32.mrf.mxu0  ;;  %v2303_v37 = vpop.f32.mrf.mxu1 }
 0xd43   :  { %v2304_v39 = vadd.f32 %v6721_v54, %v2303_v37 }
 0xd44   :  { %v6723_v46 = vpop.f32.mrf.mxu0 }
 0xd45   :  { %v6724_v38 = vadd.f32 %v6723_v46, %v6722_v55  ;;  %v9499_v43 = vadd.f32 %v2304_v39, %v8961_v28 }
 0xd47   :  { %v2309_v40 = vadd.f32 %v7571_v31, %v6724_v38  ;;  %v2671_v31 = vld [vmem:[%s11022_s4] sm:$0x1] }
 0xd49   :  { %v9496_v41 = vadd.f32 %v2309_v40, %v8958_v49  ;;  %v2386_v49 = vmul.f32 %v9499_v43, %v9499_v43  ;;  %v2800_v40 = vld [vmem:[%s11020_s2 + $0xf8] sm:$0xff] }
 0xd4b   :  { %7573 = vmatpush3.msra.mxu0 %v9496_v41  ;;  %v2387_v47 = vmul.f32 %v9496_v41, %v9496_v41 }
 0xd4c   :  { %7574 = vmatprep.subr.mxu0 %v8312_v0 }
 0xd4d   :  { %7575 = vmatpush3.msra.mxu0 %v9499_v43 }
 0xd4e   :  { %7577 = vmatmul.mubr.msk.f32.vlgmr.msra.gmra.mxu0 %vm103_vm1, %v8314_v7  ;;  %7579 = vmatprep.subr.mxu0 %v8312_v0 }
 0xd4f   :  { %7580 = vmatpush3.msra.mxu0 %v2387_v47  ;;  %7583 = vmatprep.mubr.msk.f32.mxu0 %vm8313_vm0, %v8312_v0  ;;  %v2784_v47 = vld [vmem:[%s11020_s2 + $0x78] sm:$0xff] }
 0xd50   :  { %7581 = vmatprep.subr.mxu0 %v8312_v0 }
 0xd51   :  { %7582 = vmatpush3.msra.mxu0 %v2386_v49 }
 0xd52   :  { %7584 = vmatmul.mubr.msk.f32.vlgmr.msra.gmra.mxu0 %vm103_vm1, %v8314_v7  ;;  %7586 = vmatprep.subr.mxu0 %v8312_v0 }
 0xd53   :  { %7587 = vmatpush3.msra.mxu0 %v8982_v2  ;;  %7618 = vmatprep.mubr.msk.f32.mxu0 %vm8313_vm0, %v8312_v0 }
 0xd54   :  { %7588 = vmatprep.subr.mxu0 %v8312_v0 }
 0xd55   :  { %7589 = vmatpush3.msra.mxu0 %v9221_v1 }
 0xd56   :  { %7590 = vmatprep.subr.mxu0 %v8312_v0 }
 0xd57   :  { %7591 = vmatpush3.msra.mxu0 %v9228_v6 }
 0xd58   :  { %7592 = vmatprep.subr.mxu0 %v8312_v0 }
 0xd59   :  { %7593 = vmatpush3.msra.mxu0 %v9235_v8 }
 0xd5a   :  { %7594 = vmatprep.subr.mxu0 %v8312_v0 }
 0xd5b   :  { %7595 = vmatpush3.msra.mxu0 %v9242_v9 }
 0xd5c   :  { %7596 = vmatprep.subr.mxu0 %v8312_v0 }
 0xd5d   :  { %7597 = vmatpush3.msra.mxu0 %v9249_v10 }
 0xd5e   :  { %7598 = vmatprep.subr.mxu0 %v8312_v0 }
 0xd5f   :  { %7599 = vmatpush3.msra.mxu0 %v9256_v11 }
 0xd60   :  { %7600 = vmatprep.subr.mxu0 %v8312_v0 }
 0xd61   :  { %7601 = vmatpush3.msra.mxu0 %v9263_v12 }
 0xd62   :  { %7602 = vmatprep.subr.mxu0 %v8312_v0 }
 0xd63   :  { %7603 = vmatpush3.msra.mxu0 %v9270_v13 }
 0xd64   :  { %7604 = vmatprep.subr.mxu0 %v8312_v0 }
 0xd65   :  { %7605 = vmatpush3.msra.mxu0 %v9277_v14 }
 0xd66   :  { %7606 = vmatprep.subr.mxu0 %v8312_v0 }
 0xd67   :  { %7607 = vmatpush3.msra.mxu0 %v9284_v15 }
 0xd68   :  { %7608 = vmatprep.subr.mxu0 %v8312_v0 }
 0xd69   :  { %7609 = vmatpush3.msra.mxu0 %v9291_v16 }
 0xd6a   :  { %7610 = vmatprep.subr.mxu0 %v8312_v0 }
 0xd6b   :  { %7611 = vmatpush3.msra.mxu0 %v9298_v17 }
 0xd6c   :  { %7612 = vmatprep.subr.mxu0 %v8312_v0 }
 0xd6d   :  { %7613 = vmatpush3.msra.mxu0 %v9305_v18 }
 0xd6e   :  { %7614 = vmatprep.subr.mxu0 %v8312_v0 }
 0xd6f   :  { %7615 = vmatpush3.msra.mxu0 %v9312_v19 }
 0xd70   :  { %7616 = vmatprep.subr.mxu0 %v8312_v0 }
 0xd71   :  { %7617 = vmatpush3.msra.mxu0 %v9319_v20 }
 0xd72   :  { %7631 = vmatprep.subr.mxu0 %v2816_v53 }
 0xe0e   :  { %v2382_v28 = vpop.f32.mrf.mxu0 }
 0xe10   :  { %v7578_v2 = vpop.f32.mrf.mxu0 }
 0xe11   :  { %v2783_v2 = vld [vmem:[%s11020_s2 + $0x70] sm:$0xff] }
 0xe12   :  { %v2454_v50 = vpop.f32.mrf.mxu0 }
 0xe13   :  { %v2459_v21 = vrot.slane %v2454_v50, 7  ;;  %v2798_v50 = vld [vmem:[%s11020_s2 + $0xe8] sm:$0xff] }
 0xe14   :  { %v7585_v51 = vpop.f32.mrf.mxu0 }
 0xe15   :  { %v2461_v52 = vsel %vm252_vm2, %v2382_v28, %v2459_v21  ;;  %v2799_v28 = vld [vmem:[%s11020_s2 + $0xf0] sm:$0xff]  ;;  %v2782_v21 = vld [vmem:[%s11020_s2 + $0x68] sm:$0xff]  ;;  %v2797_v51 = vld [vmem:[%s11020_s2 + $0xe0] sm:$0xff] }
 0xe16   :  { %7619 = vmatmul.mubr.f32.vlgmr.msra.gmra.mxu0 %v2461_v52  ;;  %v2781_v52 = vld [vmem:[%s11020_s2 + $0x60] sm:$0xff] }
 0xe17   :  { %7632 = vmatpush3.msra.mxu0 %v2816_v53  ;;  %v2796_v53 = vld [vmem:[%s11020_s2 + $0xd8] sm:$0xff] }
 0xe18   :  { %7633 = vmatprep.subr.mxu0 %v2815_v56 }
 0xe19   :  { %7634 = vmatpush3.msra.mxu0 %v2815_v56  ;;  %v2780_v56 = vld [vmem:[%s11020_s2 + $0x58] sm:$0xff] }
 0xe1a   :  { %7635 = vmatprep.subr.mxu0 %v2814_v58 }
 0xe1b   :  { %7636 = vmatpush3.msra.mxu0 %v2814_v58  ;;  %v2812_v58 = vld [vmem:[%s11020_s2 + $0x158] sm:$0xff] }
 0xe1c   :  { %7637 = vmatprep.subr.mxu0 %v2813_v3 }
 0xe1d   :  { %7638 = vmatpush3.msra.mxu0 %v2813_v3  ;;  %v2795_v3 = vld [vmem:[%s11020_s2 + $0xd0] sm:$0xff] }
 0xe1e   :  { %7639 = vmatprep.subr.mxu0 %v2812_v58 }
 0xe1f   :  { %7640 = vmatpush3.msra.mxu0 %v2812_v58 }
 0xed6   :  { %v2528_v59 = vpop.f32.mrf.mxu0 }
 0xed7   :  { %v2532_v60 = vmul.f32 0.001953125, %v2528_v59  ;;  %v2779_v59 = vld [vmem:[%s11020_s2 + $0x50] sm:$0xff] }
 0xed8   :  { %v7620_v61 = vpop.f32.mrf.mxu0 }
 0xed9   :  { %v2533_v63 = vmul.f32 %v2532_v60, %v2532_v60  ;;  %v2794_v61 = vld [vmem:[%s11020_s2 + $0xc8] sm:$0xff] }
 0xedb   :  { %v2535_v4 = vrot.slane %v2533_v63, 7  ;;  %v2778_v63 = vld [vmem:[%s11020_s2 + $0x48] sm:$0xff] }
 0xedd   :  { %v2537_v5 = vsub.f32 %v2532_v60, %v2535_v4  ;;  %v2810_v4 = vld [vmem:[%s11020_s2 + $0x148] sm:$0xff] }
 0xedf   :  { %v2538_v22 = vadd.f32 1e-05, %v2537_v5  ;;  %v2793_v5 = vld [vmem:[%s11020_s2 + $0xc0] sm:$0xff] }
 0xee1   :  { %8247 = vrsqrt.f32 %v2538_v22  ;;  %v2777_v22 = vld [vmem:[%s11020_s2 + $0x40] sm:$0xff] }
 0xeee   :  { %v8248_v23 = vpop.eup %8247 }
 0xeef   :  { %v2547_v24 = vrot.slane %v8248_v23, %v8560_v48  ;;  %v2809_v23 = vld [vmem:[%s11020_s2 + $0x140] sm:$0xff] }
 0xef1   :  { %v2548_v25 = vcombine.high %v2547_v24, %v2547_v24  ;;  %v2792_v24 = vld [vmem:[%s11020_s2 + $0xb8] sm:$0xff] }
 0xef3   :  { %v2555_v45 = vrot.slane %v2548_v25, %v8560_v48  ;;  %v2776_v25 = vld [vmem:[%s11020_s2 + $0x38] sm:$0xff] }
 0xef5   :  { %v2557_v29 = vmul.f32 %v2555_v45, %v2314_v26  ;;  %v2672_v44 = vmul.f32 %v2670_v27, %v2555_v45  ;;  %v2808_v26 = vld [vmem:[%s11020_s2 + $0x138] sm:$0xff]  ;;  %v2791_v27 = vld [vmem:[%s11020_s2 + $0xb0] sm:$0xff] }
 0xef6   :  { %v2775_v45 = vld [vmem:[%s11020_s2 + $0x30] sm:$0xff] }
 0xef7   :  { %v2558_v32 = vmul.f32 %v2557_v29, %v2532_v60  ;;  %v2673_v55 = vmul.f32 %v2672_v44, %v2532_v60  ;;  %v2811_v60 = vld [vmem:[%s11020_s2 + $0x150] sm:$0xff] }
 0xef8   :  { %7641 = vmatprep.subr.mxu0 %v2811_v60 }
 0xef9   :  { %v2559_v54 = vsub.f32 %v2315_v30, %v2558_v32  ;;  %v2674_v37 = vsub.f32 %v2671_v31, %v2673_v55  ;;  %7642 = vmatpush3.msra.mxu0 %v2811_v60  ;;  %v2774_v30 = vld [vmem:[%s11020_s2 + $0x28] sm:$0xff]  ;;  %v2789_v32 = vld [vmem:[%s11020_s2 + $0xa0] sm:$0xff] }
 0xefa   :  { %7643 = vmatprep.subr.mxu0 %v2810_v4  ;;  %v2806_v31 = vld [vmem:[%s11020_s2 + $0x128] sm:$0xff]  ;;  %v2773_v55 = vld [vmem:[%s11020_s2 + $0x20] sm:$0xff] }
 0xefb   :  { %v2564_v46 = vrot.slane %v2559_v54, %v8571_v57  ;;  %v2679_v39 = vrot.slane %v2674_v37, %v8571_v57  ;;  %7644 = vmatpush3.msra.mxu0 %v2810_v4  ;;  %v2805_v54 = vld [vmem:[%s11020_s2 + $0x120] sm:$0xff]  ;;  %v2788_v37 = vld [vmem:[%s11020_s2 + $0x98] sm:$0xff] }
 0xefc   :  { %7645 = vmatprep.subr.mxu0 %v2809_v23 }
 0xefd   :  { %v2566_v38 = vsel %vm252_vm2, %v2557_v29, %v2564_v46  ;;  %v2681_v49 = vsel %vm252_vm2, %v2672_v44, %v2679_v39  ;;  %7646 = vmatpush3.msra.mxu0 %v2809_v23  ;;  %v2807_v29 = vld [vmem:[%s11020_s2 + $0x130] sm:$0xff]  ;;  %v2790_v44 = vld [vmem:[%s11020_s2 + $0xa8] sm:$0xff]  ;;  %v2772_v46 = vld [vmem:[%s11020_s2 + $0x18] sm:$0xff] }
 0xefe   :  { %7624 = vmatmul.mubr.msk.f32.vlgmr.msra.gmra.mxu1 %vm359_vm4, %v2566_v38  ;;  %7647 = vmatprep.subr.mxu0 %v2808_v26  ;;  %v2804_v38 = vld [vmem:[%s11020_s2 + $0x118] sm:$0xff]  ;;  %v2787_v39 = vld [vmem:[%s11020_s2 + $0x90] sm:$0xff] }
 0xeff   :  { %7627 = vmatpush3.msk.msra.mxu1 %vm363_vm3, %v9186_v36  ;;  %7628 = vmatprep.mubr.msk.f32.mxu1 %vm8313_vm0, %v8312_v0 }
 0xf00   :  { %6770 = vmatprep.subr.mxu1 %v2800_v40  ;;  %7648 = vmatpush3.msra.mxu0 %v2808_v26  ;;  %v2771_v40 = vld [vmem:[%s11020_s2 + $0x10] sm:$0xff] }
 0xf01   :  { %7649 = vmatprep.subr.mxu0 %v2807_v29 }
 0xf02   :  { %7629 = vmatmul.mubr.msk.f32.vlgmr.msra.gmra.mxu1 %vm359_vm4, %v2681_v49  ;;  %7650 = vmatpush3.msra.mxu0 %v2807_v29  ;;  %v2786_v49 = vld [vmem:[%s11020_s2 + $0x88] sm:$0xff] }
 0xf03   :  { %6771 = vmatpush3.msra.mxu1 %v2784_v47  ;;  %7651 = vmatprep.subr.mxu0 %v2806_v31  ;;  %v2803_v47 = vld [vmem:[%s11020_s2 + $0x110] sm:$0xff] }
 0xf04   :  { %6772 = vmatprep.subr.mxu1 %v2799_v28  ;;  %7652 = vmatpush3.msra.mxu0 %v2806_v31  ;;  %v2770_v28 = vld [vmem:[%s11020_s2 + $0x8] sm:$0xff] }
 0xf05   :  { %6773 = vmatpush3.msra.mxu1 %v2783_v2  ;;  %7653 = vmatprep.subr.mxu0 %v2805_v54  ;;  %v2802_v2 = vld [vmem:[%s11020_s2 + $0x108] sm:$0xff] }
 0xf06   :  { %6774 = vmatprep.subr.mxu1 %v2798_v50  ;;  %7654 = vmatpush3.msra.mxu0 %v2805_v54  ;;  %v2785_v50 = vld [vmem:[%s11020_s2 + $0x80] sm:$0xff] }
 0xf07   :  { %6775 = vmatpush3.msra.mxu1 %v2782_v21  ;;  %7655 = vmatprep.subr.mxu0 %v2804_v38  ;;  %v2769_v21 = vld [vmem:[%s11020_s2] sm:$0xff] }
 0xf08   :  { %6776 = vmatprep.subr.mxu1 %v2797_v51  ;;  %7656 = vmatpush3.msra.mxu0 %v2804_v38  ;;  %v2801_v51 = vld [vmem:[%s11020_s2 + $0x100] sm:$0xff] }
 0xf09   :  { %6777 = vmatpush3.msra.mxu1 %v2781_v52  ;;  %7657 = vmatprep.subr.mxu0 %v2803_v47 }
 0xf0a   :  { %6778 = vmatprep.subr.mxu1 %v2796_v53  ;;  %7658 = vmatpush3.msra.mxu0 %v2803_v47 }
 0xf0b   :  { %6779 = vmatpush3.msra.mxu1 %v2780_v56  ;;  %7659 = vmatprep.subr.mxu0 %v2802_v2 }
 0xf0c   :  { %6780 = vmatprep.subr.mxu1 %v2795_v3  ;;  %7660 = vmatpush3.msra.mxu0 %v2802_v2 }
 0xf0d   :  { %6781 = vmatpush3.msra.mxu1 %v2779_v59  ;;  %7661 = vmatprep.subr.mxu0 %v2801_v51 }
 0xf0e   :  { %6782 = vmatprep.subr.mxu1 %v2794_v61  ;;  %7662 = vmatpush3.msra.mxu0 %v2801_v51 }
 0xf0f   :  { %6783 = vmatpush3.msra.mxu1 %v2778_v63  ;;  %7715 = vmatprep.subr.mxu0 %v8312_v0 }
 0xf10   :  { %6784 = vmatprep.subr.mxu1 %v2793_v5 }
 0xf11   :  { %6785 = vmatpush3.msra.mxu1 %v2777_v22 }
 0xf12   :  { %6786 = vmatprep.subr.mxu1 %v2792_v24 }
 0xf13   :  { %6787 = vmatpush3.msra.mxu1 %v2776_v25 }
 0xf14   :  { %6788 = vmatprep.subr.mxu1 %v2791_v27 }
 0xf15   :  { %6789 = vmatpush3.msra.mxu1 %v2775_v45 }
 0xf16   :  { %6790 = vmatprep.subr.mxu1 %v2790_v44 }
 0xf17   :  { %6791 = vmatpush3.msra.mxu1 %v2774_v30 }
 0xf18   :  { %6792 = vmatprep.subr.mxu1 %v2789_v32 }
 0xf19   :  { %6793 = vmatpush3.msra.mxu1 %v2773_v55 }
 0xf1a   :  { %6794 = vmatprep.subr.mxu1 %v2788_v37 }
 0xf1b   :  { %6795 = vmatpush3.msra.mxu1 %v2772_v46 }
 0xf1c   :  { %6796 = vmatprep.subr.mxu1 %v2787_v39 }
 0xf1d   :  { %6797 = vmatpush3.msra.mxu1 %v2771_v40 }
 0xf1e   :  { %6798 = vmatprep.subr.mxu1 %v2786_v49  ;;  %v9760_v49 = vld [vmem:[%s11018_s10 + $0x78] sm:$0xff] }
 0xf1f   :  { %6799 = vmatpush3.msra.mxu1 %v2770_v28 }
 0xf20   :  { %6800 = vmatprep.subr.mxu1 %v2785_v50 }
 0xf21   :  { %6801 = vmatpush3.msra.mxu1 %v2769_v21 }
 0xf22   :  { %7666 = vmatprep.subr.mxu1 %v8312_v0 }
 0xfbe   :  { %v9721_v52 = vpop.f32.mrf.mxu1 }
 0xfc0   :  { %v7625_v53 = vpop.f32.mrf.mxu1 }
 0xfc2   :  { %v2751_v56 = vpop.f32.mrf.mxu1 }
 0xfc3   :  { %v2758_v58 = vrot.slane %v2751_v56, %v8571_v57  ;;  %v2764_v61 = vrot.slane %v2751_v56, %v8701_v62 }
 0xfc4   :  { %v7630_v3 = vpop.f32.mrf.mxu1 }
 0xfc5   :  { %v2759_v59 = vmul.f32 %v2758_v58, %v9499_v43  ;;  %v2760_v60 = vmul.f32 %v2758_v58, %v9496_v41  ;;  %v2977_v3 = vld [vmem:[%s11023_s5] sm:$0x1] }
 0xfc7   :  { %v2765_v63 = vadd.f32 %v2764_v61, %v2759_v59  ;;  %v2766_v4 = vadd.f32 %v2764_v61, %v2760_v60  ;;  %v2978_v61 = vld [vmem:[%s11024_s6] sm:$0x1] }
 0xfc9   :  { %v2768_v5 = vmax.f32 %v2766_v4, 0.0  ;;  %v2767_v22 = vmax.f32 %v2765_v63, 0.0 }
 0xfcb   :  { %2818 = vst [vmem:[#allocation2 + $0x10] sm:$0xff] %v2768_v5  ;;  %2891 = vmatprep.mubr.f32.mxu1 %v2767_v22  ;;  %2817 = vst [vmem:[#allocation2 + $0x8] sm:$0xff] %v2767_v22  ;;  %v6210_v22 = vld [vmem:[%s11020_s2 + $0x1f8] sm:$0xff] }
 0xfd2   :  { %v2819_v23 = vld [vmem:[#allocation2 + $0x7] sm:$0xff]  ;;  %v2824_v25 = vld [vmem:[#allocation2 + $0x11] sm:$0xff] }
 0xfd3   :  { %v2823_v24 = vld [vmem:[#allocation2 + $0x9] sm:$0xff]  ;;  %v2821_v26 = vmul.f32 %v8710_v33, %v2819_v23  ;;  %v2826_v45 = vmul.f32 %v8716_v35, %v2824_v25 }
 0xfd4   :  { %v2825_v27 = vmul.f32 %v8713_v34, %v2823_v24  ;;  %v2820_v29 = vld [vmem:[#allocation2 + $0xf] sm:$0xff] }
 0xfd5   :  { %2892 = vmatmul.mubr.f32.vlgmr.msra.gmra.mxu1 %v2821_v26  ;;  %v2822_v44 = vmul.f32 %v8722_v42, %v2820_v29  ;;  %v6225_v24 = vld [vmem:[%s11020_s2 + $0x270] sm:$0xff]  ;;  %v6224_v26 = vld [vmem:[%s11020_s2 + $0x268] sm:$0xff]  ;;  %v6207_v29 = vld [vmem:[%s11020_s2 + $0x1e0] sm:$0xff] }
 0xfd6   :  { %7663 = vmatprep.mubr.f32.mxu0 %v2825_v27  ;;  %2896 = vmatprep.mubr.f32.mxu1 %v2768_v5  ;;  %v6209_v25 = vld [vmem:[%s11020_s2 + $0x1f0] sm:$0xff]  ;;  %v6208_v27 = vld [vmem:[%s11020_s2 + $0x1e8] sm:$0xff] }
 0xfd7   :  { %7664 = vmatmul.mubr.f32.vlgmr.msra.gmra.mxu0 %v2826_v45  ;;  %v6223_v45 = vld [vmem:[%s11020_s2 + $0x260] sm:$0xff] }
 0xfd8   :  { %7716 = vmatpush3.msk.msra.mxu0 %vm363_vm3, %v9186_v36  ;;  %7717 = vmatprep.mubr.msk.f32.mxu0 %vm8313_vm0, %v8312_v0 }
 0xfd9   :  { %2897 = vmatmul.mubr.f32.gmra.mxu1 %v2822_v44  ;;  %v6222_v44 = vld [vmem:[%s11020_s2 + $0x258] sm:$0xff] }
 0xfda   :  { %7670 = vmatprep.mubr.msk.f32.mxu1 %vm8313_vm0, %v8312_v0 }
0x1095   :  { %v6802_v30 = vpop.f32.mrf.mxu1 }
0x1097   :  { %v6803_v31 = vpop.f32.mrf.mxu1  ;;  %v7665_v32 = vpop.f32.mrf.mxu0 }
0x1098   :  { %v6804_v37 = vadd.f32 %v6803_v31, %v6802_v30  ;;  %v6206_v30 = vld [vmem:[%s11020_s2 + $0x1d8] sm:$0xff]  ;;  %v6221_v31 = vld [vmem:[%s11020_s2 + $0x250] sm:$0xff] }
0x1099   :  { %v6805_v55 = vpop.f32.mrf.mxu1  ;;  %v2968_v38 = vpop.f32.mrf.mxu0 }
0x109a   :  { %v9739_v40 = vadd.f32 %v6804_v37, %v2968_v38  ;;  %v6236_v37 = vld [vmem:[%s11020_s2 + $0x2c8] sm:$0xff]  ;;  %v6203_v38 = vld [vmem:[%s11020_s2 + $0x1c0] sm:$0xff] }
0x109b   :  { %v6806_v54 = vpop.f32.mrf.mxu1 }
0x109c   :  { %v6807_v46 = vadd.f32 %v6806_v54, %v6805_v55  ;;  %v3049_v47 = vmul.f32 %v9739_v40, %v9739_v40  ;;  %v6220_v55 = vld [vmem:[%s11020_s2 + $0x248] sm:$0xff] }
0x109d   :  { %v6204_v54 = vld [vmem:[%s11020_s2 + $0x1c8] sm:$0xff] }
0x109e   :  { %v9737_v39 = vadd.f32 %v7665_v32, %v6807_v46  ;;  %v6205_v32 = vld [vmem:[%s11020_s2 + $0x1d0] sm:$0xff]  ;;  %v6219_v46 = vld [vmem:[%s11020_s2 + $0x240] sm:$0xff] }
0x10a0   :  { %7667 = vmatpush3.msra.mxu1 %v9737_v39  ;;  %v3050_v36 = vmul.f32 %v9737_v39, %v9737_v39 }
0x10a1   :  { %7668 = vmatprep.subr.mxu1 %v8312_v0 }
0x10a2   :  { %7669 = vmatpush3.msra.mxu1 %v9739_v40 }
0x10a3   :  { %7671 = vmatmul.mubr.msk.f32.vlgmr.msra.gmra.mxu1 %vm103_vm1, %v8314_v7  ;;  %7673 = vmatprep.subr.mxu1 %v8312_v0 }
0x10a4   :  { %7674 = vmatpush3.msra.mxu1 %v3050_v36  ;;  %7677 = vmatprep.mubr.msk.f32.mxu1 %vm8313_vm0, %v8312_v0  ;;  %v6235_v36 = vld [vmem:[%s11020_s2 + $0x2c0] sm:$0xff] }
0x10a5   :  { %7675 = vmatprep.subr.mxu1 %v8312_v0 }
0x10a6   :  { %7676 = vmatpush3.msra.mxu1 %v3049_v47  ;;  %v6218_v47 = vld [vmem:[%s11020_s2 + $0x238] sm:$0xff] }
0x10a7   :  { %7678 = vmatmul.mubr.msk.f32.vlgmr.msra.gmra.mxu1 %vm103_vm1, %v8314_v7  ;;  %7680 = vmatprep.subr.mxu1 %v8312_v0 }
0x10a8   :  { %7681 = vmatpush3.msra.mxu1 %v9760_v49  ;;  %7712 = vmatprep.mubr.msk.f32.mxu1 %vm8313_vm0, %v8312_v0 }
0x10a9   :  { %7682 = vmatprep.subr.mxu1 %v8312_v0 }
0x10aa   :  { %7683 = vmatpush3.msra.mxu1 %v9221_v1 }
0x10ab   :  { %7684 = vmatprep.subr.mxu1 %v8312_v0 }
0x10ac   :  { %7685 = vmatpush3.msra.mxu1 %v9228_v6 }
0x10ad   :  { %7686 = vmatprep.subr.mxu1 %v8312_v0 }
0x10ae   :  { %7687 = vmatpush3.msra.mxu1 %v9235_v8 }
0x10af   :  { %7688 = vmatprep.subr.mxu1 %v8312_v0 }
0x10b0   :  { %7689 = vmatpush3.msra.mxu1 %v9242_v9 }
0x10b1   :  { %7690 = vmatprep.subr.mxu1 %v8312_v0 }
0x10b2   :  { %7691 = vmatpush3.msra.mxu1 %v9249_v10 }
0x10b3   :  { %7692 = vmatprep.subr.mxu1 %v8312_v0 }
0x10b4   :  { %7693 = vmatpush3.msra.mxu1 %v9256_v11 }
0x10b5   :  { %7694 = vmatprep.subr.mxu1 %v8312_v0 }
0x10b6   :  { %7695 = vmatpush3.msra.mxu1 %v9263_v12  ;;  %v6226_v12 = vld [vmem:[%s11020_s2 + $0x278] sm:$0xff] }
0x10b7   :  { %7696 = vmatprep.subr.mxu1 %v8312_v0  ;;  %6851 = vmatprep.subr.mxu0 %v6226_v12  ;;  %v6200_v12 = vld [vmem:[%s11020_s2 + $0x1a8] sm:$0xff] }
0x10b8   :  { %7697 = vmatpush3.msra.mxu1 %v9270_v13  ;;  %v6242_v13 = vld [vmem:[%s11020_s2 + $0x2f8] sm:$0xff] }
0x10b9   :  { %7698 = vmatprep.subr.mxu1 %v8312_v0 }
0x10ba   :  { %7699 = vmatpush3.msra.mxu1 %v9277_v14  ;;  %v6241_v14 = vld [vmem:[%s11020_s2 + $0x2f0] sm:$0xff] }
0x10bb   :  { %7700 = vmatprep.subr.mxu1 %v8312_v0 }
0x10bc   :  { %7701 = vmatpush3.msra.mxu1 %v9284_v15  ;;  %v6240_v15 = vld [vmem:[%s11020_s2 + $0x2e8] sm:$0xff] }
0x10bd   :  { %7702 = vmatprep.subr.mxu1 %v8312_v0 }
0x10be   :  { %7703 = vmatpush3.msra.mxu1 %v9291_v16  ;;  %v6239_v16 = vld [vmem:[%s11020_s2 + $0x2e0] sm:$0xff] }
0x10bf   :  { %7704 = vmatprep.subr.mxu1 %v8312_v0 }
0x10c0   :  { %7705 = vmatpush3.msra.mxu1 %v9298_v17  ;;  %v6238_v17 = vld [vmem:[%s11020_s2 + $0x2d8] sm:$0xff] }
0x10c1   :  { %7706 = vmatprep.subr.mxu1 %v8312_v0 }
0x10c2   :  { %7707 = vmatpush3.msra.mxu1 %v9305_v18  ;;  %v6237_v18 = vld [vmem:[%s11020_s2 + $0x2d0] sm:$0xff] }
0x10c3   :  { %7708 = vmatprep.subr.mxu1 %v8312_v0 }
0x10c4   :  { %7709 = vmatpush3.msra.mxu1 %v9312_v19 }
0x10c5   :  { %7710 = vmatprep.subr.mxu1 %v8312_v0 }
0x10c6   :  { %7711 = vmatpush3.msra.mxu1 %v9319_v20 }
0x10c7   :  { %7720 = vmatprep.subr.mxu1 %v6242_v13 }
0x1163   :  { %v3045_v1 = vpop.f32.mrf.mxu1 }
0x1165   :  { %v7672_v6 = vpop.f32.mrf.mxu1 }
0x1166   :  { %v6234_v6 = vld [vmem:[%s11020_s2 + $0x2b8] sm:$0xff] }
0x1167   :  { %v3117_v8 = vpop.f32.mrf.mxu1 }
0x1168   :  { %v3122_v9 = vrot.slane %v3117_v8, 7  ;;  %v6217_v8 = vld [vmem:[%s11020_s2 + $0x230] sm:$0xff] }
0x1169   :  { %v7679_v10 = vpop.f32.mrf.mxu1 }
0x116a   :  { %v3124_v11 = vsel %vm252_vm2, %v3045_v1, %v3122_v9  ;;  %v6202_v1 = vld [vmem:[%s11020_s2 + $0x1b8] sm:$0xff]  ;;  %v6201_v9 = vld [vmem:[%s11020_s2 + $0x1b0] sm:$0xff] }
0x116b   :  { %7713 = vmatmul.mubr.f32.vlgmr.msra.gmra.mxu1 %v3124_v11  ;;  %v6233_v10 = vld [vmem:[%s11020_s2 + $0x2b0] sm:$0xff]  ;;  %v6216_v11 = vld [vmem:[%s11020_s2 + $0x228] sm:$0xff] }
0x116c   :  { %7721 = vmatpush3.msra.mxu1 %v6242_v13  ;;  %v6232_v13 = vld [vmem:[%s11020_s2 + $0x2a8] sm:$0xff] }
0x116d   :  { %7722 = vmatprep.subr.mxu1 %v6241_v14 }
0x116e   :  { %7723 = vmatpush3.msra.mxu1 %v6241_v14  ;;  %v6215_v14 = vld [vmem:[%s11020_s2 + $0x220] sm:$0xff] }
0x116f   :  { %7724 = vmatprep.subr.mxu1 %v6240_v15 }
0x1170   :  { %7725 = vmatpush3.msra.mxu1 %v6240_v15  ;;  %v6199_v15 = vld [vmem:[%s11020_s2 + $0x1a0] sm:$0xff] }
0x1171   :  { %7726 = vmatprep.subr.mxu1 %v6239_v16 }
0x1172   :  { %7727 = vmatpush3.msra.mxu1 %v6239_v16  ;;  %v6231_v16 = vld [vmem:[%s11020_s2 + $0x2a0] sm:$0xff] }
0x1173   :  { %7728 = vmatprep.subr.mxu1 %v6238_v17 }
0x1174   :  { %7729 = vmatpush3.msra.mxu1 %v6238_v17  ;;  %v6214_v17 = vld [vmem:[%s11020_s2 + $0x218] sm:$0xff] }
0x1175   :  { %7730 = vmatprep.subr.mxu1 %v6237_v18 }
0x1176   :  { %7731 = vmatpush3.msra.mxu1 %v6237_v18  ;;  %v6198_v18 = vld [vmem:[%s11020_s2 + $0x198] sm:$0xff] }
0x1177   :  { %7732 = vmatprep.subr.mxu1 %v6236_v37 }
0x1178   :  { %7733 = vmatpush3.msra.mxu1 %v6236_v37 }
0x1179   :  { %7734 = vmatprep.subr.mxu1 %v6235_v36 }
0x117a   :  { %7735 = vmatpush3.msra.mxu1 %v6235_v36 }
0x117b   :  { %7736 = vmatprep.subr.mxu1 %v6234_v6 }
0x117c   :  { %7737 = vmatpush3.msra.mxu1 %v6234_v6 }
0x117d   :  { %7738 = vmatprep.subr.mxu1 %v6233_v10 }
0x117e   :  { %7739 = vmatpush3.msra.mxu1 %v6233_v10 }
0x117f   :  { %7740 = vmatprep.subr.mxu1 %v6232_v13 }
0x1180   :  { %7741 = vmatpush3.msra.mxu1 %v6232_v13  ;;  %v10015_v13 = vld [vmem:[%s11018_s10 + $0x60] sm:$0xff] }
0x1181   :  { %7742 = vmatprep.subr.mxu1 %v6231_v16 }
0x1182   :  { %7743 = vmatpush3.msra.mxu1 %v6231_v16  ;;  %v10036_v16 = vld [vmem:[%s11018_s10 + $0x48] sm:$0xff] }
0x122b   :  { %v3191_v19 = vpop.f32.mrf.mxu1 }
0x122c   :  { %v3195_v20 = vmul.f32 0.001953125, %v3191_v19  ;;  %v6230_v19 = vld [vmem:[%s11020_s2 + $0x298] sm:$0xff] }
0x122d   :  { %v7714_v28 = vpop.f32.mrf.mxu1  ;;  %7744 = vmatprep.subr.mxu1 %v6230_v19 }
0x122e   :  { %v3196_v2 = vmul.f32 %v3195_v20, %v3195_v20  ;;  %v6197_v28 = vld [vmem:[%s11020_s2 + $0x190] sm:$0xff]  ;;  %7745 = vmatpush3.msra.mxu1 %v6230_v19 }
0x122f   :  { %v10057_v19 = vld [vmem:[%s11018_s10 + $0x30] sm:$0xff] }
0x1230   :  { %v3198_v50 = vrot.slane %v3196_v2, 7  ;;  %v6229_v2 = vld [vmem:[%s11020_s2 + $0x290] sm:$0xff] }
0x1231   :  { %7746 = vmatprep.subr.mxu1 %v6229_v2 }
0x1232   :  { %v3200_v21 = vsub.f32 %v3195_v20, %v3198_v50  ;;  %v6212_v50 = vld [vmem:[%s11020_s2 + $0x208] sm:$0xff]  ;;  %7747 = vmatpush3.msra.mxu1 %v6229_v2  ;;  %v10078_v2 = vld [vmem:[%s11018_s10 + $0x18] sm:$0xff] }
0x1234   :  { %v3201_v51 = vadd.f32 1e-05, %v3200_v21  ;;  %v6196_v21 = vld [vmem:[%s11020_s2 + $0x188] sm:$0xff] }
0x1236   :  { %8249 = vrsqrt.f32 %v3201_v51  ;;  %v6228_v51 = vld [vmem:[%s11020_s2 + $0x288] sm:$0xff] }
0x1237   :  { %7748 = vmatprep.subr.mxu1 %v6228_v51 }
0x1238   :  { %7749 = vmatpush3.msra.mxu1 %v6228_v51  ;;  %v10099_v51 = vld [vmem:[%s11018_s10] sm:$0xff] }
0x1243   :  { %v8250_v53 = vpop.eup %8249 }
0x1244   :  { %v3210_v56 = vrot.slane %v8250_v53, %v8560_v48  ;;  %v6211_v53 = vld [vmem:[%s11020_s2 + $0x200] sm:$0xff] }
0x1246   :  { %v3211_v58 = vcombine.high %v3210_v56, %v3210_v56  ;;  %v6195_v56 = vld [vmem:[%s11020_s2 + $0x180] sm:$0xff] }
0x1248   :  { %v3218_v59 = vrot.slane %v3211_v58, %v8560_v48  ;;  %v6227_v58 = vld [vmem:[%s11020_s2 + $0x280] sm:$0xff] }
0x1249   :  { %7750 = vmatprep.subr.mxu1 %v6227_v58 }
0x124a   :  { %v3220_v60 = vmul.f32 %v3218_v59, %v2977_v3  ;;  %7751 = vmatpush3.msra.mxu1 %v6227_v58 }
0x124b   :  { %7804 = vmatprep.subr.mxu1 %v8312_v0 }
0x124c   :  { %v3221_v63 = vmul.f32 %v3220_v60, %v3195_v20  ;;  %v6213_v20 = vld [vmem:[%s11020_s2 + $0x210] sm:$0xff] }
0x124e   :  { %v3222_v4 = vsub.f32 %v2978_v61, %v3221_v63 }
0x1250   :  { %v3227_v5 = vrot.slane %v3222_v4, %v8571_v57 }
0x1252   :  { %v3229_v23 = vsel %vm252_vm2, %v3220_v60, %v3227_v5 }
0x1253   :  { %7718 = vmatmul.mubr.msk.f32.vlgmr.msra.gmra.mxu0 %vm359_vm4, %v3229_v23 }
0x1254   :  { %6852 = vmatpush3.msra.mxu0 %v6210_v22 }
0x1255   :  { %6853 = vmatprep.subr.mxu0 %v6225_v24 }
0x1256   :  { %6854 = vmatpush3.msra.mxu0 %v6209_v25 }
0x1257   :  { %6855 = vmatprep.subr.mxu0 %v6224_v26 }
0x1258   :  { %6856 = vmatpush3.msra.mxu0 %v6208_v27 }
0x1259   :  { %6857 = vmatprep.subr.mxu0 %v6223_v45 }
0x125a   :  { %6858 = vmatpush3.msra.mxu0 %v6207_v29 }
0x125b   :  { %6859 = vmatprep.subr.mxu0 %v6222_v44 }
0x125c   :  { %6860 = vmatpush3.msra.mxu0 %v6206_v30  ;;  %v9964_v30 = vld [vmem:[%s11019_s11] sm:$0xf] }
0x125d   :  { %6861 = vmatprep.subr.mxu0 %v6221_v31 }
0x125e   :  { %6862 = vmatpush3.msra.mxu0 %v6205_v32 }
0x125f   :  { %6863 = vmatprep.subr.mxu0 %v6220_v55 }
0x1260   :  { %6864 = vmatpush3.msra.mxu0 %v6204_v54 }
0x1261   :  { %6865 = vmatprep.subr.mxu0 %v6219_v46 }
0x1262   :  { %6866 = vmatpush3.msra.mxu0 %v6203_v38 }
0x1263   :  { %6867 = vmatprep.subr.mxu0 %v6218_v47 }
0x1264   :  { %6868 = vmatpush3.msra.mxu0 %v6202_v1 }
0x1265   :  { %6869 = vmatprep.subr.mxu0 %v6217_v8 }
0x1266   :  { %6870 = vmatpush3.msra.mxu0 %v6201_v9 }
0x1267   :  { %6871 = vmatprep.subr.mxu0 %v6216_v11  ;;  %v10001_v11 = vld [vmem:[%s11018_s10 + $0x70] sm:$0xff] }
0x1268   :  { %6872 = vmatpush3.msra.mxu0 %v6200_v12  ;;  %v10008_v12 = vld [vmem:[%s11018_s10 + $0x68] sm:$0xff] }
0x1269   :  { %6873 = vmatprep.subr.mxu0 %v6215_v14  ;;  %v10022_v14 = vld [vmem:[%s11018_s10 + $0x58] sm:$0xff] }
0x126a   :  { %6874 = vmatpush3.msra.mxu0 %v6199_v15  ;;  %v10029_v15 = vld [vmem:[%s11018_s10 + $0x50] sm:$0xff] }
0x126b   :  { %6875 = vmatprep.subr.mxu0 %v6214_v17  ;;  %v10043_v17 = vld [vmem:[%s11018_s10 + $0x40] sm:$0xff] }
0x126c   :  { %6876 = vmatpush3.msra.mxu0 %v6198_v18  ;;  %v10050_v18 = vld [vmem:[%s11018_s10 + $0x38] sm:$0xff] }
0x126d   :  { %6877 = vmatprep.subr.mxu0 %v6213_v20  ;;  %v10064_v20 = vld [vmem:[%s11018_s10 + $0x28] sm:$0xff] }
0x126e   :  { %6878 = vmatpush3.msra.mxu0 %v6197_v28  ;;  %v10071_v28 = vld [vmem:[%s11018_s10 + $0x20] sm:$0xff] }
0x126f   :  { %6879 = vmatprep.subr.mxu0 %v6212_v50  ;;  %v10085_v50 = vld [vmem:[%s11018_s10 + $0x10] sm:$0xff] }
0x1270   :  { %6880 = vmatpush3.msra.mxu0 %v6196_v21  ;;  %v10092_v21 = vld [vmem:[%s11018_s10 + $0x8] sm:$0xff] }
0x1271   :  { %6881 = vmatprep.subr.mxu0 %v6211_v53 }
0x1272   :  { %6882 = vmatpush3.msra.mxu0 %v6195_v56 }
0x1273   :  { %7755 = vmatprep.subr.mxu0 %v8312_v0 }
0x1313   :  { %v3299_v3 = vpop.f32.mrf.mxu0 }
0x1314   :  { %v3306_v59 = vrot.slane %v3299_v3, %v8571_v57  ;;  %v3312_v4 = vrot.slane %v3299_v3, %v8701_v62 }
0x1315   :  { %v7719_v60 = vpop.f32.mrf.mxu0 }
0x1316   :  { %v3307_v61 = vmul.f32 %v3306_v59, %v9739_v40  ;;  %v3308_v63 = vmul.f32 %v3306_v59, %v9737_v39 }
0x1318   :  { %v3313_v5 = vadd.f32 %v3312_v4, %v3307_v61  ;;  %v3314_v22 = vadd.f32 %v3312_v4, %v3308_v63  ;;  %v6280_v61 = vld [vmem:[%s11020_s2 + $0x3f8] sm:$0xff]  ;;  %v6295_v4 = vld [vmem:[%s11020_s2 + $0x470] sm:$0xff] }
0x1319   :  { %v6296_v63 = vld [vmem:[%s11020_s2 + $0x478] sm:$0xff] }
0x131a   :  { %v3316_v23 = vmax.f32 %v3314_v22, 0.0  ;;  %v3315_v24 = vmax.f32 %v3313_v5, 0.0  ;;  %v6294_v5 = vld [vmem:[%s11020_s2 + $0x468] sm:$0xff]  ;;  %v6293_v22 = vld [vmem:[%s11020_s2 + $0x460] sm:$0xff] }
0x131c   :  { %3366 = vst [vmem:[#allocation2 + $0x10] sm:$0xff] %v3316_v23  ;;  %3439 = vmatprep.mubr.f32.mxu0 %v3315_v24  ;;  %3365 = vst [vmem:[#allocation2 + $0x8] sm:$0xff] %v3315_v24  ;;  %v6291_v24 = vld [vmem:[%s11020_s2 + $0x450] sm:$0xff] }
0x1323   :  { %v3367_v25 = vld [vmem:[#allocation2 + $0x7] sm:$0xff]  ;;  %v3372_v27 = vld [vmem:[#allocation2 + $0x11] sm:$0xff] }
0x1324   :  { %v3371_v26 = vld [vmem:[#allocation2 + $0x9] sm:$0xff]  ;;  %v3369_v45 = vmul.f32 %v8710_v33, %v3367_v25  ;;  %v3374_v40 = vmul.f32 %v8716_v35, %v3372_v27 }
0x1325   :  { %v3373_v29 = vmul.f32 %v8713_v34, %v3371_v26  ;;  %v3368_v44 = vld [vmem:[#allocation2 + $0xf] sm:$0xff] }
0x1326   :  { %3440 = vmatmul.mubr.f32.vlgmr.msra.gmra.mxu0 %v3369_v45  ;;  %v3370_v39 = vmul.f32 %v8722_v42, %v3368_v44 }
0x1327   :  { %7752 = vmatprep.mubr.f32.mxu1 %v3373_v29  ;;  %3444 = vmatprep.mubr.f32.mxu0 %v3316_v23  ;;  %v6292_v23 = vld [vmem:[%s11020_s2 + $0x458] sm:$0xff] }
0x1328   :  { %7753 = vmatmul.mubr.f32.vlgmr.msra.gmra.mxu1 %v3374_v40 }
0x1329   :  { %7805 = vmatpush3.msk.msra.mxu1 %vm363_vm3, %v9964_v30  ;;  %7806 = vmatprep.mubr.msk.f32.mxu1 %vm8313_vm0, %v8312_v0 }
0x132a   :  { %3445 = vmatmul.mubr.f32.gmra.mxu0 %v3370_v39  ;;  %6932 = vmatprep.subr.mxu1 %v6280_v61  ;;  %v6260_v61 = vld [vmem:[%s11020_s2 + $0x358] sm:$0xff] }
0x132b   :  { %7759 = vmatprep.mubr.msk.f32.mxu0 %vm8313_vm0, %v8312_v0 }
0x13e6   :  { %v6883_v31 = vpop.f32.mrf.mxu0 }
0x13e8   :  { %v7754_v32 = vpop.f32.mrf.mxu1  ;;  %v6884_v55 = vpop.f32.mrf.mxu0 }
0x13e9   :  { %v6885_v37 = vadd.f32 %v6884_v55, %v6883_v31  ;;  %v6243_v55 = vld [vmem:[%s11021_s3 + $0x1] sm:$0x1] }
0x13ea   :  { %v6886_v54 = vpop.f32.mrf.mxu0  ;;  %v3516_v46 = vpop.f32.mrf.mxu1 }
0x13eb   :  { %v3517_v47 = vadd.f32 %v6885_v37, %v3516_v46  ;;  %v6244_v46 = vld [vmem:[%s11022_s4 + $0x1] sm:$0x1] }
0x13ec   :  { %v6887_v38 = vpop.f32.mrf.mxu0 }
0x13ed   :  { %v6888_v36 = vadd.f32 %v6887_v38, %v6886_v54  ;;  %v9976_v8 = vadd.f32 %v3517_v47, %v9499_v43 }
0x13ef   :  { %v3522_v1 = vadd.f32 %v7754_v32, %v6888_v36  ;;  %v3599_v10 = vmul.f32 %v9976_v8, %v9976_v8 }
0x13f1   :  { %v9973_v6 = vadd.f32 %v3522_v1, %v9496_v41  ;;  %v6264_v1 = vld [vmem:[%s11020_s2 + $0x378] sm:$0xff] }
0x13f3   :  { %7756 = vmatpush3.msra.mxu0 %v9973_v6  ;;  %v3600_v9 = vmul.f32 %v9973_v6, %v9973_v6 }
0x13f4   :  { %7757 = vmatprep.subr.mxu0 %v8312_v0 }
0x13f5   :  { %7758 = vmatpush3.msra.mxu0 %v9976_v8 }
0x13f6   :  { %7760 = vmatmul.mubr.msk.f32.vlgmr.msra.gmra.mxu0 %vm103_vm1, %v8314_v7  ;;  %7762 = vmatprep.subr.mxu0 %v8312_v0 }
0x13f7   :  { %7763 = vmatpush3.msra.mxu0 %v3600_v9  ;;  %7766 = vmatprep.mubr.msk.f32.mxu0 %vm8313_vm0, %v8312_v0 }
0x13f8   :  { %7764 = vmatprep.subr.mxu0 %v8312_v0 }
0x13f9   :  { %7765 = vmatpush3.msra.mxu0 %v3599_v10  ;;  %v6279_v10 = vld [vmem:[%s11020_s2 + $0x3f0] sm:$0xff] }
0x13fa   :  { %7767 = vmatmul.mubr.msk.f32.vlgmr.msra.gmra.mxu0 %vm103_vm1, %v8314_v7  ;;  %7769 = vmatprep.subr.mxu0 %v8312_v0 }
0x13fb   :  { %7770 = vmatpush3.msra.mxu0 %v9760_v49  ;;  %7801 = vmatprep.mubr.msk.f32.mxu0 %vm8313_vm0, %v8312_v0 }
0x13fc   :  { %7771 = vmatprep.subr.mxu0 %v8312_v0 }
0x13fd   :  { %7772 = vmatpush3.msra.mxu0 %v10001_v11 }
0x13fe   :  { %7773 = vmatprep.subr.mxu0 %v8312_v0 }
0x13ff   :  { %7774 = vmatpush3.msra.mxu0 %v10008_v12 }
0x1400   :  { %7775 = vmatprep.subr.mxu0 %v8312_v0 }
0x1401   :  { %7776 = vmatpush3.msra.mxu0 %v10015_v13 }
0x1402   :  { %7777 = vmatprep.subr.mxu0 %v8312_v0 }
0x1403   :  { %7778 = vmatpush3.msra.mxu0 %v10022_v14 }
0x1404   :  { %7779 = vmatprep.subr.mxu0 %v8312_v0 }
0x1405   :  { %7780 = vmatpush3.msra.mxu0 %v10029_v15 }
0x1406   :  { %7781 = vmatprep.subr.mxu0 %v8312_v0 }
0x1407   :  { %7782 = vmatpush3.msra.mxu0 %v10036_v16 }
0x1408   :  { %7783 = vmatprep.subr.mxu0 %v8312_v0 }
0x1409   :  { %7784 = vmatpush3.msra.mxu0 %v10043_v17 }
0x140a   :  { %7785 = vmatprep.subr.mxu0 %v8312_v0 }
0x140b   :  { %7786 = vmatpush3.msra.mxu0 %v10050_v18 }
0x140c   :  { %7787 = vmatprep.subr.mxu0 %v8312_v0 }
0x140d   :  { %7788 = vmatpush3.msra.mxu0 %v10057_v19 }
0x140e   :  { %7789 = vmatprep.subr.mxu0 %v8312_v0 }
0x140f   :  { %7790 = vmatpush3.msra.mxu0 %v10064_v20 }
0x1410   :  { %7791 = vmatprep.subr.mxu0 %v8312_v0 }
0x1411   :  { %7792 = vmatpush3.msra.mxu0 %v10071_v28 }
0x1412   :  { %7793 = vmatprep.subr.mxu0 %v8312_v0 }
0x1413   :  { %7794 = vmatpush3.msra.mxu0 %v10078_v2 }
0x1414   :  { %7795 = vmatprep.subr.mxu0 %v8312_v0 }
0x1415   :  { %7796 = vmatpush3.msra.mxu0 %v10085_v50 }
0x1416   :  { %7797 = vmatprep.subr.mxu0 %v8312_v0 }
0x1417   :  { %7798 = vmatpush3.msra.mxu0 %v10092_v21 }
0x1418   :  { %7799 = vmatprep.subr.mxu0 %v8312_v0 }
0x1419   :  { %7800 = vmatpush3.msra.mxu0 %v10099_v51 }
0x141a   :  { %7809 = vmatprep.subr.mxu0 %v6296_v63 }
0x14b6   :  { %v3595_v53 = vpop.f32.mrf.mxu0 }
0x14b8   :  { %v7761_v56 = vpop.f32.mrf.mxu0 }
0x14b9   :  { %v6278_v56 = vld [vmem:[%s11020_s2 + $0x3e8] sm:$0xff] }
0x14ba   :  { %v3667_v58 = vpop.f32.mrf.mxu0 }
0x14bb   :  { %v3672_v3 = vrot.slane %v3667_v58, 7  ;;  %v6262_v58 = vld [vmem:[%s11020_s2 + $0x368] sm:$0xff] }
0x14bc   :  { %v7768_v59 = vpop.f32.mrf.mxu0 }
0x14bd   :  { %v3674_v60 = vsel %vm252_vm2, %v3595_v53, %v3672_v3  ;;  %v6263_v53 = vld [vmem:[%s11020_s2 + $0x370] sm:$0xff]  ;;  %v6277_v3 = vld [vmem:[%s11020_s2 + $0x3e0] sm:$0xff] }
0x14be   :  { %7802 = vmatmul.mubr.f32.vlgmr.msra.gmra.mxu0 %v3674_v60  ;;  %v6261_v59 = vld [vmem:[%s11020_s2 + $0x360] sm:$0xff]  ;;  %v6276_v60 = vld [vmem:[%s11020_s2 + $0x3d8] sm:$0xff] }
0x14bf   :  { %7810 = vmatpush3.msra.mxu0 %v6296_v63  ;;  %v6275_v63 = vld [vmem:[%s11020_s2 + $0x3d0] sm:$0xff] }
0x14c0   :  { %7811 = vmatprep.subr.mxu0 %v6295_v4 }
0x14c1   :  { %7812 = vmatpush3.msra.mxu0 %v6295_v4  ;;  %v6259_v4 = vld [vmem:[%s11020_s2 + $0x350] sm:$0xff] }
0x14c2   :  { %7813 = vmatprep.subr.mxu0 %v6294_v5 }
0x14c3   :  { %7814 = vmatpush3.msra.mxu0 %v6294_v5  ;;  %v6274_v5 = vld [vmem:[%s11020_s2 + $0x3c8] sm:$0xff] }
0x14c4   :  { %7815 = vmatprep.subr.mxu0 %v6293_v22 }
0x14c5   :  { %7816 = vmatpush3.msra.mxu0 %v6293_v22  ;;  %v6258_v22 = vld [vmem:[%s11020_s2 + $0x348] sm:$0xff] }
0x14c6   :  { %7817 = vmatprep.subr.mxu0 %v6292_v23 }
0x14c7   :  { %7818 = vmatpush3.msra.mxu0 %v6292_v23  ;;  %v6290_v23 = vld [vmem:[%s11020_s2 + $0x448] sm:$0xff] }
0x14c8   :  { %7819 = vmatprep.subr.mxu0 %v6291_v24 }
0x14c9   :  { %7820 = vmatpush3.msra.mxu0 %v6291_v24  ;;  %v6273_v24 = vld [vmem:[%s11020_s2 + $0x3c0] sm:$0xff] }
0x14ca   :  { %7821 = vmatprep.subr.mxu0 %v6290_v23 }
0x14cb   :  { %7822 = vmatpush3.msra.mxu0 %v6290_v23 }
0x157e   :  { %v3741_v25 = vpop.f32.mrf.mxu0 }
0x157f   :  { %v3745_v26 = vmul.f32 0.001953125, %v3741_v25  ;;  %v6257_v25 = vld [vmem:[%s11020_s2 + $0x340] sm:$0xff] }
0x1580   :  { %v7803_v27 = vpop.f32.mrf.mxu0 }
0x1581   :  { %v3746_v45 = vmul.f32 %v3745_v26, %v3745_v26  ;;  %v6272_v27 = vld [vmem:[%s11020_s2 + $0x3b8] sm:$0xff] }
0x1583   :  { %v3748_v29 = vrot.slane %v3746_v45, 7  ;;  %v6256_v45 = vld [vmem:[%s11020_s2 + $0x338] sm:$0xff] }
0x1585   :  { %v3750_v40 = vsub.f32 %v3745_v26, %v3748_v29  ;;  %v6288_v29 = vld [vmem:[%s11020_s2 + $0x438] sm:$0xff] }
0x1587   :  { %v3751_v44 = vadd.f32 1e-05, %v3750_v40  ;;  %v6271_v40 = vld [vmem:[%s11020_s2 + $0x3b0] sm:$0xff] }
0x1589   :  { %8251 = vrsqrt.f32 %v3751_v44  ;;  %v6255_v44 = vld [vmem:[%s11020_s2 + $0x330] sm:$0xff] }
0x1596   :  { %v8252_v39 = vpop.eup %8251 }
0x1597   :  { %v3760_v31 = vrot.slane %v8252_v39, %v8560_v48  ;;  %v6287_v39 = vld [vmem:[%s11020_s2 + $0x430] sm:$0xff] }
0x1599   :  { %v3761_v32 = vcombine.high %v3760_v31, %v3760_v31  ;;  %v6270_v31 = vld [vmem:[%s11020_s2 + $0x3a8] sm:$0xff] }
0x159b   :  { %v3768_v54 = vrot.slane %v3761_v32, %v8560_v48  ;;  %v6254_v32 = vld [vmem:[%s11020_s2 + $0x328] sm:$0xff] }
0x159d   :  { %v3770_v37 = vmul.f32 %v6243_v55, %v3768_v54  ;;  %v6286_v55 = vld [vmem:[%s11020_s2 + $0x428] sm:$0xff]  ;;  %v6269_v54 = vld [vmem:[%s11020_s2 + $0x3a0] sm:$0xff] }
0x159f   :  { %v3771_v38 = vmul.f32 %v3770_v37, %v3745_v26  ;;  %v6289_v26 = vld [vmem:[%s11020_s2 + $0x440] sm:$0xff] }
0x15a0   :  { %7823 = vmatprep.subr.mxu0 %v6289_v26 }
0x15a1   :  { %v3772_v36 = vsub.f32 %v6244_v46, %v3771_v38  ;;  %7824 = vmatpush3.msra.mxu0 %v6289_v26  ;;  %v6285_v46 = vld [vmem:[%s11020_s2 + $0x420] sm:$0xff]  ;;  %v6268_v38 = vld [vmem:[%s11020_s2 + $0x398] sm:$0xff] }
0x15a2   :  { %7825 = vmatprep.subr.mxu0 %v6288_v29 }
0x15a3   :  { %v3777_v47 = vrot.slane %v3772_v36, %v8571_v57  ;;  %7826 = vmatpush3.msra.mxu0 %v6288_v29  ;;  %v6252_v36 = vld [vmem:[%s11020_s2 + $0x318] sm:$0xff] }
0x15a4   :  { %7827 = vmatprep.subr.mxu0 %v6287_v39 }
0x15a5   :  { %v3779_v9 = vsel %vm252_vm2, %v3770_v37, %v3777_v47  ;;  %7828 = vmatpush3.msra.mxu0 %v6287_v39  ;;  %v6253_v37 = vld [vmem:[%s11020_s2 + $0x320] sm:$0xff]  ;;  %v6284_v47 = vld [vmem:[%s11020_s2 + $0x418] sm:$0xff] }
0x15a6   :  { %7807 = vmatmul.mubr.msk.f32.vlgmr.msra.gmra.mxu1 %vm359_vm4, %v3779_v9  ;;  %7829 = vmatprep.subr.mxu0 %v6286_v55  ;;  %v6251_v9 = vld [vmem:[%s11020_s2 + $0x310] sm:$0xff] }
0x15a7   :  { %6933 = vmatpush3.msra.mxu1 %v6264_v1  ;;  %7830 = vmatpush3.msra.mxu0 %v6286_v55  ;;  %v6267_v1 = vld [vmem:[%s11020_s2 + $0x390] sm:$0xff] }
0x15a8   :  { %6934 = vmatprep.subr.mxu1 %v6279_v10  ;;  %7831 = vmatprep.subr.mxu0 %v6285_v46  ;;  %v6283_v10 = vld [vmem:[%s11020_s2 + $0x410] sm:$0xff] }
0x15a9   :  { %6935 = vmatpush3.msra.mxu1 %v6263_v53  ;;  %7832 = vmatpush3.msra.mxu0 %v6285_v46  ;;  %v6266_v53 = vld [vmem:[%s11020_s2 + $0x388] sm:$0xff] }
0x15aa   :  { %6936 = vmatprep.subr.mxu1 %v6278_v56  ;;  %7833 = vmatprep.subr.mxu0 %v6284_v47  ;;  %v6250_v56 = vld [vmem:[%s11020_s2 + $0x308] sm:$0xff] }
0x15ab   :  { %6937 = vmatpush3.msra.mxu1 %v6262_v58  ;;  %7834 = vmatpush3.msra.mxu0 %v6284_v47  ;;  %v6282_v58 = vld [vmem:[%s11020_s2 + $0x408] sm:$0xff] }
0x15ac   :  { %6938 = vmatprep.subr.mxu1 %v6277_v3  ;;  %7835 = vmatprep.subr.mxu0 %v6283_v10  ;;  %v6265_v3 = vld [vmem:[%s11020_s2 + $0x380] sm:$0xff] }
0x15ad   :  { %6939 = vmatpush3.msra.mxu1 %v6261_v59  ;;  %7836 = vmatpush3.msra.mxu0 %v6283_v10  ;;  %v6249_v59 = vld [vmem:[%s11020_s2 + $0x300] sm:$0xff] }
0x15ae   :  { %6940 = vmatprep.subr.mxu1 %v6276_v60  ;;  %v6281_v60 = vld [vmem:[%s11020_s2 + $0x400] sm:$0xff]  ;;  %7837 = vmatprep.subr.mxu0 %v6282_v58 }
0x15af   :  { %6941 = vmatpush3.msra.mxu1 %v6260_v61  ;;  %7838 = vmatpush3.msra.mxu0 %v6282_v58 }
0x15b0   :  { %6942 = vmatprep.subr.mxu1 %v6275_v63  ;;  %7839 = vmatprep.subr.mxu0 %v6281_v60 }
0x15b1   :  { %6943 = vmatpush3.msra.mxu1 %v6259_v4  ;;  %7840 = vmatpush3.msra.mxu0 %v6281_v60 }
0x15b2   :  { %6944 = vmatprep.subr.mxu1 %v6274_v5  ;;  %7893 = vmatprep.subr.mxu0 %v8312_v0 }
0x15b3   :  { %6945 = vmatpush3.msra.mxu1 %v6258_v22 }
0x15b4   :  { %6946 = vmatprep.subr.mxu1 %v6273_v24 }
0x15b5   :  { %6947 = vmatpush3.msra.mxu1 %v6257_v25 }
0x15b6   :  { %6948 = vmatprep.subr.mxu1 %v6272_v27 }
0x15b7   :  { %6949 = vmatpush3.msra.mxu1 %v6256_v45 }
0x15b8   :  { %6950 = vmatprep.subr.mxu1 %v6271_v40 }
0x15b9   :  { %6951 = vmatpush3.msra.mxu1 %v6255_v44 }
0x15ba   :  { %6952 = vmatprep.subr.mxu1 %v6270_v31 }
0x15bb   :  { %6953 = vmatpush3.msra.mxu1 %v6254_v32 }
0x15bc   :  { %6954 = vmatprep.subr.mxu1 %v6269_v54 }
0x15bd   :  { %6955 = vmatpush3.msra.mxu1 %v6253_v37 }
0x15be   :  { %6956 = vmatprep.subr.mxu1 %v6268_v38 }
0x15bf   :  { %6957 = vmatpush3.msra.mxu1 %v6252_v36 }
0x15c0   :  { %6958 = vmatprep.subr.mxu1 %v6267_v1 }
0x15c1   :  { %6959 = vmatpush3.msra.mxu1 %v6251_v9 }
0x15c2   :  { %6960 = vmatprep.subr.mxu1 %v6266_v53 }
0x15c3   :  { %6961 = vmatpush3.msra.mxu1 %v6250_v56 }
0x15c4   :  { %6962 = vmatprep.subr.mxu1 %v6265_v3 }
0x15c5   :  { %6963 = vmatpush3.msra.mxu1 %v6249_v59 }
0x15c6   :  { %7844 = vmatprep.subr.mxu1 %v8312_v0 }
0x1666   :  { %v3849_v61 = vpop.f32.mrf.mxu1 }
0x1667   :  { %v3856_v63 = vrot.slane %v3849_v61, %v8571_v57  ;;  %v3862_v23 = vrot.slane %v3849_v61, %v8701_v62 }
0x1668   :  { %v7808_v4 = vpop.f32.mrf.mxu1 }
0x1669   :  { %v3857_v5 = vmul.f32 %v3856_v63, %v9976_v8  ;;  %v3858_v22 = vmul.f32 %v3856_v63, %v9973_v6  ;;  %v6334_v4 = vld [vmem:[%s11020_s2 + $0x578] sm:$0xff] }
0x166b   :  { %v3863_v24 = vadd.f32 %v3862_v23, %v3857_v5  ;;  %v3864_v25 = vadd.f32 %v3862_v23, %v3858_v22  ;;  %v6350_v5 = vld [vmem:[%s11020_s2 + $0x5f8] sm:$0xff]  ;;  %v6349_v22 = vld [vmem:[%s11020_s2 + $0x5f0] sm:$0xff]  ;;  %v6348_v23 = vld [vmem:[%s11020_s2 + $0x5e8] sm:$0xff] }
0x166d   :  { %v3866_v26 = vmax.f32 %v3864_v25, 0.0  ;;  %v3865_v27 = vmax.f32 %v3863_v24, 0.0  ;;  %v6347_v24 = vld [vmem:[%s11020_s2 + $0x5e0] sm:$0xff]  ;;  %v6346_v25 = vld [vmem:[%s11020_s2 + $0x5d8] sm:$0xff] }
0x166f   :  { %3916 = vst [vmem:[#allocation2 + $0x10] sm:$0xff] %v3866_v26  ;;  %3989 = vmatprep.mubr.f32.mxu1 %v3865_v27  ;;  %3915 = vst [vmem:[#allocation2 + $0x8] sm:$0xff] %v3865_v27 }
0x1676   :  { %v3917_v45 = vld [vmem:[#allocation2 + $0x7] sm:$0xff]  ;;  %v3922_v40 = vld [vmem:[#allocation2 + $0x11] sm:$0xff] }
0x1677   :  { %v3921_v29 = vld [vmem:[#allocation2 + $0x9] sm:$0xff]  ;;  %v3919_v44 = vmul.f32 %v8710_v33, %v3917_v45  ;;  %v3924_v31 = vmul.f32 %v8716_v35, %v3922_v40 }
0x1678   :  { %v3923_v39 = vmul.f32 %v8713_v34, %v3921_v29  ;;  %v3918_v32 = vld [vmem:[#allocation2 + $0xf] sm:$0xff] }
0x1679   :  { %3990 = vmatmul.mubr.f32.vlgmr.msra.gmra.mxu1 %v3919_v44  ;;  %v3920_v55 = vmul.f32 %v8722_v42, %v3918_v32 }
0x167a   :  { %7841 = vmatprep.mubr.f32.mxu0 %v3923_v39  ;;  %3994 = vmatprep.mubr.f32.mxu1 %v3866_v26  ;;  %v6345_v26 = vld [vmem:[%s11020_s2 + $0x5d0] sm:$0xff] }
0x167b   :  { %7842 = vmatmul.mubr.f32.vlgmr.msra.gmra.mxu0 %v3924_v31 }
0x167c   :  { %7894 = vmatpush3.msk.msra.mxu0 %vm363_vm3, %v9964_v30  ;;  %7895 = vmatprep.mubr.msk.f32.mxu0 %vm8313_vm0, %v8312_v0 }
0x167d   :  { %3995 = vmatmul.mubr.f32.gmra.mxu1 %v3920_v55  ;;  %7013 = vmatprep.subr.mxu0 %v6334_v4  ;;  %v6330_v4 = vld [vmem:[%s11020_s2 + $0x558] sm:$0xff] }
0x167e   :  { %7848 = vmatprep.mubr.msk.f32.mxu1 %vm8313_vm0, %v8312_v0 }
0x1739   :  { %v6964_v54 = vpop.f32.mrf.mxu1 }
0x173b   :  { %v6965_v37 = vpop.f32.mrf.mxu1  ;;  %v7843_v46 = vpop.f32.mrf.mxu0 }
0x173c   :  { %v6966_v47 = vadd.f32 %v6965_v37, %v6964_v54  ;;  %v6297_v37 = vld [vmem:[%s11023_s5 + $0x1] sm:$0x1] }
0x173d   :  { %v6967_v38 = vpop.f32.mrf.mxu1  ;;  %v4066_v9 = vpop.f32.mrf.mxu0 }
0x173e   :  { %v10276_v53 = vadd.f32 %v6966_v47, %v4066_v9 }
0x173f   :  { %v6968_v36 = vpop.f32.mrf.mxu1 }
0x1740   :  { %v6969_v1 = vadd.f32 %v6968_v36, %v6967_v38  ;;  %v4147_v58 = vmul.f32 %v10276_v53, %v10276_v53  ;;  %v6298_v36 = vld [vmem:[%s11024_s6 + $0x1] sm:$0x1] }
0x1742   :  { %v10274_v10 = vadd.f32 %v7843_v46, %v6969_v1 }
0x1744   :  { %7845 = vmatpush3.msra.mxu1 %v10274_v10  ;;  %v4148_v56 = vmul.f32 %v10274_v10, %v10274_v10 }
0x1745   :  { %7846 = vmatprep.subr.mxu1 %v8312_v0 }
0x1746   :  { %7847 = vmatpush3.msra.mxu1 %v10276_v53 }
0x1747   :  { %7849 = vmatmul.mubr.msk.f32.vlgmr.msra.gmra.mxu1 %vm103_vm1, %v8314_v7  ;;  %7851 = vmatprep.subr.mxu1 %v8312_v0 }
0x1748   :  { %7852 = vmatpush3.msra.mxu1 %v4148_v56  ;;  %7855 = vmatprep.mubr.msk.f32.mxu1 %vm8313_vm0, %v8312_v0  ;;  %v6318_v56 = vld [vmem:[%s11020_s2 + $0x4f8] sm:$0xff] }
0x1749   :  { %7853 = vmatprep.subr.mxu1 %v8312_v0 }
0x174a   :  { %7854 = vmatpush3.msra.mxu1 %v4147_v58 }
0x174b   :  { %7856 = vmatmul.mubr.msk.f32.vlgmr.msra.gmra.mxu1 %vm103_vm1, %v8314_v7  ;;  %7858 = vmatprep.subr.mxu1 %v8312_v0 }
0x174c   :  { %7859 = vmatpush3.msra.mxu1 %v9760_v49  ;;  %7890 = vmatprep.mubr.msk.f32.mxu1 %vm8313_vm0, %v8312_v0 }
0x174d   :  { %7860 = vmatprep.subr.mxu1 %v8312_v0 }
0x174e   :  { %7861 = vmatpush3.msra.mxu1 %v10001_v11 }
0x174f   :  { %7862 = vmatprep.subr.mxu1 %v8312_v0 }
0x1750   :  { %7863 = vmatpush3.msra.mxu1 %v10008_v12 }
0x1751   :  { %7864 = vmatprep.subr.mxu1 %v8312_v0 }
0x1752   :  { %7865 = vmatpush3.msra.mxu1 %v10015_v13 }
0x1753   :  { %7866 = vmatprep.subr.mxu1 %v8312_v0 }
0x1754   :  { %7867 = vmatpush3.msra.mxu1 %v10022_v14 }
0x1755   :  { %7868 = vmatprep.subr.mxu1 %v8312_v0 }
0x1756   :  { %7869 = vmatpush3.msra.mxu1 %v10029_v15 }
0x1757   :  { %7870 = vmatprep.subr.mxu1 %v8312_v0 }
0x1758   :  { %7871 = vmatpush3.msra.mxu1 %v10036_v16 }
0x1759   :  { %7872 = vmatprep.subr.mxu1 %v8312_v0 }
0x175a   :  { %7873 = vmatpush3.msra.mxu1 %v10043_v17 }
0x175b   :  { %7874 = vmatprep.subr.mxu1 %v8312_v0 }
0x175c   :  { %7875 = vmatpush3.msra.mxu1 %v10050_v18 }
0x175d   :  { %7876 = vmatprep.subr.mxu1 %v8312_v0 }
0x175e   :  { %7877 = vmatpush3.msra.mxu1 %v10057_v19 }
0x175f   :  { %7878 = vmatprep.subr.mxu1 %v8312_v0 }
0x1760   :  { %7879 = vmatpush3.msra.mxu1 %v10064_v20 }
0x1761   :  { %7880 = vmatprep.subr.mxu1 %v8312_v0 }
0x1762   :  { %7881 = vmatpush3.msra.mxu1 %v10071_v28 }
0x1763   :  { %7882 = vmatprep.subr.mxu1 %v8312_v0 }
0x1764   :  { %7883 = vmatpush3.msra.mxu1 %v10078_v2 }
0x1765   :  { %7884 = vmatprep.subr.mxu1 %v8312_v0 }
0x1766   :  { %7885 = vmatpush3.msra.mxu1 %v10085_v50 }
0x1767   :  { %7886 = vmatprep.subr.mxu1 %v8312_v0 }
0x1768   :  { %7887 = vmatpush3.msra.mxu1 %v10092_v21 }
0x1769   :  { %7888 = vmatprep.subr.mxu1 %v8312_v0 }
0x176a   :  { %7889 = vmatpush3.msra.mxu1 %v10099_v51 }
0x176b   :  { %7898 = vmatprep.subr.mxu1 %v6350_v5 }
0x1807   :  { %v4143_v49 = vpop.f32.mrf.mxu1 }
0x1809   :  { %v7850_v3 = vpop.f32.mrf.mxu1 }
0x180a   :  { %v6317_v3 = vld [vmem:[%s11020_s2 + $0x4f0] sm:$0xff] }
0x180b   :  { %v4215_v59 = vpop.f32.mrf.mxu1 }
0x180c   :  { %v4220_v60 = vrot.slane %v4215_v59, 7  ;;  %v6332_v59 = vld [vmem:[%s11020_s2 + $0x568] sm:$0xff] }
0x180d   :  { %v7857_v61 = vpop.f32.mrf.mxu1 }
0x180e   :  { %v4222_v63 = vsel %vm252_vm2, %v4143_v49, %v4220_v60  ;;  %v6333_v49 = vld [vmem:[%s11020_s2 + $0x570] sm:$0xff]  ;;  %v6316_v60 = vld [vmem:[%s11020_s2 + $0x4e8] sm:$0xff]  ;;  %v6331_v61 = vld [vmem:[%s11020_s2 + $0x560] sm:$0xff] }
0x180f   :  { %7891 = vmatmul.mubr.f32.vlgmr.msra.gmra.mxu1 %v4222_v63  ;;  %v6315_v63 = vld [vmem:[%s11020_s2 + $0x4e0] sm:$0xff] }
0x1810   :  { %7899 = vmatpush3.msra.mxu1 %v6350_v5  ;;  %v6314_v5 = vld [vmem:[%s11020_s2 + $0x4d8] sm:$0xff] }
0x1811   :  { %7900 = vmatprep.subr.mxu1 %v6349_v22 }
0x1812   :  { %7901 = vmatpush3.msra.mxu1 %v6349_v22  ;;  %v6329_v22 = vld [vmem:[%s11020_s2 + $0x550] sm:$0xff] }
0x1813   :  { %7902 = vmatprep.subr.mxu1 %v6348_v23 }
0x1814   :  { %7903 = vmatpush3.msra.mxu1 %v6348_v23  ;;  %v6313_v23 = vld [vmem:[%s11020_s2 + $0x4d0] sm:$0xff] }
0x1815   :  { %7904 = vmatprep.subr.mxu1 %v6347_v24 }
0x1816   :  { %7905 = vmatpush3.msra.mxu1 %v6347_v24  ;;  %v6328_v24 = vld [vmem:[%s11020_s2 + $0x548] sm:$0xff] }
0x1817   :  { %7906 = vmatprep.subr.mxu1 %v6346_v25 }
0x1818   :  { %7907 = vmatpush3.msra.mxu1 %v6346_v25  ;;  %v6312_v25 = vld [vmem:[%s11020_s2 + $0x4c8] sm:$0xff] }
0x1819   :  { %7908 = vmatprep.subr.mxu1 %v6345_v26 }
0x181a   :  { %7909 = vmatpush3.msra.mxu1 %v6345_v26  ;;  %v6344_v26 = vld [vmem:[%s11020_s2 + $0x5c8] sm:$0xff] }
0x181b   :  { %7910 = vmatprep.subr.mxu1 %v6344_v26 }
0x181c   :  { %7911 = vmatpush3.msra.mxu1 %v6344_v26 }
0x18cf   :  { %v4289_v27 = vpop.f32.mrf.mxu1 }
0x18d0   :  { %v4293_v45 = vmul.f32 0.001953125, %v4289_v27  ;;  %v6327_v27 = vld [vmem:[%s11020_s2 + $0x540] sm:$0xff] }
0x18d1   :  { %v7892_v29 = vpop.f32.mrf.mxu1 }
0x18d2   :  { %v4294_v40 = vmul.f32 %v4293_v45, %v4293_v45  ;;  %v6343_v29 = vld [vmem:[%s11020_s2 + $0x5c0] sm:$0xff] }
0x18d3   :  { %7912 = vmatprep.subr.mxu1 %v6343_v29 }
0x18d4   :  { %v4296_v44 = vrot.slane %v4294_v40, 7  ;;  %v6326_v40 = vld [vmem:[%s11020_s2 + $0x538] sm:$0xff]  ;;  %7913 = vmatpush3.msra.mxu1 %v6343_v29 }
0x18d6   :  { %v4298_v39 = vsub.f32 %v4293_v45, %v4296_v44  ;;  %v6310_v44 = vld [vmem:[%s11020_s2 + $0x4b8] sm:$0xff] }
0x18d8   :  { %v4299_v31 = vadd.f32 1e-05, %v4298_v39  ;;  %v6342_v39 = vld [vmem:[%s11020_s2 + $0x5b8] sm:$0xff] }
0x18d9   :  { %7914 = vmatprep.subr.mxu1 %v6342_v39 }
0x18da   :  { %8253 = vrsqrt.f32 %v4299_v31  ;;  %v6325_v31 = vld [vmem:[%s11020_s2 + $0x530] sm:$0xff]  ;;  %7915 = vmatpush3.msra.mxu1 %v6342_v39 }
0x18e7   :  { %v8254_v32 = vpop.eup %8253 }
0x18e8   :  { %v4308_v55 = vrot.slane %v8254_v32, %v8560_v48  ;;  %v6309_v32 = vld [vmem:[%s11020_s2 + $0x4b0] sm:$0xff] }
0x18ea   :  { %v4309_v54 = vcombine.high %v4308_v55, %v4308_v55  ;;  %v6341_v55 = vld [vmem:[%s11020_s2 + $0x5b0] sm:$0xff] }
0x18eb   :  { %7916 = vmatprep.subr.mxu1 %v6341_v55 }
0x18ec   :  { %v4316_v46 = vrot.slane %v4309_v54, %v8560_v48  ;;  %v6324_v54 = vld [vmem:[%s11020_s2 + $0x528] sm:$0xff]  ;;  %7917 = vmatpush3.msra.mxu1 %v6341_v55 }
0x18ee   :  { %v4318_v38 = vmul.f32 %v6297_v37, %v4316_v46  ;;  %v6308_v37 = vld [vmem:[%s11020_s2 + $0x4a8] sm:$0xff] }
0x18ef   :  { %v6340_v46 = vld [vmem:[%s11020_s2 + $0x5a8] sm:$0xff] }
0x18f0   :  { %v4319_v47 = vmul.f32 %v4318_v38, %v4293_v45  ;;  %v6311_v45 = vld [vmem:[%s11020_s2 + $0x4c0] sm:$0xff]  ;;  %7918 = vmatprep.subr.mxu1 %v6340_v46 }
0x18f1   :  { %7919 = vmatpush3.msra.mxu1 %v6340_v46 }
0x18f2   :  { %v4320_v1 = vsub.f32 %v6298_v36, %v4319_v47  ;;  %v6307_v36 = vld [vmem:[%s11020_s2 + $0x4a0] sm:$0xff] }
0x18f3   :  { %v6339_v47 = vld [vmem:[%s11020_s2 + $0x5a0] sm:$0xff] }
0x18f4   :  { %v4325_v9 = vrot.slane %v4320_v1, %v8571_v57  ;;  %v6322_v1 = vld [vmem:[%s11020_s2 + $0x518] sm:$0xff]  ;;  %7920 = vmatprep.subr.mxu1 %v6339_v47 }
0x18f5   :  { %7921 = vmatpush3.msra.mxu1 %v6339_v47 }
0x18f6   :  { %v4327_v58 = vsel %vm252_vm2, %v4318_v38, %v4325_v9  ;;  %v6323_v38 = vld [vmem:[%s11020_s2 + $0x520] sm:$0xff]  ;;  %v6306_v9 = vld [vmem:[%s11020_s2 + $0x498] sm:$0xff] }
0x18f7   :  { %7896 = vmatmul.mubr.msk.f32.vlgmr.msra.gmra.mxu0 %vm359_vm4, %v4327_v58  ;;  %v6321_v58 = vld [vmem:[%s11020_s2 + $0x510] sm:$0xff] }
0x18f8   :  { %7014 = vmatpush3.msra.mxu0 %v6318_v56  ;;  %v6338_v56 = vld [vmem:[%s11020_s2 + $0x598] sm:$0xff] }
0x18f9   :  { %7015 = vmatprep.subr.mxu0 %v6333_v49  ;;  %v6305_v49 = vld [vmem:[%s11020_s2 + $0x490] sm:$0xff]  ;;  %7922 = vmatprep.subr.mxu1 %v6338_v56 }
0x18fa   :  { %7016 = vmatpush3.msra.mxu0 %v6317_v3  ;;  %v6337_v3 = vld [vmem:[%s11020_s2 + $0x590] sm:$0xff]  ;;  %7923 = vmatpush3.msra.mxu1 %v6338_v56 }
0x18fb   :  { %7017 = vmatprep.subr.mxu0 %v6332_v59  ;;  %v6320_v59 = vld [vmem:[%s11020_s2 + $0x508] sm:$0xff]  ;;  %7924 = vmatprep.subr.mxu1 %v6337_v3 }
0x18fc   :  { %7018 = vmatpush3.msra.mxu0 %v6316_v60  ;;  %v6304_v60 = vld [vmem:[%s11020_s2 + $0x488] sm:$0xff]  ;;  %7925 = vmatpush3.msra.mxu1 %v6337_v3  ;;  %v2662_v3 = vld [vmem:[%s11027_s9 + $0x40] sm:$0xff] }
0x18fd   :  { %7019 = vmatprep.subr.mxu0 %v6331_v61  ;;  %v6336_v61 = vld [vmem:[%s11020_s2 + $0x588] sm:$0xff] }
0x18fe   :  { %7020 = vmatpush3.msra.mxu0 %v6315_v63  ;;  %v6319_v63 = vld [vmem:[%s11020_s2 + $0x500] sm:$0xff]  ;;  %7926 = vmatprep.subr.mxu1 %v6336_v61 }
0x18ff   :  { %7021 = vmatprep.subr.mxu0 %v6330_v4  ;;  %v6303_v4 = vld [vmem:[%s11020_s2 + $0x480] sm:$0xff]  ;;  %7927 = vmatpush3.msra.mxu1 %v6336_v61  ;;  %v2659_v61 = vld [vmem:[%s11027_s9 + $0x28] sm:$0xff] }
0x1900   :  { %7022 = vmatpush3.msra.mxu0 %v6314_v5  ;;  %v6335_v5 = vld [vmem:[%s11020_s2 + $0x580] sm:$0xff] }
0x1901   :  { %7023 = vmatprep.subr.mxu0 %v6329_v22  ;;  %7928 = vmatprep.subr.mxu1 %v6335_v5 }
0x1902   :  { %7024 = vmatpush3.msra.mxu0 %v6313_v23  ;;  %7929 = vmatpush3.msra.mxu1 %v6335_v5 }
0x1903   :  { %7025 = vmatprep.subr.mxu0 %v6328_v24  ;;  %7982 = vmatprep.subr.mxu1 %v8312_v0 }
0x1904   :  { %7026 = vmatpush3.msra.mxu0 %v6312_v25 }
0x1905   :  { %7027 = vmatprep.subr.mxu0 %v6327_v27 }
0x1906   :  { %7028 = vmatpush3.msra.mxu0 %v6311_v45 }
0x1907   :  { %7029 = vmatprep.subr.mxu0 %v6326_v40 }
0x1908   :  { %7030 = vmatpush3.msra.mxu0 %v6310_v44 }
0x1909   :  { %7031 = vmatprep.subr.mxu0 %v6325_v31 }
0x190a   :  { %7032 = vmatpush3.msra.mxu0 %v6309_v32 }
0x190b   :  { %7033 = vmatprep.subr.mxu0 %v6324_v54 }
0x190c   :  { %7034 = vmatpush3.msra.mxu0 %v6308_v37 }
0x190d   :  { %7035 = vmatprep.subr.mxu0 %v6323_v38 }
0x190e   :  { %7036 = vmatpush3.msra.mxu0 %v6307_v36 }
0x190f   :  { %7037 = vmatprep.subr.mxu0 %v6322_v1 }
0x1910   :  { %7038 = vmatpush3.msra.mxu0 %v6306_v9 }
0x1911   :  { %7039 = vmatprep.subr.mxu0 %v6321_v58 }
0x1912   :  { %7040 = vmatpush3.msra.mxu0 %v6305_v49  ;;  %v2663_v49 = vld [vmem:[%s11027_s9 + $0x48] sm:$0xff] }
0x1913   :  { %7041 = vmatprep.subr.mxu0 %v6320_v59  ;;  %v2661_v59 = vld [vmem:[%s11027_s9 + $0x38] sm:$0xff] }
0x1914   :  { %7042 = vmatpush3.msra.mxu0 %v6304_v60  ;;  %v2660_v60 = vld [vmem:[%s11027_s9 + $0x30] sm:$0xff] }
0x1915   :  { %7043 = vmatprep.subr.mxu0 %v6319_v63  ;;  %v2658_v63 = vld [vmem:[%s11027_s9 + $0x20] sm:$0xff] }
0x1916   :  { %7044 = vmatpush3.msra.mxu0 %v6303_v4  ;;  %v2657_v4 = vld [vmem:[%s11027_s9 + $0x18] sm:$0xff] }
0x1917   :  { %7933 = vmatprep.subr.mxu0 %v8312_v0 }
0x19b7   :  { %v4397_v22 = vpop.f32.mrf.mxu0 }
0x19b8   :  { %v4404_v23 = vrot.slane %v4397_v22, %v8571_v57  ;;  %v4410_v27 = vrot.slane %v4397_v22, %v8701_v62  ;;  %v2656_v22 = vld [vmem:[%s11027_s9 + $0x10] sm:$0xff] }
0x19b9   :  { %v7897_v24 = vpop.f32.mrf.mxu0 }
0x19ba   :  { %v4405_v25 = vmul.f32 %v4404_v23, %v10276_v53  ;;  %v4406_v26 = vmul.f32 %v4404_v23, %v10274_v10  ;;  %v2655_v23 = vld [vmem:[%s11027_s9 + $0x8] sm:$0xff] }
0x19bc   :  { %v4411_v45 = vadd.f32 %v4410_v27, %v4405_v25  ;;  %v4412_v29 = vadd.f32 %v4410_v27, %v4406_v26  ;;  %v2654_v25 = vld [vmem:[%s11027_s9] sm:$0xff]  ;;  %v6372_v27 = vld [vmem:[%s11027_s9 + $0xf8] sm:$0xff] }
0x19bd   :  { %v10618_v26 = vld [vmem:[%s11019_s11] sm:$0xf] }
0x19be   :  { %v4414_v40 = vmax.f32 %v4412_v29, 0.0  ;;  %v4413_v44 = vmax.f32 %v4411_v45, 0.0 }
0x19c0   :  { %4464 = vst [vmem:[#allocation2 + $0x10] sm:$0xff] %v4414_v40  ;;  %4537 = vmatprep.mubr.f32.mxu0 %v4413_v44  ;;  %4463 = vst [vmem:[#allocation2 + $0x8] sm:$0xff] %v4413_v44 }
0x19c7   :  { %v4465_v39 = vld [vmem:[#allocation2 + $0x7] sm:$0xff]  ;;  %v4470_v32 = vld [vmem:[#allocation2 + $0x11] sm:$0xff] }
0x19c8   :  { %v4469_v31 = vld [vmem:[#allocation2 + $0x9] sm:$0xff]  ;;  %v4467_v55 = vmul.f32 %v8710_v33, %v4465_v39  ;;  %v4472_v53 = vmul.f32 %v8716_v35, %v4470_v32 }
0x19c9   :  { %v4471_v54 = vmul.f32 %v8713_v34, %v4469_v31  ;;  %v4466_v37 = vld [vmem:[#allocation2 + $0xf] sm:$0xff] }
0x19ca   :  { %4538 = vmatmul.mubr.f32.vlgmr.msra.gmra.mxu0 %v4467_v55  ;;  %v4468_v10 = vmul.f32 %v8722_v42, %v4466_v37  ;;  %v6351_v37 = vld [vmem:[%s11025_s7 + $0x1] sm:$0x1] }
0x19cb   :  { %7930 = vmatprep.mubr.f32.mxu1 %v4471_v54  ;;  %4542 = vmatprep.mubr.f32.mxu0 %v4414_v40 }
0x19cc   :  { %7931 = vmatmul.mubr.f32.vlgmr.msra.gmra.mxu1 %v4472_v53 }
0x19cd   :  { %7983 = vmatpush3.msk.msra.mxu1 %vm363_vm3, %v9964_v30  ;;  %7984 = vmatprep.mubr.msk.f32.mxu1 %vm8313_vm0, %v8312_v0 }
0x19ce   :  { %4543 = vmatmul.mubr.f32.gmra.mxu0 %v4468_v10  ;;  %7987 = vmatprep.subr.mxu1 %v6372_v27 }
0x19cf   :  { %7937 = vmatprep.mubr.msk.f32.mxu0 %vm8313_vm0, %v8312_v0 }
0x1a8a   :  { %v7045_v33 = vpop.f32.mrf.mxu0 }
0x1a8c   :  { %v7932_v34 = vpop.f32.mrf.mxu1  ;;  %v7046_v35 = vpop.f32.mrf.mxu0 }
0x1a8d   :  { %v7047_v38 = vadd.f32 %v7046_v35, %v7045_v33 }
0x1a8e   :  { %v7048_v46 = vpop.f32.mrf.mxu0  ;;  %v4614_v36 = vpop.f32.mrf.mxu1 }
0x1a8f   :  { %v4615_v9 = vadd.f32 %v7047_v38, %v4614_v36 }
0x1a90   :  { %v7049_v47 = vpop.f32.mrf.mxu0 }
0x1a91   :  { %v7050_v1 = vadd.f32 %v7049_v47, %v7048_v46  ;;  %v10503_v30 = vadd.f32 %v4615_v9, %v9976_v8  ;;  %v10524_v8 = vld [vmem:[%s11018_s10 + $0x78] sm:$0xff]  ;;  %v6371_v47 = vld [vmem:[%s11027_s9 + $0xf0] sm:$0xff]  ;;  %v6369_v9 = vld [vmem:[%s11027_s9 + $0xe0] sm:$0xff] }
0x1a93   :  { %v4620_v42 = vadd.f32 %v7932_v34, %v7050_v1  ;;  %v6352_v34 = vld [vmem:[%s11026_s8 + $0x1] sm:$0x1]  ;;  %v6370_v1 = vld [vmem:[%s11027_s9 + $0xe8] sm:$0xff] }
0x1a95   :  { %v10500_v56 = vadd.f32 %v4620_v42, %v9973_v6  ;;  %v4699_v6 = vmul.f32 %v10503_v30, %v10503_v30  ;;  %v6368_v42 = vld [vmem:[%s11027_s9 + $0xd8] sm:$0xff] }
0x1a97   :  { %7934 = vmatpush3.msra.mxu0 %v10500_v56  ;;  %v4700_v58 = vmul.f32 %v10500_v56, %v10500_v56 }
0x1a98   :  { %7935 = vmatprep.subr.mxu0 %v8312_v0 }
0x1a99   :  { %7936 = vmatpush3.msra.mxu0 %v10503_v30 }
0x1a9a   :  { %7938 = vmatmul.mubr.msk.f32.vlgmr.msra.gmra.mxu0 %vm103_vm1, %v8314_v7  ;;  %7940 = vmatprep.subr.mxu0 %v8312_v0 }
0x1a9b   :  { %7941 = vmatpush3.msra.mxu0 %v4700_v58  ;;  %7944 = vmatprep.mubr.msk.f32.mxu0 %vm8313_vm0, %v8312_v0  ;;  %v6367_v58 = vld [vmem:[%s11027_s9 + $0xd0] sm:$0xff] }
0x1a9c   :  { %7942 = vmatprep.subr.mxu0 %v8312_v0 }
0x1a9d   :  { %7943 = vmatpush3.msra.mxu0 %v4699_v6  ;;  %v6366_v6 = vld [vmem:[%s11027_s9 + $0xc8] sm:$0xff] }
0x1a9e   :  { %7945 = vmatmul.mubr.msk.f32.vlgmr.msra.gmra.mxu0 %vm103_vm1, %v8314_v7  ;;  %7947 = vmatprep.subr.mxu0 %v8312_v0 }
0x1a9f   :  { %7948 = vmatpush3.msra.mxu0 %v10524_v8  ;;  %7979 = vmatprep.mubr.msk.f32.mxu0 %vm8313_vm0, %v8312_v0 }
0x1aa0   :  { %7949 = vmatprep.subr.mxu0 %v8312_v0 }
0x1aa1   :  { %7950 = vmatpush3.msra.mxu0 %v10001_v11  ;;  %v2669_v11 = vld [vmem:[%s11027_s9 + $0x78] sm:$0xff] }
0x1aa2   :  { %7951 = vmatprep.subr.mxu0 %v8312_v0 }
0x1aa3   :  { %7952 = vmatpush3.msra.mxu0 %v10008_v12  ;;  %v2643_v12 = vrot.slane %v9721_v52, %v8571_v57 }
0x1aa4   :  { %7953 = vmatprep.subr.mxu0 %v8312_v0 }
0x1aa5   :  { %7954 = vmatpush3.msra.mxu0 %v10015_v13  ;;  %v2644_v13 = vmul.f32 %v2643_v12, %v9499_v43  ;;  %v2667_v43 = vld [vmem:[%s11027_s9 + $0x68] sm:$0xff]  ;;  %v2645_v5 = vmul.f32 %v2643_v12, %v9496_v41  ;;  %v6364_v12 = vld [vmem:[%s11027_s9 + $0xb8] sm:$0xff] }
0x1aa6   :  { %7955 = vmatprep.subr.mxu0 %v8312_v0 }
0x1aa7   :  { %7956 = vmatpush3.msra.mxu0 %v10022_v14 }
0x1aa8   :  { %7957 = vmatprep.subr.mxu0 %v8312_v0 }
0x1aa9   :  { %7958 = vmatpush3.msra.mxu0 %v10029_v15  ;;  %v2649_v15 = vrot.slane %v9721_v52, %v8701_v62  ;;  %v2666_v52 = vld [vmem:[%s11027_s9 + $0x60] sm:$0xff] }
0x1aaa   :  { %7959 = vmatprep.subr.mxu0 %v8312_v0 }
0x1aab   :  { %7960 = vmatpush3.msra.mxu0 %v10036_v16  ;;  %v2651_v24 = vadd.f32 %v2649_v15, %v2645_v5  ;;  %v10744_v5 = vld [vmem:[%s11018_s10 + $0x58] sm:$0xff] }
0x1aac   :  { %7961 = vmatprep.subr.mxu0 %v8312_v0 }
0x1aad   :  { %7962 = vmatpush3.msra.mxu0 %v10043_v17  ;;  %v2650_v17 = vadd.f32 %v2649_v15, %v2644_v13  ;;  %v2653_v41 = vmax.f32 %v2651_v24, 0.0  ;;  %v6363_v13 = vld [vmem:[%s11027_s9 + $0xb0] sm:$0xff]  ;;  %v6361_v15 = vld [vmem:[%s11027_s9 + $0xa0] sm:$0xff] }
0x1aae   :  { %7963 = vmatprep.subr.mxu0 %v8312_v0  ;;  %v10765_v24 = vld [vmem:[%s11018_s10 + $0x40] sm:$0xff] }
0x1aaf   :  { %7964 = vmatpush3.msra.mxu0 %v10050_v18 }
0x1ab0   :  { %7965 = vmatprep.subr.mxu0 %v8312_v0 }
0x1ab1   :  { %7966 = vmatpush3.msra.mxu0 %v10057_v19 }
0x1ab2   :  { %7967 = vmatprep.subr.mxu0 %v8312_v0 }
0x1ab3   :  { %7968 = vmatpush3.msra.mxu0 %v10064_v20 }
0x1ab4   :  { %7969 = vmatprep.subr.mxu0 %v8312_v0 }
0x1ab5   :  { %7970 = vmatpush3.msra.mxu0 %v10071_v28 }
0x1ab6   :  { %7971 = vmatprep.subr.mxu0 %v8312_v0 }
0x1ab7   :  { %7972 = vmatpush3.msra.mxu0 %v10078_v2  ;;  %v2668_v2 = vld [vmem:[%s11027_s9 + $0x70] sm:$0xff] }
0x1ab8   :  { %7973 = vmatprep.subr.mxu0 %v8312_v0 }
0x1ab9   :  { %7974 = vmatpush3.msra.mxu0 %v10085_v50  ;;  %v2652_v50 = vmax.f32 %v2650_v17, 0.0  ;;  %v6359_v17 = vld [vmem:[%s11027_s9 + $0x90] sm:$0xff] }
0x1aba   :  { %7975 = vmatprep.subr.mxu0 %v8312_v0 }
0x1abb   :  { %7976 = vmatpush3.msra.mxu0 %v10092_v21  ;;  %v2665_v21 = vld [vmem:[%s11027_s9 + $0x58] sm:$0xff] }
0x1abc   :  { %7977 = vmatprep.subr.mxu0 %v8312_v0 }
0x1abd   :  { %7978 = vmatpush3.msra.mxu0 %v10099_v51  ;;  %v2664_v51 = vld [vmem:[%s11027_s9 + $0x50] sm:$0xff] }
0x1abe   :  { %8022 = vmatprep.subr.mxu0 %v2669_v11 }
0x1b5a   :  { %v4695_v14 = vpop.f32.mrf.mxu0 }
0x1b5c   :  { %v7939_v16 = vpop.f32.mrf.mxu0 }
0x1b5d   :  { %v6360_v16 = vld [vmem:[%s11027_s9 + $0x98] sm:$0xff] }
0x1b5e   :  { %v4767_v18 = vpop.f32.mrf.mxu0 }
0x1b5f   :  { %v4772_v19 = vrot.slane %v4767_v18, 7  ;;  %v6358_v18 = vld [vmem:[%s11027_s9 + $0x88] sm:$0xff] }
0x1b60   :  { %v7946_v20 = vpop.f32.mrf.mxu0 }
0x1b61   :  { %v4774_v28 = vsel %vm252_vm2, %v4695_v14, %v4772_v19  ;;  %v6362_v14 = vld [vmem:[%s11027_s9 + $0xa8] sm:$0xff]  ;;  %v6357_v19 = vld [vmem:[%s11027_s9 + $0x80] sm:$0xff] }
0x1b62   :  { %7980 = vmatmul.mubr.f32.vlgmr.msra.gmra.mxu0 %v4774_v28 }
0x1b63   :  { %8023 = vmatpush3.msra.mxu0 %v2669_v11  ;;  %8054 = vmatprep.mubr.f32.mxu0 %v2652_v50  ;;  %v6365_v11 = vld [vmem:[%s11027_s9 + $0xc0] sm:$0xff] }
0x1b64   :  { %8024 = vmatprep.subr.mxu0 %v2668_v2 }
0x1b65   :  { %8025 = vmatpush3.msra.mxu0 %v2668_v2 }
0x1b66   :  { %8026 = vmatprep.subr.mxu0 %v2667_v43 }
0x1b67   :  { %8027 = vmatpush3.msra.mxu0 %v2667_v43 }
0x1b68   :  { %8028 = vmatprep.subr.mxu0 %v2666_v52 }
0x1b69   :  { %8029 = vmatpush3.msra.mxu0 %v2666_v52 }
0x1b6a   :  { %8030 = vmatprep.subr.mxu0 %v2665_v21 }
0x1b6b   :  { %8031 = vmatpush3.msra.mxu0 %v2665_v21 }
0x1b6c   :  { %8032 = vmatprep.subr.mxu0 %v2664_v51 }
0x1b6d   :  { %8033 = vmatpush3.msra.mxu0 %v2664_v51 }
0x1b6e   :  { %8034 = vmatprep.subr.mxu0 %v2663_v49 }
0x1b6f   :  { %8035 = vmatpush3.msra.mxu0 %v2663_v49 }
0x1b70   :  { %8036 = vmatprep.subr.mxu0 %v2662_v3 }
0x1b71   :  { %8037 = vmatpush3.msra.mxu0 %v2662_v3 }
0x1b72   :  { %8038 = vmatprep.subr.mxu0 %v2661_v59 }
0x1b73   :  { %8039 = vmatpush3.msra.mxu0 %v2661_v59  ;;  %v10691_v59 = vld [vmem:[%s11028_s1 + $0x8] sm:$0xff] }
0x1b74   :  { %8040 = vmatprep.subr.mxu0 %v2660_v60 }
0x1b75   :  { %8041 = vmatpush3.msra.mxu0 %v2660_v60  ;;  %v10696_v60 = vld [vmem:[%s11028_s1] sm:$0xff] }
0x1b76   :  { %8042 = vmatprep.subr.mxu0 %v2659_v61 }
0x1b77   :  { %8043 = vmatpush3.msra.mxu0 %v2659_v61  ;;  %v10723_v61 = vld [vmem:[%s11018_s10 + $0x70] sm:$0xff] }
0x1b78   :  { %8044 = vmatprep.subr.mxu0 %v2658_v63 }
0x1b79   :  { %8045 = vmatpush3.msra.mxu0 %v2658_v63  ;;  %v10730_v63 = vld [vmem:[%s11018_s10 + $0x68] sm:$0xff] }
0x1b7a   :  { %8046 = vmatprep.subr.mxu0 %v2657_v4 }
0x1b7b   :  { %8047 = vmatpush3.msra.mxu0 %v2657_v4  ;;  %v10737_v4 = vld [vmem:[%s11018_s10 + $0x60] sm:$0xff] }
0x1b7c   :  { %8048 = vmatprep.subr.mxu0 %v2656_v22 }
0x1b7d   :  { %8049 = vmatpush3.msra.mxu0 %v2656_v22  ;;  %v10751_v22 = vld [vmem:[%s11018_s10 + $0x50] sm:$0xff] }
0x1b7e   :  { %8050 = vmatprep.subr.mxu0 %v2655_v23 }
0x1b7f   :  { %8051 = vmatpush3.msra.mxu0 %v2655_v23  ;;  %v10758_v23 = vld [vmem:[%s11018_s10 + $0x48] sm:$0xff] }
0x1b80   :  { %8052 = vmatprep.subr.mxu0 %v2654_v25 }
0x1b81   :  { %8053 = vmatpush3.msra.mxu0 %v2654_v25  ;;  %v10772_v25 = vld [vmem:[%s11018_s10 + $0x38] sm:$0xff] }
0x1b82   :  { %8055 = vmatmul.mubr.f32.vlgmr.msra.gmra.mxu0 %v2653_v41  ;;  %8106 = vmatprep.subr.mxu0 %v8312_v0  ;;  %v10779_v41 = vld [vmem:[%s11018_s10 + $0x30] sm:$0xff] }
0x1b83   :  { %8107 = vmatpush3.msk.msra.mxu0 %vm363_vm3, %v10618_v26  ;;  %8108 = vmatprep.mubr.msk.f32.mxu0 %vm8313_vm0, %v8312_v0 }
0x1c22   :  { %v4841_v45 = vpop.f32.mrf.mxu0 }
0x1c23   :  { %v4845_v29 = vmul.f32 0.001953125, %v4841_v45  ;;  %v8307_v45 = vld [vmem:[%s11018_s10 + $0x20] sm:$0xff] }
0x1c24   :  { %v7981_v40 = vpop.f32.mrf.mxu0 }
0x1c25   :  { %v4846_v44 = vmul.f32 %v4845_v29, %v4845_v29  ;;  %v8309_v40 = vld [vmem:[%s11018_s10 + $0x10] sm:$0xff] }
0x1c27   :  { %v4848_v39 = vrot.slane %v4846_v44, 7  ;;  %v8310_v44 = vld [vmem:[%s11018_s10 + $0x8] sm:$0xff] }
0x1c29   :  { %v4850_v31 = vsub.f32 %v4845_v29, %v4848_v39  ;;  %v8311_v39 = vld [vmem:[%s11018_s10] sm:$0xff] }
0x1c2b   :  { %v4851_v32 = vadd.f32 1e-05, %v4850_v31 }
0x1c2d   :  { %8255 = vrsqrt.f32 %v4851_v32 }
0x1c3a   :  { %v8256_v55 = vpop.eup %8255 }
0x1c3b   :  { %v4860_v54 = vrot.slane %v8256_v55, %v8560_v48 }
0x1c3d   :  { %v4861_v53 = vcombine.high %v4860_v54, %v4860_v54 }
0x1c3f   :  { %v4868_v10 = vrot.slane %v4861_v53, %v8560_v48 }
0x1c41   :  { %v4870_v33 = vmul.f32 %v6351_v37, %v4868_v10 }
0x1c43   :  { %v4871_v35 = vmul.f32 %v4870_v33, %v4845_v29  ;;  %v8308_v29 = vld [vmem:[%s11018_s10 + $0x18] sm:$0xff] }
0x1c45   :  { %v4872_v46 = vsub.f32 %v6352_v34, %v4871_v35  ;;  %v10823_v35 = vld [vmem:[%s11028_s1 + $0x10] sm:$0xff] }
0x1c47   :  { %v4877_v38 = vrot.slane %v4872_v46, %v8571_v57 }
0x1c49   :  { %v4879_v36 = vsel %vm252_vm2, %v4870_v33, %v4877_v38  ;;  %v10817_v33 = vld [vmem:[%s11028_s1 + $0x18] sm:$0xff]  ;;  %v5649_v38 = vmul.f32 %v10823_v35, %v10823_v35 }
0x1c4a   :  { %7985 = vmatmul.mubr.msk.f32.vlgmr.msra.gmra.mxu1 %vm359_vm4, %v4879_v36  ;;  %v5650_v46 = vmul.f32 %v10817_v33, %v10817_v33 }
0x1c4b   :  { %7988 = vmatpush3.msra.mxu1 %v6372_v27  ;;  %v10786_v27 = vld [vmem:[%s11018_s10 + $0x28] sm:$0xff] }
0x1c4c   :  { %7989 = vmatprep.subr.mxu1 %v6371_v47 }
0x1c4d   :  { %7990 = vmatpush3.msra.mxu1 %v6371_v47 }
0x1c4e   :  { %7991 = vmatprep.subr.mxu1 %v6370_v1 }
0x1c4f   :  { %7992 = vmatpush3.msra.mxu1 %v6370_v1 }
0x1c50   :  { %7993 = vmatprep.subr.mxu1 %v6369_v9 }
0x1c51   :  { %7994 = vmatpush3.msra.mxu1 %v6369_v9 }
0x1c52   :  { %7995 = vmatprep.subr.mxu1 %v6368_v42 }
0x1c53   :  { %7996 = vmatpush3.msra.mxu1 %v6368_v42 }
0x1c54   :  { %7997 = vmatprep.subr.mxu1 %v6367_v58 }
0x1c55   :  { %7998 = vmatpush3.msra.mxu1 %v6367_v58 }
0x1c56   :  { %7999 = vmatprep.subr.mxu1 %v6366_v6 }
0x1c57   :  { %8000 = vmatpush3.msra.mxu1 %v6366_v6 }
0x1c58   :  { %8001 = vmatprep.subr.mxu1 %v6365_v11 }
0x1c59   :  { %8002 = vmatpush3.msra.mxu1 %v6365_v11 }
0x1c5a   :  { %8003 = vmatprep.subr.mxu1 %v6364_v12 }
0x1c5b   :  { %8004 = vmatpush3.msra.mxu1 %v6364_v12 }
0x1c5c   :  { %8005 = vmatprep.subr.mxu1 %v6363_v13 }
0x1c5d   :  { %8006 = vmatpush3.msra.mxu1 %v6363_v13 }
0x1c5e   :  { %8007 = vmatprep.subr.mxu1 %v6362_v14 }
0x1c5f   :  { %8008 = vmatpush3.msra.mxu1 %v6362_v14 }
0x1c60   :  { %8009 = vmatprep.subr.mxu1 %v6361_v15 }
0x1c61   :  { %8010 = vmatpush3.msra.mxu1 %v6361_v15 }
0x1c62   :  { %8011 = vmatprep.subr.mxu1 %v6360_v16 }
0x1c63   :  { %8012 = vmatpush3.msra.mxu1 %v6360_v16 }
0x1c64   :  { %8013 = vmatprep.subr.mxu1 %v6359_v17 }
0x1c65   :  { %8014 = vmatpush3.msra.mxu1 %v6359_v17 }
0x1c66   :  { %8015 = vmatprep.subr.mxu1 %v6358_v18 }
0x1c67   :  { %8016 = vmatpush3.msra.mxu1 %v6358_v18  ;;  %v6373_v18 = vld [vmem:[%s11025_s7 + $0x2] sm:$0x1] }
0x1c68   :  { %8017 = vmatprep.subr.mxu1 %v6357_v19 }
0x1c69   :  { %8018 = vmatpush3.msra.mxu1 %v6357_v19 }
0x1c6a   :  { %8057 = vmatprep.subr.mxu1 %v8312_v0 }
0x1d0a   :  { %v4949_v20 = vpop.f32.mrf.mxu1 }
0x1d0b   :  { %v4956_v28 = vrot.slane %v4949_v20, %v8571_v57  ;;  %v4962_v52 = vrot.slane %v4949_v20, %v8701_v62 }
0x1d0c   :  { %v7986_v2 = vpop.f32.mrf.mxu1 }
0x1d0d   :  { %v4957_v50 = vmul.f32 %v4956_v28, %v10503_v30  ;;  %v4958_v43 = vmul.f32 %v4956_v28, %v10500_v56  ;;  %v5211_v56 = vmul.f32 %v10691_v59, %v10691_v59  ;;  %v5210_v30 = vmul.f32 %v10696_v60, %v10696_v60  ;;  %v6374_v28 = vld [vmem:[%s11026_s8 + $0x2] sm:$0x1] }
0x1d0f   :  { %v4963_v21 = vadd.f32 %v4962_v52, %v4957_v50  ;;  %v4964_v51 = vadd.f32 %v4962_v52, %v4958_v43 }
0x1d11   :  { %v4966_v49 = vmax.f32 %v4964_v51, 0.0  ;;  %v4965_v3 = vmax.f32 %v4963_v21, 0.0  ;;  %v6394_v21 = vld [vmem:[%s11027_s9 + $0x178] sm:$0xff]  ;;  %v6393_v51 = vld [vmem:[%s11027_s9 + $0x170] sm:$0xff] }
0x1d12   :  { %8111 = vmatprep.subr.mxu0 %v6394_v21 }
0x1d13   :  { %8019 = vmatprep.mubr.f32.mxu1 %v4965_v3  ;;  %v6391_v3 = vld [vmem:[%s11027_s9 + $0x160] sm:$0xff] }
0x1d14   :  { %8020 = vmatmul.mubr.f32.vlgmr.msra.gmra.mxu1 %v4966_v49  ;;  %v6392_v49 = vld [vmem:[%s11027_s9 + $0x168] sm:$0xff] }
0x1d15   :  { %8058 = vmatpush3.msra.mxu1 %v10691_v59  ;;  %8061 = vmatprep.mubr.msk.f32.mxu1 %vm8313_vm0, %v8312_v0 }
0x1d16   :  { %8059 = vmatprep.subr.mxu1 %v8312_v0 }
0x1d17   :  { %8060 = vmatpush3.msra.mxu1 %v10696_v60 }
0x1d18   :  { %8062 = vmatmul.mubr.msk.f32.vlgmr.msra.gmra.mxu1 %vm103_vm1, %v8314_v7  ;;  %8064 = vmatprep.subr.mxu1 %v8312_v0 }
0x1d19   :  { %8065 = vmatpush3.msra.mxu1 %v5211_v56  ;;  %8068 = vmatprep.mubr.msk.f32.mxu1 %vm8313_vm0, %v8312_v0  ;;  %v6390_v56 = vld [vmem:[%s11027_s9 + $0x158] sm:$0xff] }
0x1d1a   :  { %8066 = vmatprep.subr.mxu1 %v8312_v0 }
0x1d1b   :  { %8067 = vmatpush3.msra.mxu1 %v5210_v30  ;;  %v6389_v30 = vld [vmem:[%s11027_s9 + $0x150] sm:$0xff] }
0x1d1c   :  { %8069 = vmatmul.mubr.msk.f32.vlgmr.msra.gmra.mxu1 %vm103_vm1, %v8314_v7  ;;  %8071 = vmatprep.subr.mxu1 %v8312_v0 }
0x1d1d   :  { %8072 = vmatpush3.msra.mxu1 %v10524_v8  ;;  %8103 = vmatprep.mubr.msk.f32.mxu1 %vm8313_vm0, %v8312_v0 }
0x1d1e   :  { %8073 = vmatprep.subr.mxu1 %v8312_v0 }
0x1d1f   :  { %8074 = vmatpush3.msra.mxu1 %v10723_v61 }
0x1d20   :  { %8075 = vmatprep.subr.mxu1 %v8312_v0 }
0x1d21   :  { %8076 = vmatpush3.msra.mxu1 %v10730_v63 }
0x1d22   :  { %8077 = vmatprep.subr.mxu1 %v8312_v0 }
0x1d23   :  { %8078 = vmatpush3.msra.mxu1 %v10737_v4 }
0x1d24   :  { %8079 = vmatprep.subr.mxu1 %v8312_v0 }
0x1d25   :  { %8080 = vmatpush3.msra.mxu1 %v10744_v5 }
0x1d26   :  { %8081 = vmatprep.subr.mxu1 %v8312_v0 }
0x1d27   :  { %8082 = vmatpush3.msra.mxu1 %v10751_v22 }
0x1d28   :  { %8083 = vmatprep.subr.mxu1 %v8312_v0 }
0x1d29   :  { %8084 = vmatpush3.msra.mxu1 %v10758_v23 }
0x1d2a   :  { %8085 = vmatprep.subr.mxu1 %v8312_v0 }
0x1d2b   :  { %8086 = vmatpush3.msra.mxu1 %v10765_v24 }
0x1d2c   :  { %8087 = vmatprep.subr.mxu1 %v8312_v0 }
0x1d2d   :  { %8088 = vmatpush3.msra.mxu1 %v10772_v25 }
0x1d2e   :  { %8089 = vmatprep.subr.mxu1 %v8312_v0 }
0x1d2f   :  { %8090 = vmatpush3.msra.mxu1 %v10779_v41 }
0x1d30   :  { %8091 = vmatprep.subr.mxu1 %v8312_v0 }
0x1d31   :  { %8092 = vmatpush3.msra.mxu1 %v10786_v27 }
0x1d32   :  { %8093 = vmatprep.subr.mxu1 %v8312_v0 }
0x1d33   :  { %8094 = vmatpush3.msra.mxu1 %v8307_v45 }
0x1d34   :  { %8095 = vmatprep.subr.mxu1 %v8312_v0 }
0x1d35   :  { %8096 = vmatpush3.msra.mxu1 %v8308_v29 }
0x1d36   :  { %8097 = vmatprep.subr.mxu1 %v8312_v0 }
0x1d37   :  { %8098 = vmatpush3.msra.mxu1 %v8309_v40 }
0x1d38   :  { %8099 = vmatprep.subr.mxu1 %v8312_v0 }
0x1d39   :  { %8100 = vmatpush3.msra.mxu1 %v8310_v44 }
0x1d3a   :  { %8101 = vmatprep.subr.mxu1 %v8312_v0 }
0x1d3b   :  { %8102 = vmatpush3.msra.mxu1 %v8311_v39 }
0x1d3c   :  { %8146 = vmatprep.subr.mxu1 %v8312_v0 }
0x1dd4   :  { %v10810_v31 = vpop.f32.mrf.mxu1 }
0x1dd6   :  { %v10812_v32 = vpop.f32.mrf.mxu1 }
0x1dd8   :  { %v5206_v55 = vpop.f32.mrf.mxu1 }
0x1dda   :  { %v8063_v54 = vpop.f32.mrf.mxu1 }
0x1ddc   :  { %v5278_v53 = vpop.f32.mrf.mxu1 }
0x1ddd   :  { %v5283_v37 = vrot.slane %v5278_v53, 7  ;;  %v10932_v53 = vpop.f32.mrf.mxu0 }
0x1dde   :  { %v8070_v10 = vpop.f32.mrf.mxu1 }
0x1ddf   :  { %v5285_v34 = vsel %vm252_vm2, %v5206_v55, %v5283_v37 }
0x1de0   :  { %8104 = vmatmul.mubr.f32.vlgmr.msra.gmra.mxu1 %v5285_v34  ;;  %v10935_v34 = vpop.f32.mrf.mxu0 }
0x1de1   :  { %8147 = vmatpush3.msra.mxu1 %v10817_v33  ;;  %8150 = vmatprep.mubr.msk.f32.mxu1 %vm8313_vm0, %v8312_v0 }
0x1de2   :  { %8148 = vmatprep.subr.mxu1 %v8312_v0 }
0x1de3   :  { %8149 = vmatpush3.msra.mxu1 %v10823_v35 }
0x1de4   :  { %8151 = vmatmul.mubr.msk.f32.vlgmr.msra.gmra.mxu1 %vm103_vm1, %v8314_v7  ;;  %8153 = vmatprep.subr.mxu1 %v8312_v0 }
0x1de5   :  { %8154 = vmatpush3.msra.mxu1 %v5650_v46  ;;  %8157 = vmatprep.mubr.msk.f32.mxu1 %vm8313_vm0, %v8312_v0 }
0x1de6   :  { %8155 = vmatprep.subr.mxu1 %v8312_v0 }
0x1de7   :  { %8156 = vmatpush3.msra.mxu1 %v5649_v38  ;;  %v6397_v38 = vld [vmem:[%s11025_s7 + $0x3] sm:$0x1] }
0x1de8   :  { %8158 = vmatmul.mubr.msk.f32.vlgmr.msra.gmra.mxu1 %vm103_vm1, %v8314_v7  ;;  %8160 = vmatprep.subr.mxu1 %v8312_v0 }
0x1de9   :  { %8161 = vmatpush3.msra.mxu1 %v10524_v8  ;;  %8192 = vmatprep.mubr.msk.f32.mxu1 %vm8313_vm0, %v8312_v0 }
0x1dea   :  { %8162 = vmatprep.subr.mxu1 %v8312_v0 }
0x1deb   :  { %8163 = vmatpush3.msra.mxu1 %v10723_v61  ;;  %v6388_v61 = vld [vmem:[%s11027_s9 + $0x148] sm:$0xff] }
0x1dec   :  { %8164 = vmatprep.subr.mxu1 %v8312_v0 }
0x1ded   :  { %8165 = vmatpush3.msra.mxu1 %v10730_v63  ;;  %v6387_v63 = vld [vmem:[%s11027_s9 + $0x140] sm:$0xff] }
0x1dee   :  { %8166 = vmatprep.subr.mxu1 %v8312_v0 }
0x1def   :  { %8167 = vmatpush3.msra.mxu1 %v10737_v4  ;;  %v6386_v4 = vld [vmem:[%s11027_s9 + $0x138] sm:$0xff] }
0x1df0   :  { %8168 = vmatprep.subr.mxu1 %v8312_v0 }
0x1df1   :  { %8169 = vmatpush3.msra.mxu1 %v10744_v5  ;;  %v6385_v5 = vld [vmem:[%s11027_s9 + $0x130] sm:$0xff] }
0x1df2   :  { %8170 = vmatprep.subr.mxu1 %v8312_v0 }
0x1df3   :  { %8171 = vmatpush3.msra.mxu1 %v10751_v22  ;;  %v6384_v22 = vld [vmem:[%s11027_s9 + $0x128] sm:$0xff] }
0x1df4   :  { %8172 = vmatprep.subr.mxu1 %v8312_v0 }
0x1df5   :  { %8173 = vmatpush3.msra.mxu1 %v10758_v23  ;;  %v6383_v23 = vld [vmem:[%s11027_s9 + $0x120] sm:$0xff] }
0x1df6   :  { %8174 = vmatprep.subr.mxu1 %v8312_v0 }
0x1df7   :  { %8175 = vmatpush3.msra.mxu1 %v10765_v24  ;;  %v6382_v24 = vld [vmem:[%s11027_s9 + $0x118] sm:$0xff] }
0x1df8   :  { %8176 = vmatprep.subr.mxu1 %v8312_v0 }
0x1df9   :  { %8177 = vmatpush3.msra.mxu1 %v10772_v25  ;;  %v6381_v25 = vld [vmem:[%s11027_s9 + $0x110] sm:$0xff] }
0x1dfa   :  { %8178 = vmatprep.subr.mxu1 %v8312_v0 }
0x1dfb   :  { %8179 = vmatpush3.msra.mxu1 %v10779_v41  ;;  %v6380_v41 = vld [vmem:[%s11027_s9 + $0x108] sm:$0xff] }
0x1dfc   :  { %8180 = vmatprep.subr.mxu1 %v8312_v0 }
0x1dfd   :  { %8181 = vmatpush3.msra.mxu1 %v10786_v27  ;;  %v6379_v27 = vld [vmem:[%s11027_s9 + $0x100] sm:$0xff] }
0x1dfe   :  { %8182 = vmatprep.subr.mxu1 %v8312_v0 }
0x1dff   :  { %8183 = vmatpush3.msra.mxu1 %v8307_v45 }
0x1e00   :  { %8184 = vmatprep.subr.mxu1 %v8312_v0 }
0x1e01   :  { %8185 = vmatpush3.msra.mxu1 %v8308_v29 }
0x1e02   :  { %8186 = vmatprep.subr.mxu1 %v8312_v0 }
0x1e03   :  { %8187 = vmatpush3.msra.mxu1 %v8309_v40 }
0x1e04   :  { %8188 = vmatprep.subr.mxu1 %v8312_v0 }
0x1e05   :  { %8189 = vmatpush3.msra.mxu1 %v8310_v44 }
0x1e06   :  { %8190 = vmatprep.subr.mxu1 %v8312_v0 }
0x1e07   :  { %8191 = vmatpush3.msra.mxu1 %v8311_v39 }
0x1ea0   :  { %v5352_v7 = vpop.f32.mrf.mxu1 }
0x1ea1   :  { %v5356_v8 = vmul.f32 0.001953125, %v5352_v7 }
0x1ea2   :  { %v8105_v36 = vpop.f32.mrf.mxu1 }
0x1ea3   :  { %v5357_v47 = vmul.f32 %v5356_v8, %v5356_v8 }
0x1ea4   :  { %v5645_v1 = vpop.f32.mrf.mxu1 }
0x1ea5   :  { %v5359_v9 = vrot.slane %v5357_v47, 7 }
0x1ea6   :  { %v8152_v42 = vpop.f32.mrf.mxu1 }
0x1ea7   :  { %v5361_v58 = vsub.f32 %v5356_v8, %v5359_v9 }
0x1ea8   :  { %v5717_v6 = vpop.f32.mrf.mxu1 }
0x1ea9   :  { %v5362_v11 = vadd.f32 1e-05, %v5361_v58  ;;  %v5722_v12 = vrot.slane %v5717_v6, 7  ;;  %v6398_v6 = vld [vmem:[%s11026_s8 + $0x3] sm:$0x1] }
0x1eaa   :  { %v8159_v13 = vpop.f32.mrf.mxu1 }
0x1eab   :  { %8257 = vrsqrt.f32 %v5362_v11  ;;  %v5724_v14 = vsel %vm252_vm2, %v5645_v1, %v5722_v12 }
0x1eac   :  { %8193 = vmatmul.mubr.f32.vlgmr.msra.gmra.mxu1 %v5724_v14 }
0x1eb8   :  { %v8258_v15 = vpop.eup %8257 }
0x1eb9   :  { %v5371_v16 = vrot.slane %v8258_v15, %v8560_v48 }
0x1ebb   :  { %v5372_v17 = vcombine.high %v5371_v16, %v5371_v16 }
0x1ebd   :  { %v5379_v19 = vrot.slane %v5372_v17, %v8560_v48  ;;  %v6417_v17 = vld [vmem:[%s11027_s9 + $0x1f0] sm:$0xff] }
0x1ebf   :  { %v5381_v20 = vmul.f32 %v6373_v18, %v5379_v19  ;;  %v6416_v18 = vld [vmem:[%s11027_s9 + $0x1e8] sm:$0xff]  ;;  %v6413_v19 = vld [vmem:[%s11027_s9 + $0x1d0] sm:$0xff] }
0x1ec1   :  { %v5382_v2 = vmul.f32 %v5381_v20, %v5356_v8 }
0x1ec3   :  { %v5383_v50 = vsub.f32 %v6374_v28, %v5382_v2  ;;  %v6411_v28 = vld [vmem:[%s11027_s9 + $0x1c0] sm:$0xff]  ;;  %v6410_v2 = vld [vmem:[%s11027_s9 + $0x1b8] sm:$0xff] }
0x1ec5   :  { %v5388_v43 = vrot.slane %v5383_v50, %v8571_v57  ;;  %v6409_v50 = vld [vmem:[%s11027_s9 + $0x1b0] sm:$0xff] }
0x1ec7   :  { %v5390_v52 = vsel %vm252_vm2, %v5381_v20, %v5388_v43  ;;  %v6412_v20 = vld [vmem:[%s11027_s9 + $0x1c8] sm:$0xff] }
0x1ec8   :  { %8109 = vmatmul.mubr.msk.f32.vlgmr.msra.gmra.mxu0 %vm359_vm4, %v5390_v52  ;;  %v6408_v43 = vld [vmem:[%s11027_s9 + $0x1a8] sm:$0xff]  ;;  %v6407_v52 = vld [vmem:[%s11027_s9 + $0x1a0] sm:$0xff] }
0x1ec9   :  { %8112 = vmatpush3.msra.mxu0 %v6394_v21  ;;  %v6406_v21 = vld [vmem:[%s11027_s9 + $0x198] sm:$0xff] }
0x1eca   :  { %8113 = vmatprep.subr.mxu0 %v6393_v51 }
0x1ecb   :  { %8114 = vmatpush3.msra.mxu0 %v6393_v51  ;;  %v6405_v51 = vld [vmem:[%s11027_s9 + $0x190] sm:$0xff] }
0x1ecc   :  { %8115 = vmatprep.subr.mxu0 %v6392_v49 }
0x1ecd   :  { %8116 = vmatpush3.msra.mxu0 %v6392_v49  ;;  %v6404_v49 = vld [vmem:[%s11027_s9 + $0x188] sm:$0xff] }
0x1ece   :  { %8117 = vmatprep.subr.mxu0 %v6391_v3 }
0x1ecf   :  { %8118 = vmatpush3.msra.mxu0 %v6391_v3  ;;  %v6403_v3 = vld [vmem:[%s11027_s9 + $0x180] sm:$0xff] }
0x1ed0   :  { %8119 = vmatprep.subr.mxu0 %v6390_v56 }
0x1ed1   :  { %8120 = vmatpush3.msra.mxu0 %v6390_v56  ;;  %v5131_v56 = vadd.f32 %v10932_v53, %v10810_v31 }
0x1ed2   :  { %8121 = vmatprep.subr.mxu0 %v6389_v30 }
0x1ed3   :  { %8122 = vmatpush3.msra.mxu0 %v6389_v30 }
0x1ed4   :  { %8123 = vmatprep.subr.mxu0 %v6388_v61 }
0x1ed5   :  { %8124 = vmatpush3.msra.mxu0 %v6388_v61  ;;  %v5126_v61 = vadd.f32 %v10935_v34, %v10812_v32 }
0x1ed6   :  { %8125 = vmatprep.subr.mxu0 %v6387_v63 }
0x1ed7   :  { %8126 = vmatpush3.msra.mxu0 %v6387_v63 }
0x1ed8   :  { %8127 = vmatprep.subr.mxu0 %v6386_v4 }
0x1ed9   :  { %8128 = vmatpush3.msra.mxu0 %v6386_v4 }
0x1eda   :  { %8129 = vmatprep.subr.mxu0 %v6385_v5 }
0x1edb   :  { %8130 = vmatpush3.msra.mxu0 %v6385_v5 }
0x1edc   :  { %8131 = vmatprep.subr.mxu0 %v6384_v22 }
0x1edd   :  { %8132 = vmatpush3.msra.mxu0 %v6384_v22 }
0x1ede   :  { %8133 = vmatprep.subr.mxu0 %v6383_v23 }
0x1edf   :  { %8134 = vmatpush3.msra.mxu0 %v6383_v23 }
0x1ee0   :  { %8135 = vmatprep.subr.mxu0 %v6382_v24 }
0x1ee1   :  { %8136 = vmatpush3.msra.mxu0 %v6382_v24 }
0x1ee2   :  { %8137 = vmatprep.subr.mxu0 %v6381_v25 }
0x1ee3   :  { %8138 = vmatpush3.msra.mxu0 %v6381_v25 }
0x1ee4   :  { %8139 = vmatprep.subr.mxu0 %v6380_v41 }
0x1ee5   :  { %8140 = vmatpush3.msra.mxu0 %v6380_v41 }
0x1ee6   :  { %8141 = vmatprep.subr.mxu0 %v6379_v27 }
0x1ee7   :  { %8142 = vmatpush3.msra.mxu0 %v6379_v27 }
0x1ee8   :  { %8195 = vmatprep.subr.mxu0 %v8312_v0 }
0x1f6c   :  { %v5791_v45 = vpop.f32.mrf.mxu1 }
0x1f6d   :  { %v5795_v29 = vmul.f32 0.001953125, %v5791_v45 }
0x1f6e   :  { %v8194_v40 = vpop.f32.mrf.mxu1 }
0x1f6f   :  { %v5796_v44 = vmul.f32 %v5795_v29, %v5795_v29 }
0x1f71   :  { %v5798_v39 = vrot.slane %v5796_v44, 7 }
0x1f73   :  { %v5800_v55 = vsub.f32 %v5795_v29, %v5798_v39 }
0x1f75   :  { %v5801_v54 = vadd.f32 1e-05, %v5800_v55 }
0x1f77   :  { %8259 = vrsqrt.f32 %v5801_v54 }
0x1f84   :  { %v8260_v37 = vpop.eup %8259 }
0x1f85   :  { %v5810_v10 = vrot.slane %v8260_v37, %v8560_v48 }
0x1f87   :  { %v5811_v46 = vcombine.high %v5810_v10, %v5810_v10 }
0x1f88   :  { %v5460_v7 = vpop.f32.mrf.mxu0 }
0x1f89   :  { %v5818_v8 = vrot.slane %v5811_v46, %v8560_v48  ;;  %v5467_v36 = vrot.slane %v5460_v7, %v8571_v57  ;;  %v5473_v58 = vrot.slane %v5460_v7, %v8701_v62 }
0x1f8a   :  { %v8110_v47 = vpop.f32.mrf.mxu0 }
0x1f8b   :  { %v5820_v1 = vmul.f32 %v6397_v38, %v5818_v8  ;;  %v5468_v9 = vmul.f32 %v5467_v36, %v10696_v60  ;;  %v5469_v42 = vmul.f32 %v5467_v36, %v10691_v59  ;;  %v6418_v60 = vld [vmem:[%s11027_s9 + $0x1f8] sm:$0xff] }
0x1f8d   :  { %v5821_v11 = vmul.f32 %v5820_v1, %v5795_v29  ;;  %v5474_v12 = vadd.f32 %v5473_v58, %v5468_v9  ;;  %v5475_v13 = vadd.f32 %v5473_v58, %v5469_v42 }
0x1f8f   :  { %v5822_v14 = vsub.f32 %v6398_v6, %v5821_v11  ;;  %v5477_v15 = vmax.f32 %v5475_v13, 0.0  ;;  %v5476_v48 = vmax.f32 %v5474_v12, 0.0 }
0x1f91   :  { %v5827_v16 = vrot.slane %v5822_v14, %v8571_v57  ;;  %8143 = vmatprep.mubr.f32.mxu0 %v5476_v48 }
0x1f92   :  { %8144 = vmatmul.mubr.f32.vlgmr.msra.gmra.mxu0 %v5477_v15 }
0x1f93   :  { %8196 = vmatpush3.msk.msra.mxu0 %vm363_vm3, %v10618_v26  ;;  %8197 = vmatprep.mubr.msk.f32.mxu0 %vm8313_vm0, %v8312_v0  ;;  %v5829_v59 = vsel %vm252_vm2, %v5820_v1, %v5827_v16  ;;  %v6415_v0 = vld [vmem:[%s11027_s9 + $0x1e0] sm:$0xff]  ;;  %v6414_v26 = vld [vmem:[%s11027_s9 + $0x1d8] sm:$0xff] }
0x1f94   :  { %8200 = vmatprep.subr.mxu0 %v6418_v60 }
0x1f96   :  { %8198 = vmatmul.mubr.msk.f32.vlgmr.msra.gmra.mxu0 %vm359_vm4, %v5829_v59 }
0x1f97   :  { %8201 = vmatpush3.msra.mxu0 %v6418_v60 }
0x1f98   :  { %8202 = vmatprep.subr.mxu0 %v6417_v17 }
0x1f99   :  { %8203 = vmatpush3.msra.mxu0 %v6417_v17 }
0x1f9a   :  { %8204 = vmatprep.subr.mxu0 %v6416_v18 }
0x1f9b   :  { %8205 = vmatpush3.msra.mxu0 %v6416_v18 }
0x1f9c   :  { %8206 = vmatprep.subr.mxu0 %v6415_v0 }
0x1f9d   :  { %8207 = vmatpush3.msra.mxu0 %v6415_v0 }
0x1f9e   :  { %8208 = vmatprep.subr.mxu0 %v6414_v26 }
0x1f9f   :  { %8209 = vmatpush3.msra.mxu0 %v6414_v26 }
0x1fa0   :  { %8210 = vmatprep.subr.mxu0 %v6413_v19 }
0x1fa1   :  { %8211 = vmatpush3.msra.mxu0 %v6413_v19 }
0x1fa2   :  { %8212 = vmatprep.subr.mxu0 %v6412_v20 }
0x1fa3   :  { %8213 = vmatpush3.msra.mxu0 %v6412_v20 }
0x1fa4   :  { %8214 = vmatprep.subr.mxu0 %v6411_v28 }
0x1fa5   :  { %8215 = vmatpush3.msra.mxu0 %v6411_v28 }
0x1fa6   :  { %8216 = vmatprep.subr.mxu0 %v6410_v2 }
0x1fa7   :  { %8217 = vmatpush3.msra.mxu0 %v6410_v2 }
0x1fa8   :  { %8218 = vmatprep.subr.mxu0 %v6409_v50 }
0x1fa9   :  { %8219 = vmatpush3.msra.mxu0 %v6409_v50 }
0x1faa   :  { %8220 = vmatprep.subr.mxu0 %v6408_v43 }
0x1fab   :  { %8221 = vmatpush3.msra.mxu0 %v6408_v43 }
0x1fac   :  { %8222 = vmatprep.subr.mxu0 %v6407_v52 }
0x1fad   :  { %8223 = vmatpush3.msra.mxu0 %v6407_v52 }
0x1fae   :  { %8224 = vmatprep.subr.mxu0 %v6406_v21 }
0x1faf   :  { %8225 = vmatpush3.msra.mxu0 %v6406_v21 }
0x1fb0   :  { %8226 = vmatprep.subr.mxu0 %v6405_v51 }
0x1fb1   :  { %8227 = vmatpush3.msra.mxu0 %v6405_v51 }
0x1fb2   :  { %8228 = vmatprep.subr.mxu0 %v6404_v49 }
0x1fb3   :  { %8229 = vmatpush3.msra.mxu0 %v6404_v49 }
0x1fb4   :  { %8230 = vmatprep.subr.mxu0 %v6403_v3 }
0x1fb5   :  { %8231 = vmatpush3.msra.mxu0 %v6403_v3 }
0x2052   :  { %v8145_v30 = vpop.f32.mrf.mxu0 }
0x2053   :  { %v5571_v63 = vadd.f32 %v8145_v30, %v5131_v56 }
0x2054   :  { %v5561_v4 = vpop.f32.mrf.mxu0 }
0x2055   :  { %v5570_v5 = vadd.f32 %v5561_v4, %v5126_v61 }
0x2056   :  { %v5899_v22 = vpop.f32.mrf.mxu0 }
0x2057   :  { %v5906_v23 = vrot.slane %v5899_v22, %v8571_v57  ;;  %v5912_v27 = vrot.slane %v5899_v22, %v8701_v62 }
0x2058   :  { %v8199_v24 = vpop.f32.mrf.mxu0 }
0x2059   :  { %v5907_v25 = vmul.f32 %v10823_v35, %v5906_v23  ;;  %v5908_v41 = vmul.f32 %v10817_v33, %v5906_v23 }
0x205b   :  { %v5913_v45 = vadd.f32 %v5912_v27, %v5907_v25  ;;  %v5914_v29 = vadd.f32 %v5912_v27, %v5908_v41 }
0x205d   :  { %v5916_v31 = vmax.f32 %v5914_v29, 0.0  ;;  %v5915_v40 = vmax.f32 %v5913_v45, 0.0 }
0x205f   :  { %8232 = vmatprep.mubr.f32.mxu0 %v5915_v40 }
0x2060   :  { %8233 = vmatmul.mubr.f32.vlgmr.msra.gmra.mxu0 %v5916_v31 }
0x2120   :  { %v8234_v32 = vpop.f32.mrf.mxu0 }
0x2121   :  { %v6010_v44 = vadd.f32 %v8234_v32, %v5571_v63 }
0x2122   :  { %v6000_v39 = vpop.f32.mrf.mxu0 }
0x2123   :  { %6012 = vst [vmem:[%s11029_s12 + $0x8] sm:$0xff] %v6010_v44  ;;  %v6009_v57 = vadd.f32 %v6000_v39, %v5570_v5 }
0x2125   :  { %6011 = vst [vmem:[%s11029_s12] sm:$0xff] %v6009_v57 }

</bundles_post_ra>
